<compile_context>
chip_gen: v7x
topology: tpu7x:2x2x1
jax: 0.10.0
libtpu: 0.0.40
codegen_flags: <defaults>
</compile_context>

<pallas_src>
import math

import jax
import jax.numpy as jnp
import numpy as np
from jax.experimental import pallas as pl
from jax.experimental.pallas import tpu as pltpu


def _round_up(x, m):
    return (x + m - 1) // m * m


def _pick_batch_tile(B, in_w, out_w, p_bytes):
    """Lane-axis batch tile: multiple of 128, >=2 grid programs when the batch allows it,
    double-buffered x/out tiles + params kept well under the v5e 16 MiB scoped VMEM."""
    budget = 4 * 1024 * 1024
    for tb in (1024, 512, 256, 128):
        if B >= 2 * tb and 2 * (in_w + out_w) * tb * 4 + p_bytes <= budget:
            return tb
    return 128


# ---------------------------------------------------------------------------
# Pallas implementation
# ---------------------------------------------------------------------------
def coordinate_arithmetic_forward(inputs, params):
    """inputs: (B, T, nv, C) f32; params: RuleNetwork weights. Returns (B, T-1, nv, C)."""
    B, T, nv, C = inputs.shape
    cv = 3 * C                                    # rule-network channels: [frame | diff | target]
    nr, _cr = params["rule_embeds"].shape
    cm2 = params["s2_qw"].shape[1]                # selector2 inner dim (16)
    H = params["m1_w"].shape[2]                   # rule-MLP hidden width (32)
    OC = params["m2_w"].shape[2]                  # rule-MLP output channels (2)
    assert params["m1_w"].shape[1] == 2 * nv, "rule MLP din must equal 2*nv"
    assert OC == C, "rule MLP output channels must equal coordinate channels"
    assert nv <= C, "var_p[:, :nv] must lie inside the frame channels"
    assert T >= 2
    f32 = jnp.float32

    fw = nv * C                                   # frame rows (features on sublanes)
    in_w = T * fw
    out_w = (T - 1) * fw

    # ------------- parameter-only precompute (hoisted out of the kernel) -------------
    eye_v = jnp.eye(nv, dtype=f32)
    eye_r = jnp.eye(nr, dtype=f32)

    # selector1 fused: a1[b, r*nv+v] = hidden[b,v] . G[:, r] + gb[r]; diff folded into
    # frame/target weights (hidden = [frame, target-frame, target]; temperature dropped:
    # a positive scale never changes an argmax).
    r1 = params["rule_embeds"].astype(f32) @ params["s1_qw"].astype(f32) + params["s1_qb"].astype(f32)
    G = params["s1_kw"].astype(f32) @ r1.T                        # (cv, nr)
    gb = params["s1_kb"].astype(f32) @ r1.T                       # (nr,)
    Gf, Gd, Gt = G[0:C], G[C:2 * C], G[2 * C:3 * C]
    Wf_a1 = jnp.einsum("cr,vu->rvuc", Gf - Gd, eye_v).reshape(nr * nv, fw)
    Wt_a1 = jnp.einsum("cr,vu->rvuc", Gd + Gt, eye_v).reshape(nr * nv, fw)
    b_a1 = jnp.tile(gb[:, None], (1, nv)).reshape(nr * nv)

    # selector2 q (shared Linear) evaluated for every variable (selected later with vsel)
    Q = params["s2_qw"].astype(f32)                               # (cv, cm2)
    Qf, Qd, Qt = Q[0:C], Q[C:2 * C], Q[2 * C:3 * C]
    Wf_q2 = jnp.einsum("cm,vu->vmuc", Qf - Qd, eye_v).reshape(nv * cm2, fw)
    Wt_q2 = jnp.einsum("cm,vu->vmuc", Qd + Qt, eye_v).reshape(nv * cm2, fw)
    b_q2 = jnp.tile(params["s2_qb"].astype(f32), (nv,))

    # selector2 k (GLinear per variable)
    K = params["s2_kw"].astype(f32)                               # (nv, cv, cm2)
    Kf, Kd, Kt = K[:, 0:C], K[:, C:2 * C], K[:, 2 * C:3 * C]
    Wf_k2 = jnp.einsum("vcm,vu->vmuc", Kf - Kd, eye_v).reshape(nv * cm2, fw)
    Wt_k2 = jnp.einsum("vcm,vu->vmuc", Kd + Kt, eye_v).reshape(nv * cm2, fw)
    b_k2 = params["s2_kb"].astype(f32).reshape(nv * cm2)

    sel_rows = nr * nv + 2 * nv * cm2
    Wf_sel = jnp.concatenate([Wf_a1, Wf_q2, Wf_k2], axis=0)       # (sel_rows, fw)
    Wt_sel = jnp.concatenate([Wt_a1, Wt_q2, Wt_k2], axis=0)       # (sel_rows, fw)
    b_sel = jnp.concatenate([b_a1, b_q2, b_k2], axis=0)           # (sel_rows,)

    # flat (rule, var) argmax one-hot -> [vsel ; rsel] via one constant mapping matmul
    Map = jnp.concatenate([jnp.tile(eye_v, (1, nr)),              # (nv, nr*nv): pick variable
                           jnp.repeat(eye_r, nv, axis=1)], 0)     # (nr, nr*nv): pick rule
    # block-sum matrix for attent2 (sums each variable's cm2-wide q.k product block)
    S2 = jnp.repeat(eye_v, cm2, axis=1)                           # (nv, nv*cm2)

    # rule MLP: layer1 input shared across rules -> rule blocks stacked on rows;
    #           layer2 input differs per rule    -> block-diagonal (nr*OC, nr*H)
    M1T = jnp.transpose(params["m1_w"].astype(f32), (0, 2, 1)).reshape(nr * H, 2 * nv)
    m1b = params["m1_b"].astype(f32).reshape(nr * H)
    M2T = jnp.einsum("rjc,rs->rcsj", params["m2_w"].astype(f32), eye_r).reshape(nr * OC, nr * H)
    m2b = params["m2_b"].astype(f32).reshape(nr * OC)

    # ------------- pack everything into ONE lane-dense parameter buffer -------------
    # Every matrix is a transposed LHS (out_rows, in_cols); each block starts at a row offset
    # that is a multiple of 8 and at column 0, so hoisted static slices stay tile-aligned.
    r_wf = 0                                                # Wf_sel cols [0,fw), b_sel col fw
    r_wt = r_wf + _round_up(sel_rows, 8)                    # Wt_sel cols [0,fw)
    r_map = r_wt + _round_up(sel_rows, 8)                   # Map    cols [0,nr*nv)
    r_s2 = r_map + _round_up(nv + nr, 8)                    # S2     cols [0,nv*cm2)
    r_m1 = r_s2 + _round_up(nv, 8)                          # M1T    cols [0,2nv), m1b col 2nv
    r_m2 = r_m1 + _round_up(nr * H, 8)                      # M2T    cols [0,nr*H)
    r_m2b = r_m2 + _round_up(nr * OC, 8)                    # m2b    col 0
    rows_P = r_m2b + _round_up(nr * OC, 8)
    cols_P = _round_up(max(2 * fw + 1, nr * nv, nv * cm2, 2 * nv + 1, nr * H), 128)

    P = jnp.zeros((rows_P, cols_P), f32)
    P = P.at[r_wf:r_wf + sel_rows, 0:fw].set(Wf_sel)
    P = P.at[r_wf:r_wf + sel_rows, fw].set(b_sel)
    P = P.at[r_wt:r_wt + sel_rows, 0:fw].set(Wt_sel)
    P = P.at[r_map:r_map + nv + nr, 0:nr * nv].set(Map)
    P = P.at[r_s2:r_s2 + nv, 0:nv * cm2].set(S2)
    P = P.at[r_m1:r_m1 + nr * H, 0:2 * nv].set(M1T)
    P = P.at[r_m1:r_m1 + nr * H, 2 * nv].set(m1b)
    P = P.at[r_m2:r_m2 + nr * OC, 0:nr * H].set(M2T)
    P = P.at[r_m2b:r_m2b + nr * OC, 0].set(m2b)

    # ------------- batch-on-lanes layout, tiling, grid -------------
    p_bytes = rows_P * cols_P * 4
    TB = _pick_batch_tile(B, in_w, out_w, p_bytes)
    B_pad = _round_up(B, TB)
    x2d = jnp.transpose(inputs.astype(f32).reshape(B, in_w))      # (in_w, B): batch on lanes
    if B_pad != B:
        x2d = jnp.pad(x2d, ((0, 0), (0, B_pad - B)))
    grid = (B_pad // TB,)

    def kernel(x_ref, p_ref, o_ref):
        # ---- loop-invariant weight views / bias broadcasts / iotas (hoisted) ----
        Wf_ = p_ref[r_wf:r_wf + sel_rows, 0:fw]
        Wt_ = p_ref[r_wt:r_wt + sel_rows, 0:fw]
        bsel = jnp.broadcast_to(p_ref[r_wf:r_wf + sel_rows, fw:fw + 1], (sel_rows, TB))
        Map_ = p_ref[r_map:r_map + nv + nr, 0:nr * nv]
        S2_ = p_ref[r_s2:r_s2 + nv, 0:nv * cm2]
        M1_ = p_ref[r_m1:r_m1 + nr * H, 0:2 * nv]
        m1b_ = jnp.broadcast_to(p_ref[r_m1:r_m1 + nr * H, 2 * nv:2 * nv + 1], (nr * H, TB))
        M2_ = p_ref[r_m2:r_m2 + nr * OC, 0:nr * H]
        m2b_ = jnp.broadcast_to(p_ref[r_m2b:r_m2b + nr * OC, 0:1], (nr * OC, TB))
        iota1 = jax.lax.broadcasted_iota(jnp.int32, (nr * nv, TB), 0)
        iota2 = jax.lax.broadcasted_iota(jnp.int32, (nv, TB), 0)

        frame = x_ref[0:fw, :]                               # (fw, TB)
        for t in range(1, T):                                # sequential frame recurrence
            target = x_ref[t * fw:(t + 1) * fw, :]           # (fw, TB)

            # all selector projections: two small MXU matmuls (diff folded into the weights)
            sel = (jnp.dot(Wf_, frame, preferred_element_type=f32)
                   + jnp.dot(Wt_, target, preferred_element_type=f32) + bsel)
            a1 = sel[0:nr * nv, :]                           # (nr*nv, TB)
            q2_all = sel[nr * nv:nr * nv + nv * cm2, :]      # (nv*cm2, TB)
            k2 = sel[nr * nv + nv * cm2:sel_rows, :]         # (nv*cm2, TB)

            # selector1: joint hard (rule, primary-variable) selection
            mx1 = jnp.max(a1, axis=0, keepdims=True)
            first1 = jnp.min(jnp.where(a1 >= mx1, iota1, nr * nv), axis=0, keepdims=True)
            onehot1 = (iota1 == first1).astype(f32)          # (nr*nv, TB)
            selrv = jnp.dot(Map_, onehot1, preferred_element_type=f32)
            vsel = selrv[0:nv, :]                            # (nv, TB) primary-variable one-hot
            rsel = selrv[nv:nv + nr, :]                      # (nr, TB) rule one-hot

            # selector2: context-variable hard selection (block-sum matmul, no lane reduces)
            q2sel = q2_all[0:cm2, :] * vsel[0:1, :]
            for v in range(1, nv):
                q2sel = q2sel + q2_all[v * cm2:(v + 1) * cm2, :] * vsel[v:v + 1, :]
            att2 = jnp.dot(S2_, jnp.concatenate([q2sel] * nv, axis=0) * k2,
                           preferred_element_type=f32)       # (nv, TB)
            mx2 = jnp.max(att2, axis=0, keepdims=True)
            first2 = jnp.min(jnp.where(att2 >= mx2, iota2, nv), axis=0, keepdims=True)
            onehot2 = (iota2 == first2).astype(f32)          # (nv, TB)

            # rule MLP on [var_p[:nv], var_c[:nv]] (frame channels of the selected variables)
            varp = frame[0:nv, :] * vsel[0:1, :]
            varc = frame[0:nv, :] * onehot2[0:1, :]
            for v in range(1, nv):
                varp = varp + frame[v * C:v * C + nv, :] * vsel[v:v + 1, :]
                varc = varc + frame[v * C:v * C + nv, :] * onehot2[v:v + 1, :]
            pc = jnp.concatenate([varp, varc], axis=0)       # (2*nv, TB)
            h = jnp.maximum(jnp.dot(M1_, pc, preferred_element_type=f32) + m1b_, 0.0)
            o = jnp.dot(M2_, h, preferred_element_type=f32) + m2b_      # (nr*OC, TB)
            out2 = o[0:OC, :] * rsel[0:1, :]
            for r in range(1, nr):
                out2 = out2 + o[r * OC:(r + 1) * OC, :] * rsel[r:r + 1, :]   # (OC, TB)

            # frame update on the selected variable only; incremental lane-dense store
            new_rows = []
            for v in range(nv):
                mv = vsel[v:v + 1, :]
                new_rows.append(mv * out2 + (1.0 - mv) * frame[v * C:(v + 1) * C, :])
            frame = jnp.concatenate(new_rows, axis=0)        # (fw, TB)
            o_ref[(t - 1) * fw:t * fw, :] = frame

    out2d = pl.pallas_call(
        kernel,
        out_shape=jax.ShapeDtypeStruct((out_w, B_pad), f32),
        grid=grid,
        in_specs=[pl.BlockSpec((in_w, TB), lambda i: (0, i)),
                  pl.BlockSpec((rows_P, cols_P), lambda i: (0, 0))],
        out_specs=pl.BlockSpec((out_w, TB), lambda i: (0, i)),
        compiler_params=pltpu.CompilerParams(dimension_semantics=("parallel",)),
    )(x2d, P)
    return jnp.transpose(out2d[:, :B]).reshape(B, T - 1, nv, C)


# ---------------------------------------------------------------------------
# Pure-JAX reference (mirrors the PyTorch eval-mode forward) for validation
# ---------------------------------------------------------------------------
def _rule_network_ref(hidden, p):
    b, nv, _cv = hidden.shape
    nr, _ = p["rule_embeds"].shape
    cm1 = p["s1_qw"].shape[1]
    cm2 = p["s2_qw"].shape[1]
    r1 = p["rule_embeds"] @ p["s1_qw"] + p["s1_qb"]
    k1 = jnp.einsum("bvc,cm->bvm", hidden, p["s1_kw"]) + p["s1_kb"]
    attent1 = jnp.einsum("rm,bvm->brv", r1, k1) / np.sqrt(cm1)
    a1 = attent1.reshape(b, nr * nv)
    mask1 = jax.nn.one_hot(jnp.argmax(a1, axis=1), nr * nv,
                           dtype=hidden.dtype).reshape(b, nr, nv)
    mask_r = mask1.sum(2)
    mask_p = mask1.sum(1)
    var_p = (hidden * mask_p[:, :, None]).sum(1)
    q2 = var_p @ p["s2_qw"] + p["s2_qb"]
    k2 = jnp.einsum("bvc,vcm->bvm", hidden, p["s2_kw"]) + p["s2_kb"]
    attent2 = jnp.einsum("bm,bvm->bv", q2, k2) / np.sqrt(cm2)
    mask2 = jax.nn.one_hot(jnp.argmax(attent2, axis=1), nv, dtype=hidden.dtype)
    var_c = (hidden * mask2[:, :, None]).sum(1)
    var_pc = jnp.concatenate(
        [jnp.broadcast_to(var_p[:, None, :nv], (b, nr, nv)),
         jnp.broadcast_to(var_c[:, None, :nv], (b, nr, nv))], axis=2)
    h = jnp.maximum(jnp.einsum("brf,rfh->brh", var_pc, p["m1_w"]) + p["m1_b"][None], 0.0)
    o = jnp.einsum("brh,rho->bro", h, p["m2_w"]) + p["m2_b"][None]
    out = (o * mask_r[:, :, None]).sum(1)
    out = out[:, None, :] * mask_p[:, :, None]
    return out, mask_p


def coordinate_arithmetic_ref(inputs, p):
    B, T, nv, C = inputs.shape
    frame = inputs[:, 0]
    outs = []
    for t in range(1, T):
        target = inputs[:, t]
        diff = target - frame
        hidden = jnp.concatenate([frame, diff, target], axis=2)
        frame2, mask = _rule_network_ref(hidden, p)
        frame = mask[:, :, None] * frame2 + (1.0 - mask[:, :, None]) * frame
        outs.append(frame)
    return jnp.stack(outs, axis=1)


if __name__ == "__main__":
    # nv must be 2 (rule MLP din = 4 = 2*nv) and coordinates have 2 channels (rule MLP dout = 2).
    B, T, nv, C = 2, 6, 2, 2
    nr, cr = 4, 8
    cv = 3 * C

    key = jax.random.PRNGKey(0)
    ks = jax.random.split(key, 16)
    u = lambda k, shape, a: jax.random.uniform(k, shape, jnp.float32, minval=-a, maxval=a)

    a1q = 1.0 / math.sqrt(cr)
    a1k = 1.0 / math.sqrt(cv)
    a2q = 1.0 / math.sqrt(cv)
    a2k = 1.0 / math.sqrt(16.0)
    am1 = 1.0 / math.sqrt(32.0)
    am2 = 1.0 / math.sqrt(2.0)

    params = dict(
        rule_embeds=jax.random.normal(ks[0], (nr, cr), jnp.float32),
        # selector1: shared nn.Linear q/k with cm=32
        s1_qw=u(ks[1], (cr, 32), a1q), s1_qb=u(ks[2], (32,), a1q),
        s1_kw=u(ks[3], (cv, 32), a1k), s1_kb=u(ks[4], (32,), a1k),
        # selector2: shared nn.Linear q (cm=16); GLinear(cv,16,nv) k
        s2_qw=u(ks[5], (cv, 16), a2q), s2_qb=u(ks[6], (16,), a2q),
        s2_kw=u(ks[7], (nv, cv, 16), a2k), s2_kb=u(ks[8], (nv, 16), a2k),
        # rule_mlps: GLinear(4,32,nr) -> (Dropout) -> ReLU -> GLinear(32,2,nr)
        m1_w=u(ks[9], (nr, 2 * nv, 32), am1), m1_b=u(ks[10], (nr, 32), am1),
        m2_w=u(ks[11], (nr, 32, 2), am2), m2_b=u(ks[12], (nr, 2), am2),
    )
    inputs = jax.random.normal(ks[13], (B, T, nv, C), jnp.float32)

    out = jax.jit(coordinate_arithmetic_forward)(inputs, params)
    out = jax.block_until_ready(out)

    ref = coordinate_arithmetic_ref(inputs, params)
    assert out.shape == (B, T - 1, nv, C)
    np.testing.assert_allclose(np.asarray(out), np.asarray(ref), rtol=1e-4, atol=2e-5)
    print("KERNEL_OK")
</pallas_src>

<mosaic_0001>
module attributes {stable_mosaic.version = 11 : i64} {
  func.func @kernel(%arg0: i32, %arg1: memref<24x128xf32, #tpu.memory_space<vmem>>, %arg2: memref<304x128xf32, #tpu.memory_space<vmem>>, %arg3: memref<20x128xf32, #tpu.memory_space<vmem>>) attributes {dimension_semantics = [#tpu.dimension_semantics<parallel>], iteration_bounds = array<i64: 1>, scalar_prefetch = 0 : i64, scratch_operands = 0 : i64, tpu.core_type = #tpu.core_type<tc>, window_params = [{transform_indices = @transform_0, window_bounds = array<i64: 24, 128>}, {pipeline_mode = #tpu.pipeline_mode<synchronous>, transform_indices = @transform_1, window_bounds = array<i64: 304, 128>}, {transform_indices = @transform_2, window_bounds = array<i64: 20, 128>}]} {
    %c0 = arith.constant 0 : index
    %c0_0 = arith.constant 0 : index
    %0 = vector.load %arg2[%c0, %c0_0] : memref<304x128xf32, #tpu.memory_space<vmem>>, vector<72x4xf32>
    %c72 = arith.constant 72 : index
    %c0_1 = arith.constant 0 : index
    %1 = vector.load %arg2[%c72, %c0_1] : memref<304x128xf32, #tpu.memory_space<vmem>>, vector<72x4xf32>
    %c0_2 = arith.constant 0 : index
    %c4 = arith.constant 4 : index
    %2 = vector.load %arg2[%c0_2, %c4] : memref<304x128xf32, #tpu.memory_space<vmem>>, vector<72x1xf32>
    %3 = vector.shape_cast %2 : vector<72x1xf32> to vector<72x1xf32>
    %4 = vector.broadcast %3 : vector<72x1xf32> to vector<72x128xf32>
    %c144 = arith.constant 144 : index
    %c0_3 = arith.constant 0 : index
    %5 = vector.load %arg2[%c144, %c0_3] : memref<304x128xf32, #tpu.memory_space<vmem>>, vector<6x8xf32>
    %c152 = arith.constant 152 : index
    %c0_4 = arith.constant 0 : index
    %6 = vector.load %arg2[%c152, %c0_4] : memref<304x128xf32, #tpu.memory_space<vmem>>, vector<2x32xf32>
    %c160 = arith.constant 160 : index
    %c0_5 = arith.constant 0 : index
    %7 = vector.load %arg2[%c160, %c0_5] : memref<304x128xf32, #tpu.memory_space<vmem>>, vector<128x4xf32>
    %c160_6 = arith.constant 160 : index
    %c4_7 = arith.constant 4 : index
    %8 = vector.load %arg2[%c160_6, %c4_7] : memref<304x128xf32, #tpu.memory_space<vmem>>, vector<128x1xf32>
    %9 = vector.shape_cast %8 : vector<128x1xf32> to vector<128x1xf32>
    %10 = vector.broadcast %9 : vector<128x1xf32> to vector<128x128xf32>
    %c288 = arith.constant 288 : index
    %c0_8 = arith.constant 0 : index
    %11 = vector.load %arg2[%c288, %c0_8] : memref<304x128xf32, #tpu.memory_space<vmem>>, vector<8x128xf32>
    %c296 = arith.constant 296 : index
    %c0_9 = arith.constant 0 : index
    %12 = vector.load %arg2[%c296, %c0_9] : memref<304x128xf32, #tpu.memory_space<vmem>>, vector<8x1xf32>
    %13 = vector.shape_cast %12 : vector<8x1xf32> to vector<8x1xf32>
    %14 = vector.broadcast %13 : vector<8x1xf32> to vector<8x128xf32>
    %15 = tpu.iota {dimensions = array<i32: 0>} : vector<8x128xi32>
    %16 = tpu.iota {dimensions = array<i32: 0>} : vector<2x128xi32>
    %c0_10 = arith.constant 0 : index
    %c0_11 = arith.constant 0 : index
    %17 = vector.load %arg1[%c0_10, %c0_11] : memref<24x128xf32, #tpu.memory_space<vmem>>, vector<4x128xf32>
    %c4_12 = arith.constant 4 : index
    %c0_13 = arith.constant 0 : index
    %18 = vector.load %arg1[%c4_12, %c0_13] : memref<24x128xf32, #tpu.memory_space<vmem>>, vector<4x128xf32>
    %cst = arith.constant dense<0.000000e+00> : vector<72x128xf32>
    %19 = tpu.matmul %0, %17, %cst {dimension_numbers = #tpu.dot_dimension_numbers<[1], [0], [0], [1], [0, 0, 1, 1], [], []>} : vector<72x4xf32>, vector<4x128xf32>, vector<72x128xf32> -> vector<72x128xf32>
    %cst_14 = arith.constant dense<0.000000e+00> : vector<72x128xf32>
    %20 = tpu.matmul %1, %18, %cst_14 {dimension_numbers = #tpu.dot_dimension_numbers<[1], [0], [0], [1], [0, 0, 1, 1], [], []>} : vector<72x4xf32>, vector<4x128xf32>, vector<72x128xf32> -> vector<72x128xf32>
    %21 = arith.addf %19, %20 : vector<72x128xf32>
    %22 = arith.addf %21, %4 : vector<72x128xf32>
    %23 = vector.extract_strided_slice %22 {offsets = [0, 0], sizes = [8, 128], strides = [1, 1]} : vector<72x128xf32> to vector<8x128xf32>
    %24 = vector.extract_strided_slice %22 {offsets = [8, 0], sizes = [32, 128], strides = [1, 1]} : vector<72x128xf32> to vector<32x128xf32>
    %25 = vector.extract_strided_slice %22 {offsets = [40, 0], sizes = [32, 128], strides = [1, 1]} : vector<72x128xf32> to vector<32x128xf32>
    %cst_15 = arith.constant dense<0xFF800000> : vector<128xf32>
    %26 = vector.multi_reduction <maximumf>, %23, %cst_15 [0] : vector<8x128xf32> to vector<128xf32>
    %27 = vector.shape_cast %26 : vector<128xf32> to vector<1x128xf32>
    %28 = vector.broadcast %27 : vector<1x128xf32> to vector<8x128xf32>
    %29 = arith.cmpf oge, %23, %28 : vector<8x128xf32>
    %c8_i32 = arith.constant 8 : i32
    %30 = vector.broadcast %c8_i32 : i32 to vector<8x128xi32>
    %31 = arith.select %29, %15, %30 : vector<8x128xi1>, vector<8x128xi32>
    %cst_16 = arith.constant dense<2147483647> : vector<128xi32>
    %32 = vector.multi_reduction <minsi>, %31, %cst_16 [0] : vector<8x128xi32> to vector<128xi32>
    %33 = vector.shape_cast %32 : vector<128xi32> to vector<1x128xi32>
    %34 = vector.broadcast %33 : vector<1x128xi32> to vector<8x128xi32>
    %35 = arith.cmpi eq, %15, %34 : vector<8x128xi32>
    %36 = arith.extui %35 : vector<8x128xi1> to vector<8x128xi32>
    %37 = arith.sitofp %36 : vector<8x128xi32> to vector<8x128xf32>
    %cst_17 = arith.constant dense<0.000000e+00> : vector<6x128xf32>
    %38 = tpu.matmul %5, %37, %cst_17 {dimension_numbers = #tpu.dot_dimension_numbers<[1], [0], [0], [1], [0, 0, 1, 1], [], []>} : vector<6x8xf32>, vector<8x128xf32>, vector<6x128xf32> -> vector<6x128xf32>
    %39 = vector.extract_strided_slice %38 {offsets = [0, 0], sizes = [2, 128], strides = [1, 1]} : vector<6x128xf32> to vector<2x128xf32>
    %40 = vector.extract_strided_slice %38 {offsets = [2, 0], sizes = [4, 128], strides = [1, 1]} : vector<6x128xf32> to vector<4x128xf32>
    %41 = vector.extract_strided_slice %24 {offsets = [0, 0], sizes = [16, 128], strides = [1, 1]} : vector<32x128xf32> to vector<16x128xf32>
    %42 = vector.extract_strided_slice %39 {offsets = [0, 0], sizes = [1, 128], strides = [1, 1]} : vector<2x128xf32> to vector<1x128xf32>
    %43 = vector.broadcast %42 : vector<1x128xf32> to vector<16x128xf32>
    %44 = arith.mulf %41, %43 : vector<16x128xf32>
    %45 = vector.extract_strided_slice %24 {offsets = [16, 0], sizes = [16, 128], strides = [1, 1]} : vector<32x128xf32> to vector<16x128xf32>
    %46 = vector.extract_strided_slice %39 {offsets = [1, 0], sizes = [1, 128], strides = [1, 1]} : vector<2x128xf32> to vector<1x128xf32>
    %47 = vector.broadcast %46 : vector<1x128xf32> to vector<16x128xf32>
    %48 = arith.mulf %45, %47 : vector<16x128xf32>
    %49 = arith.addf %44, %48 : vector<16x128xf32>
    %50 = tpu.concatenate %49, %49 in 0 : vector<16x128xf32>, vector<16x128xf32> -> vector<32x128xf32>
    %51 = arith.mulf %50, %25 : vector<32x128xf32>
    %cst_18 = arith.constant dense<0.000000e+00> : vector<2x128xf32>
    %52 = tpu.matmul %6, %51, %cst_18 {dimension_numbers = #tpu.dot_dimension_numbers<[1], [0], [0], [1], [0, 0, 1, 1], [], []>} : vector<2x32xf32>, vector<32x128xf32>, vector<2x128xf32> -> vector<2x128xf32>
    %cst_19 = arith.constant dense<0xFF800000> : vector<128xf32>
    %53 = vector.multi_reduction <maximumf>, %52, %cst_19 [0] : vector<2x128xf32> to vector<128xf32>
    %54 = vector.shape_cast %53 : vector<128xf32> to vector<1x128xf32>
    %55 = vector.broadcast %54 : vector<1x128xf32> to vector<2x128xf32>
    %56 = arith.cmpf oge, %52, %55 : vector<2x128xf32>
    %c2_i32 = arith.constant 2 : i32
    %57 = vector.broadcast %c2_i32 : i32 to vector<2x128xi32>
    %58 = arith.select %56, %16, %57 : vector<2x128xi1>, vector<2x128xi32>
    %cst_20 = arith.constant dense<2147483647> : vector<128xi32>
    %59 = vector.multi_reduction <minsi>, %58, %cst_20 [0] : vector<2x128xi32> to vector<128xi32>
    %60 = vector.shape_cast %59 : vector<128xi32> to vector<1x128xi32>
    %61 = vector.broadcast %60 : vector<1x128xi32> to vector<2x128xi32>
    %62 = arith.cmpi eq, %16, %61 : vector<2x128xi32>
    %63 = arith.extui %62 : vector<2x128xi1> to vector<2x128xi32>
    %64 = arith.sitofp %63 : vector<2x128xi32> to vector<2x128xf32>
    %65 = vector.extract_strided_slice %17 {offsets = [0, 0], sizes = [2, 128], strides = [1, 1]} : vector<4x128xf32> to vector<2x128xf32>
    %66 = vector.extract_strided_slice %39 {offsets = [0, 0], sizes = [1, 128], strides = [1, 1]} : vector<2x128xf32> to vector<1x128xf32>
    %67 = vector.broadcast %66 : vector<1x128xf32> to vector<2x128xf32>
    %68 = arith.mulf %65, %67 : vector<2x128xf32>
    %69 = vector.extract_strided_slice %17 {offsets = [0, 0], sizes = [2, 128], strides = [1, 1]} : vector<4x128xf32> to vector<2x128xf32>
    %70 = vector.extract_strided_slice %64 {offsets = [0, 0], sizes = [1, 128], strides = [1, 1]} : vector<2x128xf32> to vector<1x128xf32>
    %71 = vector.broadcast %70 : vector<1x128xf32> to vector<2x128xf32>
    %72 = arith.mulf %69, %71 : vector<2x128xf32>
    %73 = vector.extract_strided_slice %17 {offsets = [2, 0], sizes = [2, 128], strides = [1, 1]} : vector<4x128xf32> to vector<2x128xf32>
    %74 = vector.extract_strided_slice %39 {offsets = [1, 0], sizes = [1, 128], strides = [1, 1]} : vector<2x128xf32> to vector<1x128xf32>
    %75 = vector.broadcast %74 : vector<1x128xf32> to vector<2x128xf32>
    %76 = arith.mulf %73, %75 : vector<2x128xf32>
    %77 = arith.addf %68, %76 : vector<2x128xf32>
    %78 = vector.extract_strided_slice %17 {offsets = [2, 0], sizes = [2, 128], strides = [1, 1]} : vector<4x128xf32> to vector<2x128xf32>
    %79 = vector.extract_strided_slice %64 {offsets = [1, 0], sizes = [1, 128], strides = [1, 1]} : vector<2x128xf32> to vector<1x128xf32>
    %80 = vector.broadcast %79 : vector<1x128xf32> to vector<2x128xf32>
    %81 = arith.mulf %78, %80 : vector<2x128xf32>
    %82 = arith.addf %72, %81 : vector<2x128xf32>
    %83 = tpu.concatenate %77, %82 in 0 : vector<2x128xf32>, vector<2x128xf32> -> vector<4x128xf32>
    %cst_21 = arith.constant dense<0.000000e+00> : vector<128x128xf32>
    %84 = tpu.matmul %7, %83, %cst_21 {dimension_numbers = #tpu.dot_dimension_numbers<[1], [0], [0], [1], [0, 0, 1, 1], [], []>} : vector<128x4xf32>, vector<4x128xf32>, vector<128x128xf32> -> vector<128x128xf32>
    %85 = arith.addf %84, %10 : vector<128x128xf32>
    %cst_22 = arith.constant 0.000000e+00 : f32
    %86 = vector.broadcast %cst_22 : f32 to vector<128x128xf32>
    %87 = arith.maximumf %85, %86 : vector<128x128xf32>
    %cst_23 = arith.constant dense<0.000000e+00> : vector<8x128xf32>
    %88 = tpu.matmul %11, %87, %cst_23 {dimension_numbers = #tpu.dot_dimension_numbers<[1], [0], [0], [1], [0, 0, 1, 1], [], []>} : vector<8x128xf32>, vector<128x128xf32>, vector<8x128xf32> -> vector<8x128xf32>
    %89 = arith.addf %88, %14 : vector<8x128xf32>
    %90 = vector.extract_strided_slice %89 {offsets = [0, 0], sizes = [2, 128], strides = [1, 1]} : vector<8x128xf32> to vector<2x128xf32>
    %91 = vector.extract_strided_slice %40 {offsets = [0, 0], sizes = [1, 128], strides = [1, 1]} : vector<4x128xf32> to vector<1x128xf32>
    %92 = vector.broadcast %91 : vector<1x128xf32> to vector<2x128xf32>
    %93 = arith.mulf %90, %92 : vector<2x128xf32>
    %94 = vector.extract_strided_slice %89 {offsets = [2, 0], sizes = [2, 128], strides = [1, 1]} : vector<8x128xf32> to vector<2x128xf32>
    %95 = vector.extract_strided_slice %40 {offsets = [1, 0], sizes = [1, 128], strides = [1, 1]} : vector<4x128xf32> to vector<1x128xf32>
    %96 = vector.broadcast %95 : vector<1x128xf32> to vector<2x128xf32>
    %97 = arith.mulf %94, %96 : vector<2x128xf32>
    %98 = arith.addf %93, %97 : vector<2x128xf32>
    %99 = vector.extract_strided_slice %89 {offsets = [4, 0], sizes = [2, 128], strides = [1, 1]} : vector<8x128xf32> to vector<2x128xf32>
    %100 = vector.extract_strided_slice %40 {offsets = [2, 0], sizes = [1, 128], strides = [1, 1]} : vector<4x128xf32> to vector<1x128xf32>
    %101 = vector.broadcast %100 : vector<1x128xf32> to vector<2x128xf32>
    %102 = arith.mulf %99, %101 : vector<2x128xf32>
    %103 = arith.addf %98, %102 : vector<2x128xf32>
    %104 = vector.extract_strided_slice %89 {offsets = [6, 0], sizes = [2, 128], strides = [1, 1]} : vector<8x128xf32> to vector<2x128xf32>
    %105 = vector.extract_strided_slice %40 {offsets = [3, 0], sizes = [1, 128], strides = [1, 1]} : vector<4x128xf32> to vector<1x128xf32>
    %106 = vector.broadcast %105 : vector<1x128xf32> to vector<2x128xf32>
    %107 = arith.mulf %104, %106 : vector<2x128xf32>
    %108 = arith.addf %103, %107 : vector<2x128xf32>
    %109 = vector.extract_strided_slice %39 {offsets = [0, 0], sizes = [1, 128], strides = [1, 1]} : vector<2x128xf32> to vector<1x128xf32>
    %110 = vector.broadcast %109 : vector<1x128xf32> to vector<2x128xf32>
    %111 = arith.mulf %110, %108 : vector<2x128xf32>
    %cst_24 = arith.constant 1.000000e+00 : f32
    %112 = vector.broadcast %cst_24 : f32 to vector<1x128xf32>
    %113 = arith.subf %112, %109 : vector<1x128xf32>
    %114 = vector.extract_strided_slice %17 {offsets = [0, 0], sizes = [2, 128], strides = [1, 1]} : vector<4x128xf32> to vector<2x128xf32>
    %115 = vector.broadcast %113 : vector<1x128xf32> to vector<2x128xf32>
    %116 = arith.mulf %115, %114 : vector<2x128xf32>
    %117 = arith.addf %111, %116 : vector<2x128xf32>
    %118 = vector.extract_strided_slice %39 {offsets = [1, 0], sizes = [1, 128], strides = [1, 1]} : vector<2x128xf32> to vector<1x128xf32>
    %119 = vector.broadcast %118 : vector<1x128xf32> to vector<2x128xf32>
    %120 = arith.mulf %119, %108 : vector<2x128xf32>
    %cst_25 = arith.constant 1.000000e+00 : f32
    %121 = vector.broadcast %cst_25 : f32 to vector<1x128xf32>
    %122 = arith.subf %121, %118 : vector<1x128xf32>
    %123 = vector.extract_strided_slice %17 {offsets = [2, 0], sizes = [2, 128], strides = [1, 1]} : vector<4x128xf32> to vector<2x128xf32>
    %124 = vector.broadcast %122 : vector<1x128xf32> to vector<2x128xf32>
    %125 = arith.mulf %124, %123 : vector<2x128xf32>
    %126 = arith.addf %120, %125 : vector<2x128xf32>
    %127 = tpu.concatenate %117, %126 in 0 : vector<2x128xf32>, vector<2x128xf32> -> vector<4x128xf32>
    %c0_26 = arith.constant 0 : index
    %c0_27 = arith.constant 0 : index
    %128 = vector.load %arg3[%c0_26, %c0_27] : memref<20x128xf32, #tpu.memory_space<vmem>>, vector<4x128xf32>
    tpu.vector_store %arg3[%c0_26, %c0_27], %127 {strides = array<i32>} : memref<20x128xf32, #tpu.memory_space<vmem>>, vector<4x128xf32>,
    %c8 = arith.constant 8 : index
    %c0_28 = arith.constant 0 : index
    %129 = vector.load %arg1[%c8, %c0_28] : memref<24x128xf32, #tpu.memory_space<vmem>>, vector<4x128xf32>
    %cst_29 = arith.constant dense<0.000000e+00> : vector<72x128xf32>
    %130 = tpu.matmul %0, %127, %cst_29 {dimension_numbers = #tpu.dot_dimension_numbers<[1], [0], [0], [1], [0, 0, 1, 1], [], []>} : vector<72x4xf32>, vector<4x128xf32>, vector<72x128xf32> -> vector<72x128xf32>
    %cst_30 = arith.constant dense<0.000000e+00> : vector<72x128xf32>
    %131 = tpu.matmul %1, %129, %cst_30 {dimension_numbers = #tpu.dot_dimension_numbers<[1], [0], [0], [1], [0, 0, 1, 1], [], []>} : vector<72x4xf32>, vector<4x128xf32>, vector<72x128xf32> -> vector<72x128xf32>
    %132 = arith.addf %130, %131 : vector<72x128xf32>
    %133 = arith.addf %132, %4 : vector<72x128xf32>
    %134 = vector.extract_strided_slice %133 {offsets = [0, 0], sizes = [8, 128], strides = [1, 1]} : vector<72x128xf32> to vector<8x128xf32>
    %135 = vector.extract_strided_slice %133 {offsets = [8, 0], sizes = [32, 128], strides = [1, 1]} : vector<72x128xf32> to vector<32x128xf32>
    %136 = vector.extract_strided_slice %133 {offsets = [40, 0], sizes = [32, 128], strides = [1, 1]} : vector<72x128xf32> to vector<32x128xf32>
    %cst_31 = arith.constant dense<0xFF800000> : vector<128xf32>
    %137 = vector.multi_reduction <maximumf>, %134, %cst_31 [0] : vector<8x128xf32> to vector<128xf32>
    %138 = vector.shape_cast %137 : vector<128xf32> to vector<1x128xf32>
    %139 = vector.broadcast %138 : vector<1x128xf32> to vector<8x128xf32>
    %140 = arith.cmpf oge, %134, %139 : vector<8x128xf32>
    %c8_i32_32 = arith.constant 8 : i32
    %141 = vector.broadcast %c8_i32_32 : i32 to vector<8x128xi32>
    %142 = arith.select %140, %15, %141 : vector<8x128xi1>, vector<8x128xi32>
    %cst_33 = arith.constant dense<2147483647> : vector<128xi32>
    %143 = vector.multi_reduction <minsi>, %142, %cst_33 [0] : vector<8x128xi32> to vector<128xi32>
    %144 = vector.shape_cast %143 : vector<128xi32> to vector<1x128xi32>
    %145 = vector.broadcast %144 : vector<1x128xi32> to vector<8x128xi32>
    %146 = arith.cmpi eq, %15, %145 : vector<8x128xi32>
    %147 = arith.extui %146 : vector<8x128xi1> to vector<8x128xi32>
    %148 = arith.sitofp %147 : vector<8x128xi32> to vector<8x128xf32>
    %cst_34 = arith.constant dense<0.000000e+00> : vector<6x128xf32>
    %149 = tpu.matmul %5, %148, %cst_34 {dimension_numbers = #tpu.dot_dimension_numbers<[1], [0], [0], [1], [0, 0, 1, 1], [], []>} : vector<6x8xf32>, vector<8x128xf32>, vector<6x128xf32> -> vector<6x128xf32>
    %150 = vector.extract_strided_slice %149 {offsets = [0, 0], sizes = [2, 128], strides = [1, 1]} : vector<6x128xf32> to vector<2x128xf32>
    %151 = vector.extract_strided_slice %149 {offsets = [2, 0], sizes = [4, 128], strides = [1, 1]} : vector<6x128xf32> to vector<4x128xf32>
    %152 = vector.extract_strided_slice %135 {offsets = [0, 0], sizes = [16, 128], strides = [1, 1]} : vector<32x128xf32> to vector<16x128xf32>
    %153 = vector.extract_strided_slice %150 {offsets = [0, 0], sizes = [1, 128], strides = [1, 1]} : vector<2x128xf32> to vector<1x128xf32>
    %154 = vector.broadcast %153 : vector<1x128xf32> to vector<16x128xf32>
    %155 = arith.mulf %152, %154 : vector<16x128xf32>
    %156 = vector.extract_strided_slice %135 {offsets = [16, 0], sizes = [16, 128], strides = [1, 1]} : vector<32x128xf32> to vector<16x128xf32>
    %157 = vector.extract_strided_slice %150 {offsets = [1, 0], sizes = [1, 128], strides = [1, 1]} : vector<2x128xf32> to vector<1x128xf32>
    %158 = vector.broadcast %157 : vector<1x128xf32> to vector<16x128xf32>
    %159 = arith.mulf %156, %158 : vector<16x128xf32>
    %160 = arith.addf %155, %159 : vector<16x128xf32>
    %161 = tpu.concatenate %160, %160 in 0 : vector<16x128xf32>, vector<16x128xf32> -> vector<32x128xf32>
    %162 = arith.mulf %161, %136 : vector<32x128xf32>
    %cst_35 = arith.constant dense<0.000000e+00> : vector<2x128xf32>
    %163 = tpu.matmul %6, %162, %cst_35 {dimension_numbers = #tpu.dot_dimension_numbers<[1], [0], [0], [1], [0, 0, 1, 1], [], []>} : vector<2x32xf32>, vector<32x128xf32>, vector<2x128xf32> -> vector<2x128xf32>
    %cst_36 = arith.constant dense<0xFF800000> : vector<128xf32>
    %164 = vector.multi_reduction <maximumf>, %163, %cst_36 [0] : vector<2x128xf32> to vector<128xf32>
    %165 = vector.shape_cast %164 : vector<128xf32> to vector<1x128xf32>
    %166 = vector.broadcast %165 : vector<1x128xf32> to vector<2x128xf32>
    %167 = arith.cmpf oge, %163, %166 : vector<2x128xf32>
    %c2_i32_37 = arith.constant 2 : i32
    %168 = vector.broadcast %c2_i32_37 : i32 to vector<2x128xi32>
    %169 = arith.select %167, %16, %168 : vector<2x128xi1>, vector<2x128xi32>
    %cst_38 = arith.constant dense<2147483647> : vector<128xi32>
    %170 = vector.multi_reduction <minsi>, %169, %cst_38 [0] : vector<2x128xi32> to vector<128xi32>
    %171 = vector.shape_cast %170 : vector<128xi32> to vector<1x128xi32>
    %172 = vector.broadcast %171 : vector<1x128xi32> to vector<2x128xi32>
    %173 = arith.cmpi eq, %16, %172 : vector<2x128xi32>
    %174 = arith.extui %173 : vector<2x128xi1> to vector<2x128xi32>
    %175 = arith.sitofp %174 : vector<2x128xi32> to vector<2x128xf32>
    %176 = vector.extract_strided_slice %127 {offsets = [0, 0], sizes = [2, 128], strides = [1, 1]} : vector<4x128xf32> to vector<2x128xf32>
    %177 = vector.extract_strided_slice %150 {offsets = [0, 0], sizes = [1, 128], strides = [1, 1]} : vector<2x128xf32> to vector<1x128xf32>
    %178 = vector.broadcast %177 : vector<1x128xf32> to vector<2x128xf32>
    %179 = arith.mulf %176, %178 : vector<2x128xf32>
    %180 = vector.extract_strided_slice %127 {offsets = [0, 0], sizes = [2, 128], strides = [1, 1]} : vector<4x128xf32> to vector<2x128xf32>
    %181 = vector.extract_strided_slice %175 {offsets = [0, 0], sizes = [1, 128], strides = [1, 1]} : vector<2x128xf32> to vector<1x128xf32>
    %182 = vector.broadcast %181 : vector<1x128xf32> to vector<2x128xf32>
    %183 = arith.mulf %180, %182 : vector<2x128xf32>
    %184 = vector.extract_strided_slice %127 {offsets = [2, 0], sizes = [2, 128], strides = [1, 1]} : vector<4x128xf32> to vector<2x128xf32>
    %185 = vector.extract_strided_slice %150 {offsets = [1, 0], sizes = [1, 128], strides = [1, 1]} : vector<2x128xf32> to vector<1x128xf32>
    %186 = vector.broadcast %185 : vector<1x128xf32> to vector<2x128xf32>
    %187 = arith.mulf %184, %186 : vector<2x128xf32>
    %188 = arith.addf %179, %187 : vector<2x128xf32>
    %189 = vector.extract_strided_slice %127 {offsets = [2, 0], sizes = [2, 128], strides = [1, 1]} : vector<4x128xf32> to vector<2x128xf32>
    %190 = vector.extract_strided_slice %175 {offsets = [1, 0], sizes = [1, 128], strides = [1, 1]} : vector<2x128xf32> to vector<1x128xf32>
    %191 = vector.broadcast %190 : vector<1x128xf32> to vector<2x128xf32>
    %192 = arith.mulf %189, %191 : vector<2x128xf32>
    %193 = arith.addf %183, %192 : vector<2x128xf32>
    %194 = tpu.concatenate %188, %193 in 0 : vector<2x128xf32>, vector<2x128xf32> -> vector<4x128xf32>
    %cst_39 = arith.constant dense<0.000000e+00> : vector<128x128xf32>
    %195 = tpu.matmul %7, %194, %cst_39 {dimension_numbers = #tpu.dot_dimension_numbers<[1], [0], [0], [1], [0, 0, 1, 1], [], []>} : vector<128x4xf32>, vector<4x128xf32>, vector<128x128xf32> -> vector<128x128xf32>
    %196 = arith.addf %195, %10 : vector<128x128xf32>
    %cst_40 = arith.constant 0.000000e+00 : f32
    %197 = vector.broadcast %cst_40 : f32 to vector<128x128xf32>
    %198 = arith.maximumf %196, %197 : vector<128x128xf32>
    %cst_41 = arith.constant dense<0.000000e+00> : vector<8x128xf32>
    %199 = tpu.matmul %11, %198, %cst_41 {dimension_numbers = #tpu.dot_dimension_numbers<[1], [0], [0], [1], [0, 0, 1, 1], [], []>} : vector<8x128xf32>, vector<128x128xf32>, vector<8x128xf32> -> vector<8x128xf32>
    %200 = arith.addf %199, %14 : vector<8x128xf32>
    %201 = vector.extract_strided_slice %200 {offsets = [0, 0], sizes = [2, 128], strides = [1, 1]} : vector<8x128xf32> to vector<2x128xf32>
    %202 = vector.extract_strided_slice %151 {offsets = [0, 0], sizes = [1, 128], strides = [1, 1]} : vector<4x128xf32> to vector<1x128xf32>
    %203 = vector.broadcast %202 : vector<1x128xf32> to vector<2x128xf32>
    %204 = arith.mulf %201, %203 : vector<2x128xf32>
    %205 = vector.extract_strided_slice %200 {offsets = [2, 0], sizes = [2, 128], strides = [1, 1]} : vector<8x128xf32> to vector<2x128xf32>
    %206 = vector.extract_strided_slice %151 {offsets = [1, 0], sizes = [1, 128], strides = [1, 1]} : vector<4x128xf32> to vector<1x128xf32>
    %207 = vector.broadcast %206 : vector<1x128xf32> to vector<2x128xf32>
    %208 = arith.mulf %205, %207 : vector<2x128xf32>
    %209 = arith.addf %204, %208 : vector<2x128xf32>
    %210 = vector.extract_strided_slice %200 {offsets = [4, 0], sizes = [2, 128], strides = [1, 1]} : vector<8x128xf32> to vector<2x128xf32>
    %211 = vector.extract_strided_slice %151 {offsets = [2, 0], sizes = [1, 128], strides = [1, 1]} : vector<4x128xf32> to vector<1x128xf32>
    %212 = vector.broadcast %211 : vector<1x128xf32> to vector<2x128xf32>
    %213 = arith.mulf %210, %212 : vector<2x128xf32>
    %214 = arith.addf %209, %213 : vector<2x128xf32>
    %215 = vector.extract_strided_slice %200 {offsets = [6, 0], sizes = [2, 128], strides = [1, 1]} : vector<8x128xf32> to vector<2x128xf32>
    %216 = vector.extract_strided_slice %151 {offsets = [3, 0], sizes = [1, 128], strides = [1, 1]} : vector<4x128xf32> to vector<1x128xf32>
    %217 = vector.broadcast %216 : vector<1x128xf32> to vector<2x128xf32>
    %218 = arith.mulf %215, %217 : vector<2x128xf32>
    %219 = arith.addf %214, %218 : vector<2x128xf32>
    %220 = vector.extract_strided_slice %150 {offsets = [0, 0], sizes = [1, 128], strides = [1, 1]} : vector<2x128xf32> to vector<1x128xf32>
    %221 = vector.broadcast %220 : vector<1x128xf32> to vector<2x128xf32>
    %222 = arith.mulf %221, %219 : vector<2x128xf32>
    %cst_42 = arith.constant 1.000000e+00 : f32
    %223 = vector.broadcast %cst_42 : f32 to vector<1x128xf32>
    %224 = arith.subf %223, %220 : vector<1x128xf32>
    %225 = vector.extract_strided_slice %127 {offsets = [0, 0], sizes = [2, 128], strides = [1, 1]} : vector<4x128xf32> to vector<2x128xf32>
    %226 = vector.broadcast %224 : vector<1x128xf32> to vector<2x128xf32>
    %227 = arith.mulf %226, %225 : vector<2x128xf32>
    %228 = arith.addf %222, %227 : vector<2x128xf32>
    %229 = vector.extract_strided_slice %150 {offsets = [1, 0], sizes = [1, 128], strides = [1, 1]} : vector<2x128xf32> to vector<1x128xf32>
    %230 = vector.broadcast %229 : vector<1x128xf32> to vector<2x128xf32>
    %231 = arith.mulf %230, %219 : vector<2x128xf32>
    %cst_43 = arith.constant 1.000000e+00 : f32
    %232 = vector.broadcast %cst_43 : f32 to vector<1x128xf32>
    %233 = arith.subf %232, %229 : vector<1x128xf32>
    %234 = vector.extract_strided_slice %127 {offsets = [2, 0], sizes = [2, 128], strides = [1, 1]} : vector<4x128xf32> to vector<2x128xf32>
    %235 = vector.broadcast %233 : vector<1x128xf32> to vector<2x128xf32>
    %236 = arith.mulf %235, %234 : vector<2x128xf32>
    %237 = arith.addf %231, %236 : vector<2x128xf32>
    %238 = tpu.concatenate %228, %237 in 0 : vector<2x128xf32>, vector<2x128xf32> -> vector<4x128xf32>
    %c4_44 = arith.constant 4 : index
    %c0_45 = arith.constant 0 : index
    %239 = vector.load %arg3[%c4_44, %c0_45] : memref<20x128xf32, #tpu.memory_space<vmem>>, vector<4x128xf32>
    tpu.vector_store %arg3[%c4_44, %c0_45], %238 {strides = array<i32>} : memref<20x128xf32, #tpu.memory_space<vmem>>, vector<4x128xf32>,
    %c12 = arith.constant 12 : index
    %c0_46 = arith.constant 0 : index
    %240 = vector.load %arg1[%c12, %c0_46] : memref<24x128xf32, #tpu.memory_space<vmem>>, vector<4x128xf32>
    %cst_47 = arith.constant dense<0.000000e+00> : vector<72x128xf32>
    %241 = tpu.matmul %0, %238, %cst_47 {dimension_numbers = #tpu.dot_dimension_numbers<[1], [0], [0], [1], [0, 0, 1, 1], [], []>} : vector<72x4xf32>, vector<4x128xf32>, vector<72x128xf32> -> vector<72x128xf32>
    %cst_48 = arith.constant dense<0.000000e+00> : vector<72x128xf32>
    %242 = tpu.matmul %1, %240, %cst_48 {dimension_numbers = #tpu.dot_dimension_numbers<[1], [0], [0], [1], [0, 0, 1, 1], [], []>} : vector<72x4xf32>, vector<4x128xf32>, vector<72x128xf32> -> vector<72x128xf32>
    %243 = arith.addf %241, %242 : vector<72x128xf32>
    %244 = arith.addf %243, %4 : vector<72x128xf32>
    %245 = vector.extract_strided_slice %244 {offsets = [0, 0], sizes = [8, 128], strides = [1, 1]} : vector<72x128xf32> to vector<8x128xf32>
    %246 = vector.extract_strided_slice %244 {offsets = [8, 0], sizes = [32, 128], strides = [1, 1]} : vector<72x128xf32> to vector<32x128xf32>
    %247 = vector.extract_strided_slice %244 {offsets = [40, 0], sizes = [32, 128], strides = [1, 1]} : vector<72x128xf32> to vector<32x128xf32>
    %cst_49 = arith.constant dense<0xFF800000> : vector<128xf32>
    %248 = vector.multi_reduction <maximumf>, %245, %cst_49 [0] : vector<8x128xf32> to vector<128xf32>
    %249 = vector.shape_cast %248 : vector<128xf32> to vector<1x128xf32>
    %250 = vector.broadcast %249 : vector<1x128xf32> to vector<8x128xf32>
    %251 = arith.cmpf oge, %245, %250 : vector<8x128xf32>
    %c8_i32_50 = arith.constant 8 : i32
    %252 = vector.broadcast %c8_i32_50 : i32 to vector<8x128xi32>
    %253 = arith.select %251, %15, %252 : vector<8x128xi1>, vector<8x128xi32>
    %cst_51 = arith.constant dense<2147483647> : vector<128xi32>
    %254 = vector.multi_reduction <minsi>, %253, %cst_51 [0] : vector<8x128xi32> to vector<128xi32>
    %255 = vector.shape_cast %254 : vector<128xi32> to vector<1x128xi32>
    %256 = vector.broadcast %255 : vector<1x128xi32> to vector<8x128xi32>
    %257 = arith.cmpi eq, %15, %256 : vector<8x128xi32>
    %258 = arith.extui %257 : vector<8x128xi1> to vector<8x128xi32>
    %259 = arith.sitofp %258 : vector<8x128xi32> to vector<8x128xf32>
    %cst_52 = arith.constant dense<0.000000e+00> : vector<6x128xf32>
    %260 = tpu.matmul %5, %259, %cst_52 {dimension_numbers = #tpu.dot_dimension_numbers<[1], [0], [0], [1], [0, 0, 1, 1], [], []>} : vector<6x8xf32>, vector<8x128xf32>, vector<6x128xf32> -> vector<6x128xf32>
    %261 = vector.extract_strided_slice %260 {offsets = [0, 0], sizes = [2, 128], strides = [1, 1]} : vector<6x128xf32> to vector<2x128xf32>
    %262 = vector.extract_strided_slice %260 {offsets = [2, 0], sizes = [4, 128], strides = [1, 1]} : vector<6x128xf32> to vector<4x128xf32>
    %263 = vector.extract_strided_slice %246 {offsets = [0, 0], sizes = [16, 128], strides = [1, 1]} : vector<32x128xf32> to vector<16x128xf32>
    %264 = vector.extract_strided_slice %261 {offsets = [0, 0], sizes = [1, 128], strides = [1, 1]} : vector<2x128xf32> to vector<1x128xf32>
    %265 = vector.broadcast %264 : vector<1x128xf32> to vector<16x128xf32>
    %266 = arith.mulf %263, %265 : vector<16x128xf32>
    %267 = vector.extract_strided_slice %246 {offsets = [16, 0], sizes = [16, 128], strides = [1, 1]} : vector<32x128xf32> to vector<16x128xf32>
    %268 = vector.extract_strided_slice %261 {offsets = [1, 0], sizes = [1, 128], strides = [1, 1]} : vector<2x128xf32> to vector<1x128xf32>
    %269 = vector.broadcast %268 : vector<1x128xf32> to vector<16x128xf32>
    %270 = arith.mulf %267, %269 : vector<16x128xf32>
    %271 = arith.addf %266, %270 : vector<16x128xf32>
    %272 = tpu.concatenate %271, %271 in 0 : vector<16x128xf32>, vector<16x128xf32> -> vector<32x128xf32>
    %273 = arith.mulf %272, %247 : vector<32x128xf32>
    %cst_53 = arith.constant dense<0.000000e+00> : vector<2x128xf32>
    %274 = tpu.matmul %6, %273, %cst_53 {dimension_numbers = #tpu.dot_dimension_numbers<[1], [0], [0], [1], [0, 0, 1, 1], [], []>} : vector<2x32xf32>, vector<32x128xf32>, vector<2x128xf32> -> vector<2x128xf32>
    %cst_54 = arith.constant dense<0xFF800000> : vector<128xf32>
    %275 = vector.multi_reduction <maximumf>, %274, %cst_54 [0] : vector<2x128xf32> to vector<128xf32>
    %276 = vector.shape_cast %275 : vector<128xf32> to vector<1x128xf32>
    %277 = vector.broadcast %276 : vector<1x128xf32> to vector<2x128xf32>
    %278 = arith.cmpf oge, %274, %277 : vector<2x128xf32>
    %c2_i32_55 = arith.constant 2 : i32
    %279 = vector.broadcast %c2_i32_55 : i32 to vector<2x128xi32>
    %280 = arith.select %278, %16, %279 : vector<2x128xi1>, vector<2x128xi32>
    %cst_56 = arith.constant dense<2147483647> : vector<128xi32>
    %281 = vector.multi_reduction <minsi>, %280, %cst_56 [0] : vector<2x128xi32> to vector<128xi32>
    %282 = vector.shape_cast %281 : vector<128xi32> to vector<1x128xi32>
    %283 = vector.broadcast %282 : vector<1x128xi32> to vector<2x128xi32>
    %284 = arith.cmpi eq, %16, %283 : vector<2x128xi32>
    %285 = arith.extui %284 : vector<2x128xi1> to vector<2x128xi32>
    %286 = arith.sitofp %285 : vector<2x128xi32> to vector<2x128xf32>
    %287 = vector.extract_strided_slice %238 {offsets = [0, 0], sizes = [2, 128], strides = [1, 1]} : vector<4x128xf32> to vector<2x128xf32>
    %288 = vector.extract_strided_slice %261 {offsets = [0, 0], sizes = [1, 128], strides = [1, 1]} : vector<2x128xf32> to vector<1x128xf32>
    %289 = vector.broadcast %288 : vector<1x128xf32> to vector<2x128xf32>
    %290 = arith.mulf %287, %289 : vector<2x128xf32>
    %291 = vector.extract_strided_slice %238 {offsets = [0, 0], sizes = [2, 128], strides = [1, 1]} : vector<4x128xf32> to vector<2x128xf32>
    %292 = vector.extract_strided_slice %286 {offsets = [0, 0], sizes = [1, 128], strides = [1, 1]} : vector<2x128xf32> to vector<1x128xf32>
    %293 = vector.broadcast %292 : vector<1x128xf32> to vector<2x128xf32>
    %294 = arith.mulf %291, %293 : vector<2x128xf32>
    %295 = vector.extract_strided_slice %238 {offsets = [2, 0], sizes = [2, 128], strides = [1, 1]} : vector<4x128xf32> to vector<2x128xf32>
    %296 = vector.extract_strided_slice %261 {offsets = [1, 0], sizes = [1, 128], strides = [1, 1]} : vector<2x128xf32> to vector<1x128xf32>
    %297 = vector.broadcast %296 : vector<1x128xf32> to vector<2x128xf32>
    %298 = arith.mulf %295, %297 : vector<2x128xf32>
    %299 = arith.addf %290, %298 : vector<2x128xf32>
    %300 = vector.extract_strided_slice %238 {offsets = [2, 0], sizes = [2, 128], strides = [1, 1]} : vector<4x128xf32> to vector<2x128xf32>
    %301 = vector.extract_strided_slice %286 {offsets = [1, 0], sizes = [1, 128], strides = [1, 1]} : vector<2x128xf32> to vector<1x128xf32>
    %302 = vector.broadcast %301 : vector<1x128xf32> to vector<2x128xf32>
    %303 = arith.mulf %300, %302 : vector<2x128xf32>
    %304 = arith.addf %294, %303 : vector<2x128xf32>
    %305 = tpu.concatenate %299, %304 in 0 : vector<2x128xf32>, vector<2x128xf32> -> vector<4x128xf32>
    %cst_57 = arith.constant dense<0.000000e+00> : vector<128x128xf32>
    %306 = tpu.matmul %7, %305, %cst_57 {dimension_numbers = #tpu.dot_dimension_numbers<[1], [0], [0], [1], [0, 0, 1, 1], [], []>} : vector<128x4xf32>, vector<4x128xf32>, vector<128x128xf32> -> vector<128x128xf32>
    %307 = arith.addf %306, %10 : vector<128x128xf32>
    %cst_58 = arith.constant 0.000000e+00 : f32
    %308 = vector.broadcast %cst_58 : f32 to vector<128x128xf32>
    %309 = arith.maximumf %307, %308 : vector<128x128xf32>
    %cst_59 = arith.constant dense<0.000000e+00> : vector<8x128xf32>
    %310 = tpu.matmul %11, %309, %cst_59 {dimension_numbers = #tpu.dot_dimension_numbers<[1], [0], [0], [1], [0, 0, 1, 1], [], []>} : vector<8x128xf32>, vector<128x128xf32>, vector<8x128xf32> -> vector<8x128xf32>
    %311 = arith.addf %310, %14 : vector<8x128xf32>
    %312 = vector.extract_strided_slice %311 {offsets = [0, 0], sizes = [2, 128], strides = [1, 1]} : vector<8x128xf32> to vector<2x128xf32>
    %313 = vector.extract_strided_slice %262 {offsets = [0, 0], sizes = [1, 128], strides = [1, 1]} : vector<4x128xf32> to vector<1x128xf32>
    %314 = vector.broadcast %313 : vector<1x128xf32> to vector<2x128xf32>
    %315 = arith.mulf %312, %314 : vector<2x128xf32>
    %316 = vector.extract_strided_slice %311 {offsets = [2, 0], sizes = [2, 128], strides = [1, 1]} : vector<8x128xf32> to vector<2x128xf32>
    %317 = vector.extract_strided_slice %262 {offsets = [1, 0], sizes = [1, 128], strides = [1, 1]} : vector<4x128xf32> to vector<1x128xf32>
    %318 = vector.broadcast %317 : vector<1x128xf32> to vector<2x128xf32>
    %319 = arith.mulf %316, %318 : vector<2x128xf32>
    %320 = arith.addf %315, %319 : vector<2x128xf32>
    %321 = vector.extract_strided_slice %311 {offsets = [4, 0], sizes = [2, 128], strides = [1, 1]} : vector<8x128xf32> to vector<2x128xf32>
    %322 = vector.extract_strided_slice %262 {offsets = [2, 0], sizes = [1, 128], strides = [1, 1]} : vector<4x128xf32> to vector<1x128xf32>
    %323 = vector.broadcast %322 : vector<1x128xf32> to vector<2x128xf32>
    %324 = arith.mulf %321, %323 : vector<2x128xf32>
    %325 = arith.addf %320, %324 : vector<2x128xf32>
    %326 = vector.extract_strided_slice %311 {offsets = [6, 0], sizes = [2, 128], strides = [1, 1]} : vector<8x128xf32> to vector<2x128xf32>
    %327 = vector.extract_strided_slice %262 {offsets = [3, 0], sizes = [1, 128], strides = [1, 1]} : vector<4x128xf32> to vector<1x128xf32>
    %328 = vector.broadcast %327 : vector<1x128xf32> to vector<2x128xf32>
    %329 = arith.mulf %326, %328 : vector<2x128xf32>
    %330 = arith.addf %325, %329 : vector<2x128xf32>
    %331 = vector.extract_strided_slice %261 {offsets = [0, 0], sizes = [1, 128], strides = [1, 1]} : vector<2x128xf32> to vector<1x128xf32>
    %332 = vector.broadcast %331 : vector<1x128xf32> to vector<2x128xf32>
    %333 = arith.mulf %332, %330 : vector<2x128xf32>
    %cst_60 = arith.constant 1.000000e+00 : f32
    %334 = vector.broadcast %cst_60 : f32 to vector<1x128xf32>
    %335 = arith.subf %334, %331 : vector<1x128xf32>
    %336 = vector.extract_strided_slice %238 {offsets = [0, 0], sizes = [2, 128], strides = [1, 1]} : vector<4x128xf32> to vector<2x128xf32>
    %337 = vector.broadcast %335 : vector<1x128xf32> to vector<2x128xf32>
    %338 = arith.mulf %337, %336 : vector<2x128xf32>
    %339 = arith.addf %333, %338 : vector<2x128xf32>
    %340 = vector.extract_strided_slice %261 {offsets = [1, 0], sizes = [1, 128], strides = [1, 1]} : vector<2x128xf32> to vector<1x128xf32>
    %341 = vector.broadcast %340 : vector<1x128xf32> to vector<2x128xf32>
    %342 = arith.mulf %341, %330 : vector<2x128xf32>
    %cst_61 = arith.constant 1.000000e+00 : f32
    %343 = vector.broadcast %cst_61 : f32 to vector<1x128xf32>
    %344 = arith.subf %343, %340 : vector<1x128xf32>
    %345 = vector.extract_strided_slice %238 {offsets = [2, 0], sizes = [2, 128], strides = [1, 1]} : vector<4x128xf32> to vector<2x128xf32>
    %346 = vector.broadcast %344 : vector<1x128xf32> to vector<2x128xf32>
    %347 = arith.mulf %346, %345 : vector<2x128xf32>
    %348 = arith.addf %342, %347 : vector<2x128xf32>
    %349 = tpu.concatenate %339, %348 in 0 : vector<2x128xf32>, vector<2x128xf32> -> vector<4x128xf32>
    %c8_62 = arith.constant 8 : index
    %c0_63 = arith.constant 0 : index
    %350 = vector.load %arg3[%c8_62, %c0_63] : memref<20x128xf32, #tpu.memory_space<vmem>>, vector<4x128xf32>
    tpu.vector_store %arg3[%c8_62, %c0_63], %349 {strides = array<i32>} : memref<20x128xf32, #tpu.memory_space<vmem>>, vector<4x128xf32>,
    %c16 = arith.constant 16 : index
    %c0_64 = arith.constant 0 : index
    %351 = vector.load %arg1[%c16, %c0_64] : memref<24x128xf32, #tpu.memory_space<vmem>>, vector<4x128xf32>
    %cst_65 = arith.constant dense<0.000000e+00> : vector<72x128xf32>
    %352 = tpu.matmul %0, %349, %cst_65 {dimension_numbers = #tpu.dot_dimension_numbers<[1], [0], [0], [1], [0, 0, 1, 1], [], []>} : vector<72x4xf32>, vector<4x128xf32>, vector<72x128xf32> -> vector<72x128xf32>
    %cst_66 = arith.constant dense<0.000000e+00> : vector<72x128xf32>
    %353 = tpu.matmul %1, %351, %cst_66 {dimension_numbers = #tpu.dot_dimension_numbers<[1], [0], [0], [1], [0, 0, 1, 1], [], []>} : vector<72x4xf32>, vector<4x128xf32>, vector<72x128xf32> -> vector<72x128xf32>
    %354 = arith.addf %352, %353 : vector<72x128xf32>
    %355 = arith.addf %354, %4 : vector<72x128xf32>
    %356 = vector.extract_strided_slice %355 {offsets = [0, 0], sizes = [8, 128], strides = [1, 1]} : vector<72x128xf32> to vector<8x128xf32>
    %357 = vector.extract_strided_slice %355 {offsets = [8, 0], sizes = [32, 128], strides = [1, 1]} : vector<72x128xf32> to vector<32x128xf32>
    %358 = vector.extract_strided_slice %355 {offsets = [40, 0], sizes = [32, 128], strides = [1, 1]} : vector<72x128xf32> to vector<32x128xf32>
    %cst_67 = arith.constant dense<0xFF800000> : vector<128xf32>
    %359 = vector.multi_reduction <maximumf>, %356, %cst_67 [0] : vector<8x128xf32> to vector<128xf32>
    %360 = vector.shape_cast %359 : vector<128xf32> to vector<1x128xf32>
    %361 = vector.broadcast %360 : vector<1x128xf32> to vector<8x128xf32>
    %362 = arith.cmpf oge, %356, %361 : vector<8x128xf32>
    %c8_i32_68 = arith.constant 8 : i32
    %363 = vector.broadcast %c8_i32_68 : i32 to vector<8x128xi32>
    %364 = arith.select %362, %15, %363 : vector<8x128xi1>, vector<8x128xi32>
    %cst_69 = arith.constant dense<2147483647> : vector<128xi32>
    %365 = vector.multi_reduction <minsi>, %364, %cst_69 [0] : vector<8x128xi32> to vector<128xi32>
    %366 = vector.shape_cast %365 : vector<128xi32> to vector<1x128xi32>
    %367 = vector.broadcast %366 : vector<1x128xi32> to vector<8x128xi32>
    %368 = arith.cmpi eq, %15, %367 : vector<8x128xi32>
    %369 = arith.extui %368 : vector<8x128xi1> to vector<8x128xi32>
    %370 = arith.sitofp %369 : vector<8x128xi32> to vector<8x128xf32>
    %cst_70 = arith.constant dense<0.000000e+00> : vector<6x128xf32>
    %371 = tpu.matmul %5, %370, %cst_70 {dimension_numbers = #tpu.dot_dimension_numbers<[1], [0], [0], [1], [0, 0, 1, 1], [], []>} : vector<6x8xf32>, vector<8x128xf32>, vector<6x128xf32> -> vector<6x128xf32>
    %372 = vector.extract_strided_slice %371 {offsets = [0, 0], sizes = [2, 128], strides = [1, 1]} : vector<6x128xf32> to vector<2x128xf32>
    %373 = vector.extract_strided_slice %371 {offsets = [2, 0], sizes = [4, 128], strides = [1, 1]} : vector<6x128xf32> to vector<4x128xf32>
    %374 = vector.extract_strided_slice %357 {offsets = [0, 0], sizes = [16, 128], strides = [1, 1]} : vector<32x128xf32> to vector<16x128xf32>
    %375 = vector.extract_strided_slice %372 {offsets = [0, 0], sizes = [1, 128], strides = [1, 1]} : vector<2x128xf32> to vector<1x128xf32>
    %376 = vector.broadcast %375 : vector<1x128xf32> to vector<16x128xf32>
    %377 = arith.mulf %374, %376 : vector<16x128xf32>
    %378 = vector.extract_strided_slice %357 {offsets = [16, 0], sizes = [16, 128], strides = [1, 1]} : vector<32x128xf32> to vector<16x128xf32>
    %379 = vector.extract_strided_slice %372 {offsets = [1, 0], sizes = [1, 128], strides = [1, 1]} : vector<2x128xf32> to vector<1x128xf32>
    %380 = vector.broadcast %379 : vector<1x128xf32> to vector<16x128xf32>
    %381 = arith.mulf %378, %380 : vector<16x128xf32>
    %382 = arith.addf %377, %381 : vector<16x128xf32>
    %383 = tpu.concatenate %382, %382 in 0 : vector<16x128xf32>, vector<16x128xf32> -> vector<32x128xf32>
    %384 = arith.mulf %383, %358 : vector<32x128xf32>
    %cst_71 = arith.constant dense<0.000000e+00> : vector<2x128xf32>
    %385 = tpu.matmul %6, %384, %cst_71 {dimension_numbers = #tpu.dot_dimension_numbers<[1], [0], [0], [1], [0, 0, 1, 1], [], []>} : vector<2x32xf32>, vector<32x128xf32>, vector<2x128xf32> -> vector<2x128xf32>
    %cst_72 = arith.constant dense<0xFF800000> : vector<128xf32>
    %386 = vector.multi_reduction <maximumf>, %385, %cst_72 [0] : vector<2x128xf32> to vector<128xf32>
    %387 = vector.shape_cast %386 : vector<128xf32> to vector<1x128xf32>
    %388 = vector.broadcast %387 : vector<1x128xf32> to vector<2x128xf32>
    %389 = arith.cmpf oge, %385, %388 : vector<2x128xf32>
    %c2_i32_73 = arith.constant 2 : i32
    %390 = vector.broadcast %c2_i32_73 : i32 to vector<2x128xi32>
    %391 = arith.select %389, %16, %390 : vector<2x128xi1>, vector<2x128xi32>
    %cst_74 = arith.constant dense<2147483647> : vector<128xi32>
    %392 = vector.multi_reduction <minsi>, %391, %cst_74 [0] : vector<2x128xi32> to vector<128xi32>
    %393 = vector.shape_cast %392 : vector<128xi32> to vector<1x128xi32>
    %394 = vector.broadcast %393 : vector<1x128xi32> to vector<2x128xi32>
    %395 = arith.cmpi eq, %16, %394 : vector<2x128xi32>
    %396 = arith.extui %395 : vector<2x128xi1> to vector<2x128xi32>
    %397 = arith.sitofp %396 : vector<2x128xi32> to vector<2x128xf32>
    %398 = vector.extract_strided_slice %349 {offsets = [0, 0], sizes = [2, 128], strides = [1, 1]} : vector<4x128xf32> to vector<2x128xf32>
    %399 = vector.extract_strided_slice %372 {offsets = [0, 0], sizes = [1, 128], strides = [1, 1]} : vector<2x128xf32> to vector<1x128xf32>
    %400 = vector.broadcast %399 : vector<1x128xf32> to vector<2x128xf32>
    %401 = arith.mulf %398, %400 : vector<2x128xf32>
    %402 = vector.extract_strided_slice %349 {offsets = [0, 0], sizes = [2, 128], strides = [1, 1]} : vector<4x128xf32> to vector<2x128xf32>
    %403 = vector.extract_strided_slice %397 {offsets = [0, 0], sizes = [1, 128], strides = [1, 1]} : vector<2x128xf32> to vector<1x128xf32>
    %404 = vector.broadcast %403 : vector<1x128xf32> to vector<2x128xf32>
    %405 = arith.mulf %402, %404 : vector<2x128xf32>
    %406 = vector.extract_strided_slice %349 {offsets = [2, 0], sizes = [2, 128], strides = [1, 1]} : vector<4x128xf32> to vector<2x128xf32>
    %407 = vector.extract_strided_slice %372 {offsets = [1, 0], sizes = [1, 128], strides = [1, 1]} : vector<2x128xf32> to vector<1x128xf32>
    %408 = vector.broadcast %407 : vector<1x128xf32> to vector<2x128xf32>
    %409 = arith.mulf %406, %408 : vector<2x128xf32>
    %410 = arith.addf %401, %409 : vector<2x128xf32>
    %411 = vector.extract_strided_slice %349 {offsets = [2, 0], sizes = [2, 128], strides = [1, 1]} : vector<4x128xf32> to vector<2x128xf32>
    %412 = vector.extract_strided_slice %397 {offsets = [1, 0], sizes = [1, 128], strides = [1, 1]} : vector<2x128xf32> to vector<1x128xf32>
    %413 = vector.broadcast %412 : vector<1x128xf32> to vector<2x128xf32>
    %414 = arith.mulf %411, %413 : vector<2x128xf32>
    %415 = arith.addf %405, %414 : vector<2x128xf32>
    %416 = tpu.concatenate %410, %415 in 0 : vector<2x128xf32>, vector<2x128xf32> -> vector<4x128xf32>
    %cst_75 = arith.constant dense<0.000000e+00> : vector<128x128xf32>
    %417 = tpu.matmul %7, %416, %cst_75 {dimension_numbers = #tpu.dot_dimension_numbers<[1], [0], [0], [1], [0, 0, 1, 1], [], []>} : vector<128x4xf32>, vector<4x128xf32>, vector<128x128xf32> -> vector<128x128xf32>
    %418 = arith.addf %417, %10 : vector<128x128xf32>
    %cst_76 = arith.constant 0.000000e+00 : f32
    %419 = vector.broadcast %cst_76 : f32 to vector<128x128xf32>
    %420 = arith.maximumf %418, %419 : vector<128x128xf32>
    %cst_77 = arith.constant dense<0.000000e+00> : vector<8x128xf32>
    %421 = tpu.matmul %11, %420, %cst_77 {dimension_numbers = #tpu.dot_dimension_numbers<[1], [0], [0], [1], [0, 0, 1, 1], [], []>} : vector<8x128xf32>, vector<128x128xf32>, vector<8x128xf32> -> vector<8x128xf32>
    %422 = arith.addf %421, %14 : vector<8x128xf32>
    %423 = vector.extract_strided_slice %422 {offsets = [0, 0], sizes = [2, 128], strides = [1, 1]} : vector<8x128xf32> to vector<2x128xf32>
    %424 = vector.extract_strided_slice %373 {offsets = [0, 0], sizes = [1, 128], strides = [1, 1]} : vector<4x128xf32> to vector<1x128xf32>
    %425 = vector.broadcast %424 : vector<1x128xf32> to vector<2x128xf32>
    %426 = arith.mulf %423, %425 : vector<2x128xf32>
    %427 = vector.extract_strided_slice %422 {offsets = [2, 0], sizes = [2, 128], strides = [1, 1]} : vector<8x128xf32> to vector<2x128xf32>
    %428 = vector.extract_strided_slice %373 {offsets = [1, 0], sizes = [1, 128], strides = [1, 1]} : vector<4x128xf32> to vector<1x128xf32>
    %429 = vector.broadcast %428 : vector<1x128xf32> to vector<2x128xf32>
    %430 = arith.mulf %427, %429 : vector<2x128xf32>
    %431 = arith.addf %426, %430 : vector<2x128xf32>
    %432 = vector.extract_strided_slice %422 {offsets = [4, 0], sizes = [2, 128], strides = [1, 1]} : vector<8x128xf32> to vector<2x128xf32>
    %433 = vector.extract_strided_slice %373 {offsets = [2, 0], sizes = [1, 128], strides = [1, 1]} : vector<4x128xf32> to vector<1x128xf32>
    %434 = vector.broadcast %433 : vector<1x128xf32> to vector<2x128xf32>
    %435 = arith.mulf %432, %434 : vector<2x128xf32>
    %436 = arith.addf %431, %435 : vector<2x128xf32>
    %437 = vector.extract_strided_slice %422 {offsets = [6, 0], sizes = [2, 128], strides = [1, 1]} : vector<8x128xf32> to vector<2x128xf32>
    %438 = vector.extract_strided_slice %373 {offsets = [3, 0], sizes = [1, 128], strides = [1, 1]} : vector<4x128xf32> to vector<1x128xf32>
    %439 = vector.broadcast %438 : vector<1x128xf32> to vector<2x128xf32>
    %440 = arith.mulf %437, %439 : vector<2x128xf32>
    %441 = arith.addf %436, %440 : vector<2x128xf32>
    %442 = vector.extract_strided_slice %372 {offsets = [0, 0], sizes = [1, 128], strides = [1, 1]} : vector<2x128xf32> to vector<1x128xf32>
    %443 = vector.broadcast %442 : vector<1x128xf32> to vector<2x128xf32>
    %444 = arith.mulf %443, %441 : vector<2x128xf32>
    %cst_78 = arith.constant 1.000000e+00 : f32
    %445 = vector.broadcast %cst_78 : f32 to vector<1x128xf32>
    %446 = arith.subf %445, %442 : vector<1x128xf32>
    %447 = vector.extract_strided_slice %349 {offsets = [0, 0], sizes = [2, 128], strides = [1, 1]} : vector<4x128xf32> to vector<2x128xf32>
    %448 = vector.broadcast %446 : vector<1x128xf32> to vector<2x128xf32>
    %449 = arith.mulf %448, %447 : vector<2x128xf32>
    %450 = arith.addf %444, %449 : vector<2x128xf32>
    %451 = vector.extract_strided_slice %372 {offsets = [1, 0], sizes = [1, 128], strides = [1, 1]} : vector<2x128xf32> to vector<1x128xf32>
    %452 = vector.broadcast %451 : vector<1x128xf32> to vector<2x128xf32>
    %453 = arith.mulf %452, %441 : vector<2x128xf32>
    %cst_79 = arith.constant 1.000000e+00 : f32
    %454 = vector.broadcast %cst_79 : f32 to vector<1x128xf32>
    %455 = arith.subf %454, %451 : vector<1x128xf32>
    %456 = vector.extract_strided_slice %349 {offsets = [2, 0], sizes = [2, 128], strides = [1, 1]} : vector<4x128xf32> to vector<2x128xf32>
    %457 = vector.broadcast %455 : vector<1x128xf32> to vector<2x128xf32>
    %458 = arith.mulf %457, %456 : vector<2x128xf32>
    %459 = arith.addf %453, %458 : vector<2x128xf32>
    %460 = tpu.concatenate %450, %459 in 0 : vector<2x128xf32>, vector<2x128xf32> -> vector<4x128xf32>
    %c12_80 = arith.constant 12 : index
    %c0_81 = arith.constant 0 : index
    %461 = vector.load %arg3[%c12_80, %c0_81] : memref<20x128xf32, #tpu.memory_space<vmem>>, vector<4x128xf32>
    tpu.vector_store %arg3[%c12_80, %c0_81], %460 {strides = array<i32>} : memref<20x128xf32, #tpu.memory_space<vmem>>, vector<4x128xf32>,
    %c20 = arith.constant 20 : index
    %c0_82 = arith.constant 0 : index
    %462 = vector.load %arg1[%c20, %c0_82] : memref<24x128xf32, #tpu.memory_space<vmem>>, vector<4x128xf32>
    %cst_83 = arith.constant dense<0.000000e+00> : vector<72x128xf32>
    %463 = tpu.matmul %0, %460, %cst_83 {dimension_numbers = #tpu.dot_dimension_numbers<[1], [0], [0], [1], [0, 0, 1, 1], [], []>} : vector<72x4xf32>, vector<4x128xf32>, vector<72x128xf32> -> vector<72x128xf32>
    %cst_84 = arith.constant dense<0.000000e+00> : vector<72x128xf32>
    %464 = tpu.matmul %1, %462, %cst_84 {dimension_numbers = #tpu.dot_dimension_numbers<[1], [0], [0], [1], [0, 0, 1, 1], [], []>} : vector<72x4xf32>, vector<4x128xf32>, vector<72x128xf32> -> vector<72x128xf32>
    %465 = arith.addf %463, %464 : vector<72x128xf32>
    %466 = arith.addf %465, %4 : vector<72x128xf32>
    %467 = vector.extract_strided_slice %466 {offsets = [0, 0], sizes = [8, 128], strides = [1, 1]} : vector<72x128xf32> to vector<8x128xf32>
    %468 = vector.extract_strided_slice %466 {offsets = [8, 0], sizes = [32, 128], strides = [1, 1]} : vector<72x128xf32> to vector<32x128xf32>
    %469 = vector.extract_strided_slice %466 {offsets = [40, 0], sizes = [32, 128], strides = [1, 1]} : vector<72x128xf32> to vector<32x128xf32>
    %cst_85 = arith.constant dense<0xFF800000> : vector<128xf32>
    %470 = vector.multi_reduction <maximumf>, %467, %cst_85 [0] : vector<8x128xf32> to vector<128xf32>
    %471 = vector.shape_cast %470 : vector<128xf32> to vector<1x128xf32>
    %472 = vector.broadcast %471 : vector<1x128xf32> to vector<8x128xf32>
    %473 = arith.cmpf oge, %467, %472 : vector<8x128xf32>
    %c8_i32_86 = arith.constant 8 : i32
    %474 = vector.broadcast %c8_i32_86 : i32 to vector<8x128xi32>
    %475 = arith.select %473, %15, %474 : vector<8x128xi1>, vector<8x128xi32>
    %cst_87 = arith.constant dense<2147483647> : vector<128xi32>
    %476 = vector.multi_reduction <minsi>, %475, %cst_87 [0] : vector<8x128xi32> to vector<128xi32>
    %477 = vector.shape_cast %476 : vector<128xi32> to vector<1x128xi32>
    %478 = vector.broadcast %477 : vector<1x128xi32> to vector<8x128xi32>
    %479 = arith.cmpi eq, %15, %478 : vector<8x128xi32>
    %480 = arith.extui %479 : vector<8x128xi1> to vector<8x128xi32>
    %481 = arith.sitofp %480 : vector<8x128xi32> to vector<8x128xf32>
    %cst_88 = arith.constant dense<0.000000e+00> : vector<6x128xf32>
    %482 = tpu.matmul %5, %481, %cst_88 {dimension_numbers = #tpu.dot_dimension_numbers<[1], [0], [0], [1], [0, 0, 1, 1], [], []>} : vector<6x8xf32>, vector<8x128xf32>, vector<6x128xf32> -> vector<6x128xf32>
    %483 = vector.extract_strided_slice %482 {offsets = [0, 0], sizes = [2, 128], strides = [1, 1]} : vector<6x128xf32> to vector<2x128xf32>
    %484 = vector.extract_strided_slice %482 {offsets = [2, 0], sizes = [4, 128], strides = [1, 1]} : vector<6x128xf32> to vector<4x128xf32>
    %485 = vector.extract_strided_slice %468 {offsets = [0, 0], sizes = [16, 128], strides = [1, 1]} : vector<32x128xf32> to vector<16x128xf32>
    %486 = vector.extract_strided_slice %483 {offsets = [0, 0], sizes = [1, 128], strides = [1, 1]} : vector<2x128xf32> to vector<1x128xf32>
    %487 = vector.broadcast %486 : vector<1x128xf32> to vector<16x128xf32>
    %488 = arith.mulf %485, %487 : vector<16x128xf32>
    %489 = vector.extract_strided_slice %468 {offsets = [16, 0], sizes = [16, 128], strides = [1, 1]} : vector<32x128xf32> to vector<16x128xf32>
    %490 = vector.extract_strided_slice %483 {offsets = [1, 0], sizes = [1, 128], strides = [1, 1]} : vector<2x128xf32> to vector<1x128xf32>
    %491 = vector.broadcast %490 : vector<1x128xf32> to vector<16x128xf32>
    %492 = arith.mulf %489, %491 : vector<16x128xf32>
    %493 = arith.addf %488, %492 : vector<16x128xf32>
    %494 = tpu.concatenate %493, %493 in 0 : vector<16x128xf32>, vector<16x128xf32> -> vector<32x128xf32>
    %495 = arith.mulf %494, %469 : vector<32x128xf32>
    %cst_89 = arith.constant dense<0.000000e+00> : vector<2x128xf32>
    %496 = tpu.matmul %6, %495, %cst_89 {dimension_numbers = #tpu.dot_dimension_numbers<[1], [0], [0], [1], [0, 0, 1, 1], [], []>} : vector<2x32xf32>, vector<32x128xf32>, vector<2x128xf32> -> vector<2x128xf32>
    %cst_90 = arith.constant dense<0xFF800000> : vector<128xf32>
    %497 = vector.multi_reduction <maximumf>, %496, %cst_90 [0] : vector<2x128xf32> to vector<128xf32>
    %498 = vector.shape_cast %497 : vector<128xf32> to vector<1x128xf32>
    %499 = vector.broadcast %498 : vector<1x128xf32> to vector<2x128xf32>
    %500 = arith.cmpf oge, %496, %499 : vector<2x128xf32>
    %c2_i32_91 = arith.constant 2 : i32
    %501 = vector.broadcast %c2_i32_91 : i32 to vector<2x128xi32>
    %502 = arith.select %500, %16, %501 : vector<2x128xi1>, vector<2x128xi32>
    %cst_92 = arith.constant dense<2147483647> : vector<128xi32>
    %503 = vector.multi_reduction <minsi>, %502, %cst_92 [0] : vector<2x128xi32> to vector<128xi32>
    %504 = vector.shape_cast %503 : vector<128xi32> to vector<1x128xi32>
    %505 = vector.broadcast %504 : vector<1x128xi32> to vector<2x128xi32>
    %506 = arith.cmpi eq, %16, %505 : vector<2x128xi32>
    %507 = arith.extui %506 : vector<2x128xi1> to vector<2x128xi32>
    %508 = arith.sitofp %507 : vector<2x128xi32> to vector<2x128xf32>
    %509 = vector.extract_strided_slice %460 {offsets = [0, 0], sizes = [2, 128], strides = [1, 1]} : vector<4x128xf32> to vector<2x128xf32>
    %510 = vector.extract_strided_slice %483 {offsets = [0, 0], sizes = [1, 128], strides = [1, 1]} : vector<2x128xf32> to vector<1x128xf32>
    %511 = vector.broadcast %510 : vector<1x128xf32> to vector<2x128xf32>
    %512 = arith.mulf %509, %511 : vector<2x128xf32>
    %513 = vector.extract_strided_slice %460 {offsets = [0, 0], sizes = [2, 128], strides = [1, 1]} : vector<4x128xf32> to vector<2x128xf32>
    %514 = vector.extract_strided_slice %508 {offsets = [0, 0], sizes = [1, 128], strides = [1, 1]} : vector<2x128xf32> to vector<1x128xf32>
    %515 = vector.broadcast %514 : vector<1x128xf32> to vector<2x128xf32>
    %516 = arith.mulf %513, %515 : vector<2x128xf32>
    %517 = vector.extract_strided_slice %460 {offsets = [2, 0], sizes = [2, 128], strides = [1, 1]} : vector<4x128xf32> to vector<2x128xf32>
    %518 = vector.extract_strided_slice %483 {offsets = [1, 0], sizes = [1, 128], strides = [1, 1]} : vector<2x128xf32> to vector<1x128xf32>
    %519 = vector.broadcast %518 : vector<1x128xf32> to vector<2x128xf32>
    %520 = arith.mulf %517, %519 : vector<2x128xf32>
    %521 = arith.addf %512, %520 : vector<2x128xf32>
    %522 = vector.extract_strided_slice %460 {offsets = [2, 0], sizes = [2, 128], strides = [1, 1]} : vector<4x128xf32> to vector<2x128xf32>
    %523 = vector.extract_strided_slice %508 {offsets = [1, 0], sizes = [1, 128], strides = [1, 1]} : vector<2x128xf32> to vector<1x128xf32>
    %524 = vector.broadcast %523 : vector<1x128xf32> to vector<2x128xf32>
    %525 = arith.mulf %522, %524 : vector<2x128xf32>
    %526 = arith.addf %516, %525 : vector<2x128xf32>
    %527 = tpu.concatenate %521, %526 in 0 : vector<2x128xf32>, vector<2x128xf32> -> vector<4x128xf32>
    %cst_93 = arith.constant dense<0.000000e+00> : vector<128x128xf32>
    %528 = tpu.matmul %7, %527, %cst_93 {dimension_numbers = #tpu.dot_dimension_numbers<[1], [0], [0], [1], [0, 0, 1, 1], [], []>} : vector<128x4xf32>, vector<4x128xf32>, vector<128x128xf32> -> vector<128x128xf32>
    %529 = arith.addf %528, %10 : vector<128x128xf32>
    %cst_94 = arith.constant 0.000000e+00 : f32
    %530 = vector.broadcast %cst_94 : f32 to vector<128x128xf32>
    %531 = arith.maximumf %529, %530 : vector<128x128xf32>
    %cst_95 = arith.constant dense<0.000000e+00> : vector<8x128xf32>
    %532 = tpu.matmul %11, %531, %cst_95 {dimension_numbers = #tpu.dot_dimension_numbers<[1], [0], [0], [1], [0, 0, 1, 1], [], []>} : vector<8x128xf32>, vector<128x128xf32>, vector<8x128xf32> -> vector<8x128xf32>
    %533 = arith.addf %532, %14 : vector<8x128xf32>
    %534 = vector.extract_strided_slice %533 {offsets = [0, 0], sizes = [2, 128], strides = [1, 1]} : vector<8x128xf32> to vector<2x128xf32>
    %535 = vector.extract_strided_slice %484 {offsets = [0, 0], sizes = [1, 128], strides = [1, 1]} : vector<4x128xf32> to vector<1x128xf32>
    %536 = vector.broadcast %535 : vector<1x128xf32> to vector<2x128xf32>
    %537 = arith.mulf %534, %536 : vector<2x128xf32>
    %538 = vector.extract_strided_slice %533 {offsets = [2, 0], sizes = [2, 128], strides = [1, 1]} : vector<8x128xf32> to vector<2x128xf32>
    %539 = vector.extract_strided_slice %484 {offsets = [1, 0], sizes = [1, 128], strides = [1, 1]} : vector<4x128xf32> to vector<1x128xf32>
    %540 = vector.broadcast %539 : vector<1x128xf32> to vector<2x128xf32>
    %541 = arith.mulf %538, %540 : vector<2x128xf32>
    %542 = arith.addf %537, %541 : vector<2x128xf32>
    %543 = vector.extract_strided_slice %533 {offsets = [4, 0], sizes = [2, 128], strides = [1, 1]} : vector<8x128xf32> to vector<2x128xf32>
    %544 = vector.extract_strided_slice %484 {offsets = [2, 0], sizes = [1, 128], strides = [1, 1]} : vector<4x128xf32> to vector<1x128xf32>
    %545 = vector.broadcast %544 : vector<1x128xf32> to vector<2x128xf32>
    %546 = arith.mulf %543, %545 : vector<2x128xf32>
    %547 = arith.addf %542, %546 : vector<2x128xf32>
    %548 = vector.extract_strided_slice %533 {offsets = [6, 0], sizes = [2, 128], strides = [1, 1]} : vector<8x128xf32> to vector<2x128xf32>
    %549 = vector.extract_strided_slice %484 {offsets = [3, 0], sizes = [1, 128], strides = [1, 1]} : vector<4x128xf32> to vector<1x128xf32>
    %550 = vector.broadcast %549 : vector<1x128xf32> to vector<2x128xf32>
    %551 = arith.mulf %548, %550 : vector<2x128xf32>
    %552 = arith.addf %547, %551 : vector<2x128xf32>
    %553 = vector.extract_strided_slice %483 {offsets = [0, 0], sizes = [1, 128], strides = [1, 1]} : vector<2x128xf32> to vector<1x128xf32>
    %554 = vector.broadcast %553 : vector<1x128xf32> to vector<2x128xf32>
    %555 = arith.mulf %554, %552 : vector<2x128xf32>
    %cst_96 = arith.constant 1.000000e+00 : f32
    %556 = vector.broadcast %cst_96 : f32 to vector<1x128xf32>
    %557 = arith.subf %556, %553 : vector<1x128xf32>
    %558 = vector.extract_strided_slice %460 {offsets = [0, 0], sizes = [2, 128], strides = [1, 1]} : vector<4x128xf32> to vector<2x128xf32>
    %559 = vector.broadcast %557 : vector<1x128xf32> to vector<2x128xf32>
    %560 = arith.mulf %559, %558 : vector<2x128xf32>
    %561 = arith.addf %555, %560 : vector<2x128xf32>
    %562 = vector.extract_strided_slice %483 {offsets = [1, 0], sizes = [1, 128], strides = [1, 1]} : vector<2x128xf32> to vector<1x128xf32>
    %563 = vector.broadcast %562 : vector<1x128xf32> to vector<2x128xf32>
    %564 = arith.mulf %563, %552 : vector<2x128xf32>
    %cst_97 = arith.constant 1.000000e+00 : f32
    %565 = vector.broadcast %cst_97 : f32 to vector<1x128xf32>
    %566 = arith.subf %565, %562 : vector<1x128xf32>
    %567 = vector.extract_strided_slice %460 {offsets = [2, 0], sizes = [2, 128], strides = [1, 1]} : vector<4x128xf32> to vector<2x128xf32>
    %568 = vector.broadcast %566 : vector<1x128xf32> to vector<2x128xf32>
    %569 = arith.mulf %568, %567 : vector<2x128xf32>
    %570 = arith.addf %564, %569 : vector<2x128xf32>
    %571 = tpu.concatenate %561, %570 in 0 : vector<2x128xf32>, vector<2x128xf32> -> vector<4x128xf32>
    %c16_98 = arith.constant 16 : index
    %c0_99 = arith.constant 0 : index
    %572 = vector.load %arg3[%c16_98, %c0_99] : memref<20x128xf32, #tpu.memory_space<vmem>>, vector<4x128xf32>
    tpu.vector_store %arg3[%c16_98, %c0_99], %571 {strides = array<i32>} : memref<20x128xf32, #tpu.memory_space<vmem>>, vector<4x128xf32>,
    return
  }
  func.func @transform_0(%arg0: i32) -> (i32, i32) {
    %c0_i32 = arith.constant 0 : i32
    %c0_i32_0 = arith.constant 0 : i32
    return %c0_i32, %arg0 : i32, i32
  }
  func.func @transform_1(%arg0: i32) -> (i32, i32) {
    %c0_i32 = arith.constant 0 : i32
    %c0_i32_0 = arith.constant 0 : i32
    %c0_i32_1 = arith.constant 0 : i32
    return %c0_i32, %c0_i32_0 : i32, i32
  }
  func.func @transform_2(%arg0: i32) -> (i32, i32) {
    %c0_i32 = arith.constant 0 : i32
    %c0_i32_0 = arith.constant 0 : i32
    return %c0_i32, %arg0 : i32, i32
  }
}

</mosaic_0001>

<bundles_post_ra>
// kernel: tile.17
= control target key start
LH: loop header
LB: loop body
LE: loop exit
PB: predicated region body
PF: predicated region fallthrough
CT: control target
= control target key end

     0   :  { %vm7_vm0 = vcmask 15360   ;;  %s37_s8 = smov 2   ;;  %s38_s9 = smov 4   ;;  %vm13_vm1 = vcmask 64560   ;;  %vm19_vm2 = vcmask 48160   ;;  %vm25_vm3 = vcmask 31760   ;;  %s55_s0 = inlined_call_operand.vmem [shape: f32[4,2], index: 0, kind: input, shape index: {}]   ;;  %s56_s1 = inlined_call_operand.vmem [shape: f32[8], index: 1, kind: output, shape index: {}]  }
   0x1   :  { %v4_v0 = vld [vmem:[%s55_s0] sm:$0xf]  ;;  %s36_s0 = smov 6  }
   0x2   :  { %5 = vst [vmem:[#allocation1] sm:$0xf] %v4_v0 }
   0x9   :  { %v10_v1 = vld [vmem:[#allocation1 + $0x3] sm:$0x1]   ;;  %v22_v2 = vld [vmem:[#allocation1 + $0x1] sm:$0x1]   ;;  %v6_v3 = vld [vmem:[#allocation1] sm:$0x1]  }
   0xa   :  { %11 = vrot.lane.b32.xlu0 %v10_v1, %s36_s0  ;;  %23 = vrot.lane.b32.xlu1 %v22_v2, %s37_s8  ;;  %v16_v4 = vld [vmem:[#allocation1 + $0x2] sm:$0x1]   ;;  %8 = vst.msk [vmem:[#allocation0] sm:$0x1] %vm7_vm0, %v6_v3  }
   0xe   :  { %17 = vrot.lane.b32.xlu0 %v16_v4, %s38_s9 }
  0x7c   :  { %v12_v5 = vpop.permute.xlu0 %11   ;;  %v24_v6 = vpop.permute.xlu1 %23  }
  0x7d   :  { %14 = vst.msk [vmem:[#allocation0] sm:$0x1] %vm13_vm1, %v12_v5  }
  0x80   :  { %v18_v7 = vpop.permute.xlu0 %17  }
  0x81   :  { %20 = vst.msk [vmem:[#allocation0] sm:$0x1] %vm19_vm2, %v18_v7  }
  0x82   :  { %26 = vst.msk [vmem:[#allocation0] sm:$0x1] %vm25_vm3, %v24_v6  }
  0x89   :  { %v30_v8 = vld [vmem:[#allocation0] sm:$0x1] }
  0x8a   :  { %32 = vst [vmem:[%s56_s1] sm:$0x1] %v30_v8 }

// kernel: tile.21
= control target key start
LH: loop header
LB: loop body
LE: loop exit
PB: predicated region body
PF: predicated region fallthrough
CT: control target
= control target key end

     0   :  { %s22_s0 = inlined_call_operand.vmem [shape: f32[16], index: 0, kind: input, shape index: {}]   ;;  %s23_s1 = inlined_call_operand.vmem [shape: f32[2,16], index: 1, kind: output, shape index: {}]  }
   0x1   :  { %v4_v0 = vld [vmem:[%s22_s0] ss:$0 sm:$0xff] }
   0x2   :  { %5 = vst [vmem:[%s23_s1] sm:$0x3] %v4_v0 }

// kernel: tile.22
= control target key start
LH: loop header
LB: loop body
LE: loop exit
PB: predicated region body
PF: predicated region fallthrough
CT: control target
= control target key end

     0   :  { %vm7_vm0 = vcmask 130048   ;;  %vm13_vm1 = vcmask 261248   ;;  %s39_s0 = inlined_call_operand.vmem [shape: f32[2,16], index: 0, kind: input, shape index: {}]   ;;  %s40_s1 = inlined_call_operand.vmem [shape: f32[32], index: 1, kind: output, shape index: {}]  }
   0x1   :  { %v4_v0 = vld [vmem:[%s39_s0] sm:$0x3]  ;;  %s22_s0 = smov 16  }
   0x2   :  { %5 = vst [vmem:[#allocation1] sm:$0x3] %v4_v0 }
   0x9   :  { %v10_v1 = vld [vmem:[#allocation1 + $0x1] sm:$0x1]   ;;  %v6_v2 = vld [vmem:[#allocation1] sm:$0x1]  }
   0xa   :  { %11 = vrot.lane.b32.xlu0 %v10_v1, %s22_s0  ;;  %8 = vst.msk [vmem:[#allocation0] sm:$0x1] %vm7_vm0, %v6_v2  }
  0x7c   :  { %v12_v3 = vpop.permute.xlu0 %11  }
  0x7d   :  { %14 = vst.msk [vmem:[#allocation0] sm:$0x1] %vm13_vm1, %v12_v3  }
  0x84   :  { %v18_v4 = vld [vmem:[#allocation0] sm:$0x1] }
  0x85   :  { %20 = vst [vmem:[%s40_s1] sm:$0x1] %v18_v4 }

// kernel: tile.27
= control target key start
LH: loop header
LB: loop body
LE: loop exit
PB: predicated region body
PF: predicated region fallthrough
CT: control target
= control target key end

     0   :  { %s29_s10 = smov 3  ;;  %s10_s11 = smov 3  ;;  %vm12_vm0 = vcmask 15360   ;;  %vm19_vm1 = vcmask 64560   ;;  %vm26_vm2 = vcmask 48160   ;;  %vm33_vm3 = vcmask 31760   ;;  %s67_s0 = inlined_call_operand.vmem [shape: f32[2,4,2], index: 0, kind: input, shape index: {}]   ;;  %s68_s1 = inlined_call_operand.vmem [shape: f32[2,8], index: 1, kind: output, shape index: {}]  }
   0x1   :  { %v41_v0 = vld [vmem:[%s67_s0 + $0x4] sm:$0xf]  ;;  %v8_v1 = vld [vmem:[%s67_s0] sm:$0xf]  ;;  %s15_s0 = smov 3  ;;  %s22_s12 = smov 3 }
   0x2   :  { %7 = vst [vmem:[#allocation1 + $0x8] sm:$0xf] %v41_v0  ;;  %9 = vst [vmem:[#allocation1] sm:$0xf] %v8_v1  ;;  %s45_s13 = smov 6   ;;  %s46_s14 = smov 2  }
   0x3   :  { %s47_s15 = smov 4  }
   0x9   :  { %v16_v2 = vld [vmem:[#allocation1 + $0x3] ss:$8 sm:%s15_s0]   ;;  %v30_v3 = vld [vmem:[#allocation1 + $0x1] ss:$8 sm:%s29_s10]   ;;  %v11_v4 = vld [vmem:[#allocation1] ss:$8 sm:%s10_s11]  }
   0xa   :  { %17 = vrot.lane.b32.xlu0 %v16_v2, %s45_s13  ;;  %31 = vrot.lane.b32.xlu1 %v30_v3, %s46_s14  ;;  %v23_v5 = vld [vmem:[#allocation1 + $0x2] ss:$8 sm:%s22_s12]   ;;  %13 = vst.msk [vmem:[#allocation0] sm:$0x3] %vm12_vm0, %v11_v4  }
   0xe   :  { %24 = vrot.lane.b32.xlu0 %v23_v5, %s47_s15 }
  0x7c   :  { %v18_v6 = vpop.permute.xlu0 %17   ;;  %v32_v7 = vpop.permute.xlu1 %31  }
  0x7d   :  { %20 = vst.msk [vmem:[#allocation0] sm:$0x3] %vm19_vm1, %v18_v6  }
  0x80   :  { %v25_v8 = vpop.permute.xlu0 %24  }
  0x81   :  { %27 = vst.msk [vmem:[#allocation0] sm:$0x3] %vm26_vm2, %v25_v8  }
  0x82   :  { %34 = vst.msk [vmem:[#allocation0] sm:$0x3] %vm33_vm3, %v32_v7  }
  0x89   :  { %v38_v9 = vld [vmem:[#allocation0] sm:$0x3] }
  0x8a   :  { %40 = vst [vmem:[%s68_s1] sm:$0x3] %v38_v9 }

// kernel: coordinate_arithmetic_forward.1
= control target key start
LH: loop header
LB: loop body
LE: loop exit
PB: predicated region body
PF: predicated region fallthrough
CT: control target
= control target key end

     0   :  { %vm211_vm0 = vcmask 1043456   ;;  %v7123_v0 = vmov 0.0   ;;  %vm183_vm1 = vcmask 31744   ;;  %vm5444_vm2 = vmmov 0   ;;  %s7118_s0 = inlined_call_operand.vmem [shape: f32[24,128], index: 0, kind: input, shape index: {}]   ;;  %s7119_s1 = inlined_call_operand.vmem [shape: f32[304,128], index: 1, kind: input, shape index: {}]   ;;  %s7120_s2 = inlined_call_operand.vmem [shape: f32[20,128], index: 2, kind: output, shape index: {}]  }
   0x1   :  { %4534 = vmatprep.subr.mxu0 %v7123_v0  ;;  %4563 = vmatprep.subr.mxu1 %v7123_v0  ;;  %v182_v1 = vld [vmem:[%s7118_s0 + $0x4] sm:$0xf]  ;;  %v5472_v2 = vld [vmem:[%s7118_s0] sm:$0xf]  ;;  %v5477_v3 = vld [vmem:[%s7119_s1 + $0x48] sm:$0xff]  ;;  %v5445_v7 = vmov 4   ;;  %v179_v58 = vlaneseq }
   0x2   :  { %4535 = vmatpush3.msk.msra.mxu0 %vm211_vm0, %v182_v1  ;;  %4536 = vmatprep.mubr.msk.f32.mxu0 %vm5444_vm2, %v7123_v0  ;;  %v5485_v4 = vld [vmem:[%s7119_s1] sm:$0xff]  ;;  %v5502_v5 = vld [vmem:[%s7119_s1 + $0x50] sm:$0xff]  ;;  %v5507_v6 = vld [vmem:[%s7119_s1 + $0x8] sm:$0xff]  ;;  %vm485_vm7 = vcmask 64512   ;;  %vm577_vm9 = vcmask 261120   ;;  %vm651_vm10 = vcmask 1041408  }
   0x3   :  { %4564 = vmatpush3.msk.msra.mxu1 %vm211_vm0, %v5472_v2  ;;  %4565 = vmatprep.mubr.msk.f32.mxu1 %vm5444_vm2, %v7123_v0  ;;  %v5522_v8 = vld [vmem:[%s7119_s1 + $0x58] sm:$0xff]  ;;  %v5527_v9 = vld [vmem:[%s7119_s1 + $0x10] sm:$0xff]  ;;  %v5542_v10 = vld [vmem:[%s7119_s1 + $0x60] sm:$0xff] }
   0x4   :  { %4537 = vmatmul.mubr.msk.f32.vlgmr.msra.gmra.mrb[0].mxu0 %vm183_vm1, %v5477_v3  ;;  %4566 = vmatmul.mubr.msk.f32.vlgmr.msra.gmra.mrb[0].mxu1 %vm183_vm1, %v5485_v4  ;;  %v5547_v11 = vld [vmem:[%s7119_s1 + $0x18] sm:$0xff]  ;;  %v5552_v12 = vld [vmem:[%s7119_s1 + $0x20] sm:$0xff]  ;;  %v5567_v13 = vld [vmem:[%s7119_s1 + $0x68] sm:$0xff] }
   0x5   :  { %4539 = vmatprep.mubr.msk.f32.mxu0 %vm5444_vm2, %v7123_v0  ;;  %4568 = vmatprep.mubr.msk.f32.mxu1 %vm5444_vm2, %v7123_v0  ;;  %v5572_v14 = vld [vmem:[%s7119_s1 + $0x28] sm:$0xff]  ;;  %v5577_v15 = vld [vmem:[%s7119_s1 + $0x30] sm:$0xff]  ;;  %v5597_v17 = vld [vmem:[%s7119_s1 + $0x38] sm:$0xff] }
   0x6   :  { %5365 = vset.pattern.permute.xlu0 %v5445_v7  ;;  %4592 = vmatprep.subr.mxu0 %v7123_v0  ;;  %v5592_v16 = vld [vmem:[%s7119_s1 + $0x70] sm:$0xff]  ;;  %v5602_v18 = vld [vmem:[%s7119_s1 + $0x40] sm:$0xff]  ;;  %v5613_v19 = vld [vmem:[%s7119_s1 + $0xa8] sm:$0xff] }
   0x7   :  { %31 = vperm.xlu0 %5365, %v5485_v4   ;;  %5366 = vset.pattern.permute.xlu1 %v5445_v7  ;;  %7188 = vst [vmem:[#allocation2_spill] sm:$0xff] %v5602_v18  ;;  %v5622_v20 = vld [vmem:[%s7119_s1 + $0x78] sm:$0xff]  ;;  %v5641_v22 = vld [vmem:[%s7119_s1 + $0x80] sm:$0xff]  ;;  %v5651_v23 = vld [vmem:[%s7119_s1 + $0xc8] sm:$0xff] }
   0x8   :  { %4540 = vmatmul.mubr.msk.f32.gmra.mrb[2].mxu0 %vm183_vm1, %v5502_v5  ;;  %4569 = vmatmul.mubr.msk.f32.gmra.mrb[2].mxu1 %vm183_vm1, %v5507_v6  ;;  %v5632_v21 = vld [vmem:[%s7119_s1 + $0xb8] sm:$0xff]  ;;  %v5660_v24 = vld [vmem:[%s7119_s1 + $0x88] sm:$0xff]  ;;  %v5704_v30 = vld [vmem:[%s7119_s1 + $0xa0] sm:$0xff] }
   0x9   :  { %4542 = vmatprep.mubr.msk.f32.mxu0 %vm5444_vm2, %v7123_v0  ;;  %4571 = vmatprep.mubr.msk.f32.mxu1 %vm5444_vm2, %v7123_v0  ;;  %v5670_v25 = vld [vmem:[%s7119_s1 + $0xd8] sm:$0xff]  ;;  %v5680_v26 = vld [vmem:[%s7119_s1 + $0xe8] sm:$0xff]  ;;  %7189 = vst [vmem:[#allocation3_spill] sm:$0xff] %v5704_v30  ;;  %v5710_v31 = vld [vmem:[%s7119_s1 + $0xb0] sm:$0xff] }
   0xa   :  { %41 = vperm.xlu1 %5366, %v5527_v9   ;;  %v5686_v27 = vld [vmem:[%s7119_s1 + $0xf8] sm:$0xff]  ;;  %v5692_v28 = vld [vmem:[%s7119_s1 + $0x108] sm:$0xff]  ;;  %v5716_v32 = vld [vmem:[%s7119_s1 + $0xc0] sm:$0xff] }
   0xb   :  { %36 = vperm.xlu0 %5365, %v5507_v6   ;;  %v5698_v29 = vld [vmem:[%s7119_s1 + $0x118] sm:$0xff]  ;;  %v5722_v33 = vld [vmem:[%s7119_s1 + $0xd0] sm:$0xff]  ;;  %v5728_v34 = vld [vmem:[%s7119_s1 + $0xe0] sm:$0xff] }
   0xc   :  { %4543 = vmatmul.mubr.msk.f32.gmra.mrb[4].mxu0 %vm183_vm1, %v5522_v8  ;;  %4572 = vmatmul.mubr.msk.f32.gmra.mrb[4].mxu1 %vm183_vm1, %v5527_v9  ;;  %v5734_v35 = vld [vmem:[%s7119_s1 + $0xf0] sm:$0xff]  ;;  %v5740_v36 = vld [vmem:[%s7119_s1 + $0x100] sm:$0xff] }
   0xd   :  { %4545 = vmatprep.mubr.msk.f32.mxu0 %vm5444_vm2, %v7123_v0  ;;  %4574 = vmatprep.mubr.msk.f32.mxu1 %vm5444_vm2, %v7123_v0  ;;  %v5746_v37 = vld [vmem:[%s7119_s1 + $0x110] sm:$0xff] }
   0xe   :  { %46 = vperm.xlu1 %5366, %v5547_v11  }
   0xf   :  { %51 = vperm.xlu0 %5365, %v5552_v12  }
  0x10   :  { %4546 = vmatmul.mubr.msk.f32.gmra.mrb[6].mxu0 %vm183_vm1, %v5542_v10  ;;  %4575 = vmatmul.mubr.msk.f32.gmra.mrb[6].mxu1 %vm183_vm1, %v5547_v11 }
  0x11   :  { %4548 = vmatprep.mubr.msk.f32.mxu0 %vm5444_vm2, %v7123_v0  ;;  %4577 = vmatprep.mubr.msk.f32.mxu1 %vm5444_vm2, %v7123_v0 }
  0x12   :  { %56 = vperm.xlu1 %5366, %v5572_v14  }
  0x13   :  { %61 = vperm.xlu0 %5365, %v5577_v15  }
  0x14   :  { %4549 = vmatmul.mubr.msk.f32.gmra.mrb[8].mxu0 %vm183_vm1, %v5567_v13  ;;  %4578 = vmatmul.mubr.msk.f32.gmra.mrb[8].mxu1 %vm183_vm1, %v5552_v12 }
  0x15   :  { %4551 = vmatprep.mubr.msk.f32.mxu0 %vm5444_vm2, %v7123_v0  ;;  %4580 = vmatprep.mubr.msk.f32.mxu1 %vm5444_vm2, %v7123_v0 }
  0x16   :  { %66 = vperm.xlu1 %5366, %v5597_v17  }
  0x17   :  { %71 = vperm.xlu0 %5365, %v5602_v18  }
  0x18   :  { %4552 = vmatmul.mubr.msk.f32.gmra.mrb[10].mxu0 %vm183_vm1, %v5592_v16  ;;  %4581 = vmatmul.mubr.msk.f32.gmra.mrb[10].mxu1 %vm183_vm1, %v5572_v14 }
  0x19   :  { %4554 = vmatprep.mubr.msk.f32.mxu0 %vm5444_vm2, %v7123_v0  ;;  %4583 = vmatprep.mubr.msk.f32.mxu1 %vm5444_vm2, %v7123_v0 }
  0x1a   :  { %94 = vperm.xlu1 %5366, %v5704_v30  }
  0x1b   :  { %99 = vperm.xlu0 %5365, %v5613_v19  }
  0x1c   :  { %4555 = vmatmul.mubr.msk.f32.gmra.mrb[12].mxu0 %vm183_vm1, %v5622_v20  ;;  %4584 = vmatmul.mubr.msk.f32.gmra.mrb[12].mxu1 %vm183_vm1, %v5577_v15 }
  0x1d   :  { %4557 = vmatprep.mubr.msk.f32.mxu0 %vm5444_vm2, %v7123_v0  ;;  %4586 = vmatprep.mubr.msk.f32.mxu1 %vm5444_vm2, %v7123_v0 }
  0x1e   :  { %104 = vperm.xlu1 %5366, %v5710_v31  }
  0x1f   :  { %109 = vperm.xlu0 %5365, %v5632_v21  }
  0x20   :  { %4558 = vmatmul.mubr.msk.f32.gmra.mrb[14].mxu0 %vm183_vm1, %v5641_v22  ;;  %4587 = vmatmul.mubr.msk.f32.gmra.mrb[14].mxu1 %vm183_vm1, %v5597_v17 }
  0x21   :  { %4560 = vmatprep.mubr.msk.f32.mxu0 %vm5444_vm2, %v7123_v0  ;;  %4589 = vmatprep.mubr.msk.f32.mxu1 %vm5444_vm2, %v7123_v0 }
  0x22   :  { %114 = vperm.xlu1 %5366, %v5716_v32  }
  0x23   :  { %119 = vperm.xlu0 %5365, %v5651_v23  }
  0x24   :  { %4561 = vmatmul.mubr.msk.f32.gmra.mrb[16].mxu0 %vm183_vm1, %v5660_v24  ;;  %4590 = vmatmul.mubr.msk.f32.gmra.mrb[16].mxu1 %vm183_vm1, %v5602_v18  ;;  %v7196_v18 = vmov 0.0|0.0  }
  0x25   :  { %4594 = vmatprep.mubr.msk.f32.mxu0 %vm5444_vm2, %v7123_v0  ;;  %4605 = vmatprep.mubr.msk.f32.mxu1 %vm5444_vm2, %v7123_v0 }
  0x26   :  { %124 = vperm.xlu1 %5366, %v5722_v33  }
  0x27   :  { %129 = vperm.xlu0 %5365, %v5670_v25  }
  0x2a   :  { %134 = vperm.xlu1 %5366, %v5728_v34  }
  0x2b   :  { %139 = vperm.xlu0 %5365, %v5680_v26  }
  0x2e   :  { %144 = vperm.xlu1 %5366, %v5734_v35  }
  0x2f   :  { %149 = vperm.xlu0 %5365, %v5686_v27  }
  0x32   :  { %154 = vperm.xlu1 %5366, %v5740_v36  }
  0x33   :  { %159 = vperm.xlu0 %5365, %v5692_v28  }
  0x36   :  { %164 = vperm.xlu1 %5366, %v5746_v37  }
  0x37   :  { %169 = vperm.xlu0 %5365, %v5698_v29  }
  0x86   :  { %v5749_v43 = vpop.permute.xlu0 %31 }
  0x87   :  { %7190 = vst [vmem:[#allocation4_spill] sm:$0xff] %v5749_v43 }
  0xd7   :  { %v281_v38 = vpop.f32.mrb[0].mxu0  ;;  %v412_v39 = vpop.f32.mrb[0].mxu1 }
  0xd8   :  { %v413_v40 = vadd.f32 %v412_v39, %v281_v38  ;;  %v4538_v41 = vpop.f32.mrb[1].mxu0  ;;  %v4567_v42 = vpop.f32.mrb[1].mxu1  ;;  %v5758_v38 = vshrl.u32 %v179_v58, 7 }
  0xda   :  { %v456_v44 = vadd.f32 %v413_v40, %v5749_v43 }
  0xdb   :  { %v286_v45 = vpop.f32.mrb[2].mxu0  ;;  %v417_v46 = vpop.f32.mrb[2].mxu1 }
  0xdc   :  { %v465_v47 = vrot.slane %v456_v44, 4  ;;  %v5752_v48 = vadd.f32 %v417_v46, %v286_v45  ;;  %v4541_v49 = vpop.f32.mrb[3].mxu0  ;;  %v4570_v50 = vpop.f32.mrb[3].mxu1 }
  0xde   :  { %v466_v51 = vmax.f32 %v456_v44, %v465_v47 }
  0xdf   :  { %v291_v52 = vpop.f32.mrb[4].mxu0  ;;  %v422_v53 = vpop.f32.mrb[4].mxu1 }
  0xe0   :  { %v467_v54 = vrot.slane %v466_v51, 2  ;;  %v5754_v55 = vadd.f32 %v422_v53, %v291_v52  ;;  %v4544_v56 = vpop.f32.mrb[5].mxu0  ;;  %v4573_v57 = vpop.f32.mrb[5].mxu1 }
  0xe2   :  { %v468_v59 = vmax.f32 %v466_v51, %v467_v54 }
  0xe3   :  { %v296_v60 = vpop.f32.mrb[6].mxu0  ;;  %v427_v61 = vpop.f32.mrb[6].mxu1 }
  0xe4   :  { %v469_v62 = vrot.slane %v468_v59, 1  ;;  %v5756_v63 = vadd.f32 %v427_v61, %v296_v60  ;;  %v4547_v1 = vpop.f32.mrb[7].mxu0  ;;  %v4576_v7 = vpop.f32.mrb[7].mxu1 }
  0xe6   :  { %v470_v39 = vmax.f32 %v468_v59, %v469_v62 }
  0xe7   :  { %v301_v40 = vpop.f32.mrb[8].mxu0  ;;  %v432_v41 = vpop.f32.mrb[8].mxu1 }
  0xe8   :  { %vm471_vm3 = vcmp.ge.f32.partialorder %v456_v44, %v470_v39  ;;  %v433_v42 = vadd.f32 %v432_v41, %v301_v40  ;;  %v4550_v45 = vpop.f32.mrb[9].mxu0  ;;  %v4579_v46 = vpop.f32.mrb[9].mxu1 }
  0xe9   :  { %v472_v47 = vsel %vm471_vm3, %v5758_v38, 8 }
  0xea   :  { %v473_v49 = vrot.slane %v472_v47, 4 }
  0xeb   :  { %v306_v50 = vpop.f32.mrb[10].mxu0  ;;  %v437_v51 = vpop.f32.mrb[10].mxu1 }
  0xec   :  { %vm474_vm4 = vcmp.lt.s32.totalorder %v472_v47, %v473_v49  ;;  %v438_v52 = vadd.f32 %v437_v51, %v306_v50  ;;  %v4553_v53 = vpop.f32.mrb[11].mxu0  ;;  %v4582_v54 = vpop.f32.mrb[11].mxu1  ;;  %v7121_v51 = vmov 1.0  }
  0xed   :  { %v475_v56 = vsel %vm474_vm4, %v472_v47, %v473_v49  ;;  %v5764_v47 = vld [vmem:[%s7119_s1 + $0x90] sm:$0x3f] }
  0xee   :  { %v476_v57 = vrot.slane %v475_v56, 2  ;;  %7191 = vst [vmem:[#allocation5_spill] sm:$0xff] %v5764_v47 }
  0xef   :  { %v311_v58 = vpop.f32.mrb[12].mxu0  ;;  %v442_v60 = vpop.f32.mrb[12].mxu1 }
  0xf0   :  { %v443_v59 = vadd.f32 %v442_v60, %v311_v58  ;;  %v4556_v61 = vpop.f32.mrb[13].mxu0  ;;  %v4585_v62 = vpop.f32.mrb[13].mxu1  ;;  %vm477_vm5 = vcmp.lt.s32.totalorder %v475_v56, %v476_v57 }
  0xf1   :  { %v478_v44 = vsel %vm477_vm5, %v475_v56, %v476_v57  ;;  %v7125_v57 = vmov 0.0|0.0   ;;  %v5773_v58 = vpop.permute.xlu0 %36  ;;  %v5775_v60 = vpop.permute.xlu1 %41 }
  0xf2   :  { %v479_v1 = vrot.slane %v478_v44, 1  ;;  %5209 = vmatprep.subr.bf16.mxu1 %v7125_v57  ;;  %7192 = vst [vmem:[#allocation6_spill] sm:$0xff] %v5773_v58  ;;  %7193 = vst [vmem:[#allocation7_spill] sm:$0xff] %v5775_v60 }
  0xf3   :  { %v316_v7 = vpop.f32.mrb[14].mxu0  ;;  %v447_v39 = vpop.f32.mrb[14].mxu1 }
  0xf4   :  { %v448_v40 = vadd.f32 %v447_v39, %v316_v7  ;;  %v4559_v41 = vpop.f32.mrb[15].mxu0  ;;  %v4588_v45 = vpop.f32.mrb[15].mxu1  ;;  %vm480_vm6 = vcmp.lt.s32.totalorder %v478_v44, %v479_v1 }
  0xf5   :  { %v481_v46 = vsel %vm480_vm6, %v478_v44, %v479_v1  ;;  %v5777_v61 = vpop.permute.xlu0 %51  ;;  %v5779_v62 = vpop.permute.xlu1 %46  ;;  %v5782_v44 = vsub.s32 0, %v5758_v38  ;;  %v5785_v1 = vsub.s32 1, %v5758_v38  ;;  %v457_v45 = vadd.f32 %v5752_v48, %v5773_v58 }
  0xf6   :  { %vm482_vm8 = vcmp.eq.s32.totalorder %v5758_v38, %v481_v46  ;;  %7194 = vst [vmem:[#allocation8_spill] sm:$0xff] %v5777_v61  ;;  %7195 = vst [vmem:[#allocation9_spill] sm:$0xff] %v5779_v62  ;;  %v458_v46 = vadd.f32 %v5754_v55, %v5775_v60 }
  0xf7   :  { %v321_v49 = vpop.f32.mrb[16].mxu0  ;;  %v452_v50 = vpop.f32.mrb[16].mxu1  ;;  %4593 = vmatpush3.msk.msra.mxu0 %vm482_vm8, %v7121_v51  ;;  %v459_v51 = vadd.f32 %v5756_v63, %v5779_v62 }
  0xf8   :  { %v453_v53 = vadd.f32 %v452_v50, %v321_v49  ;;  %4595 = vmatmul.mubr.msk.f32.vlgmr.msra.gmra.mrb[18].mxu0 %vm485_vm7, %v5764_v47  ;;  %v4562_v54 = vpop.f32.mrb[17].mxu0  ;;  %v4591_v56 = vpop.f32.mrb[17].mxu1 }
  0xf9   :  { %4610 = vmatprep.mubr.msk.f32.mxu0 %vm183_vm1, %v5704_v30  ;;  %v5787_v7 = vpop.permute.xlu0 %61  ;;  %v5789_v39 = vpop.permute.xlu1 %56  ;;  %v460_v56 = vadd.f32 %v433_v42, %v5777_v61 }
  0xfa   :  { %v462_v58 = vadd.f32 %v443_v59, %v5787_v7  ;;  %v461_v30 = vadd.f32 %v438_v52, %v5789_v39  ;;  %v5824_v52 = vld [vmem:[%s7119_s1 + $0x98] sm:$0x3] }
  0xfd   :  { %v5812_v60 = vpop.permute.xlu0 %71 }
  0xfe   :  { %v464_v42 = vadd.f32 %v453_v53, %v5812_v60 }
 0x1cb   :  { %v5791_v41 = vpop.f32.mrb[18].mxu0 }
 0x1cc   :  { %v5799_v49 = vrot.slane %v5791_v41, %v5782_v44  ;;  %v5803_v50 = vrot.slane %v5791_v41, %v5785_v1  ;;  %v4596_v54 = vpop.f32.mrb[19].mxu0 }
 0x1cd   :  { %v5816_v54 = vpop.permute.xlu1 %66 }
 0x1ce   :  { %v563_v0 = vmul.f32 %v5799_v49, %v457_v45  ;;  %v564_v48 = vmul.f32 %v5799_v49, %v458_v46  ;;  %v569_v55 = vmul.f32 %v5803_v50, %v459_v51  ;;  %v570_v57 = vmul.f32 %v5803_v50, %v460_v56 }
 0x1cf   :  { %v463_v63 = vadd.f32 %v448_v40, %v5816_v54 }
 0x1d0   :  { %v571_v61 = vadd.f32 %v569_v55, %v563_v0  ;;  %v572_v45 = vadd.f32 %v570_v57, %v564_v48  ;;  %v7197_v0 = vmov 0.0  }
 0x1d2   :  { %v573_v62 = vmul.f32 %v571_v61, %v461_v30  ;;  %v574_v46 = vmul.f32 %v572_v45, %v462_v58  ;;  %v575_v47 = vmul.f32 %v571_v61, %v463_v63  ;;  %v576_v51 = vmul.f32 %v572_v45, %v464_v42 }
 0x1d4   :  { %v5210_v43 = vpack.c.bf16 %v574_v46, %v573_v62  ;;  %v5213_v56 = vpack.c.bf16 %v576_v51, %v575_v47 }
 0x1d6   :  { %5211 = vmatpush3.bf16.msra.mxu1 %v5210_v43 }
 0x1d7   :  { %5212 = vmatprep.subr.bf16.mxu1 %v7196_v18 }
 0x1da   :  { %5214 = vmatpush3.bf16.msra.mxu1 %v5213_v56 }
 0x1db   :  { %5215 = vmatprep.subr.bf16.mxu1 %v7196_v18 }
 0x1dd   :  { %4606 = vmatmul.mubr.msk.f32.vlgmr.msra.gmra.mrb[18].mxu1 %vm577_vm9, %v5824_v52 }
 0x1de   :  { %4666 = vmatprep.mubr.msk.f32.mxu1 %vm5444_vm2, %v7197_v0 }
 0x2b0   :  { %v647_v30 = vpop.f32.mrb[18].mxu1 }
 0x2b1   :  { %v652_v43 = vsel %vm651_vm10, %v647_v30, -inf  ;;  %v4607_v59 = vpop.f32.mrb[19].mxu1 }
 0x2b2   :  { %v653_v40 = vrot.slane %v652_v43, 4 }
 0x2b4   :  { %v654_v47 = vmax.f32 %v652_v43, %v653_v40 }
 0x2b6   :  { %v655_v53 = vrot.slane %v654_v47, 2 }
 0x2b8   :  { %v656_v57 = vmax.f32 %v654_v47, %v655_v53 }
 0x2ba   :  { %v657_v58 = vrot.slane %v656_v57, 1 }
 0x2bc   :  { %v658_v61 = vmax.f32 %v656_v57, %v657_v58  ;;  %v674_v58 = vmul.f32 %v5799_v49, %v5472_v2 }
 0x2be   :  { %vm659_vm11 = vcmp.ge.f32.partialorder %v647_v30, %v658_v61  ;;  %v680_v30 = vmul.f32 %v5803_v50, %v5472_v2 }
 0x2bf   :  { %v660_v62 = vsel %vm659_vm11, %v5758_v38, 2 }
 0x2c0   :  { %v661_v48 = vsel %vm651_vm10, %v660_v62, 2147483647  ;;  %v682_v53 = vrot.slane %v680_v30, 2 }
 0x2c1   :  { %v662_v55 = vrot.slane %v661_v48, 4 }
 0x2c2   :  { %v684_v62 = vadd.f32 %v682_v53, %v674_v58 }
 0x2c3   :  { %vm663_vm12 = vcmp.lt.s32.totalorder %v661_v48, %v662_v55 }
 0x2c4   :  { %v664_v42 = vsel %vm663_vm12, %v661_v48, %v662_v55 }
 0x2c5   :  { %v665_v63 = vrot.slane %v664_v42, 2 }
 0x2c7   :  { %vm666_vm13 = vcmp.lt.s32.totalorder %v664_v42, %v665_v63 }
 0x2c8   :  { %v667_v45 = vsel %vm666_vm13, %v664_v42, %v665_v63 }
 0x2c9   :  { %v668_v46 = vrot.slane %v667_v45, 1 }
 0x2cb   :  { %vm669_vm14 = vcmp.lt.s32.totalorder %v667_v45, %v668_v46 }
 0x2cc   :  { %v670_v51 = vsel %vm669_vm14, %v667_v45, %v668_v46 }
 0x2cd   :  { %vm671_vm15 = vcmp.eq.s32.totalorder %v5758_v38, %v670_v51 }
 0x2ce   :  { %v4043_v56 = vsel %vm671_vm15, 1.0, %v7197_v0 }
 0x2cf   :  { %v678_v43 = vrot.slane %v4043_v56, %v5782_v44  ;;  %v688_v59 = vrot.slane %v4043_v56, %v5785_v1 }
 0x2d1   :  { %v689_v40 = vmul.f32 %v688_v59, %v5472_v2  ;;  %v679_v47 = vmul.f32 %v678_v43, %v5472_v2 }
 0x2d3   :  { %v691_v57 = vrot.slane %v689_v40, 2 }
 0x2d5   :  { %v693_v61 = vadd.f32 %v691_v57, %v679_v47 }
 0x2d7   :  { %v695_v48 = vrot.slane %v693_v61, 6 }
 0x2d9   :  { %v697_v55 = vsel %vm651_vm10, %v684_v62, %v695_v48 }
 0x2da   :  { %4608 = vmatprep.subr.msk.mxu0 %vm211_vm0, %v697_v55 }
 0x2db   :  { %4609 = vmatpush3.msk.msra.mxu0 %vm211_vm0, %v697_v55 }
 0x2dc   :  { %4611 = vmatmul.mubr.msk.f32.vlgmr.msra.gmra.mrb[20].mxu0 %vm183_vm1, %v5613_v19  ;;  %4669 = vmatprep.subr.mxu0 %v7197_v0  ;;  %v173_v19 = vld [vmem:[%s7119_s1 + $0x128] sm:$0xff] }
 0x2dd   :  { %4613 = vmatprep.mubr.msk.f32.mxu0 %vm183_vm1, %v5710_v31 }
 0x2e0   :  { %4614 = vmatmul.mubr.msk.f32.gmra.mrb[22].mxu0 %vm183_vm1, %v5632_v21  ;;  %v5448_v21 = vmov 0  }
 0x2e1   :  { %4616 = vmatprep.mubr.msk.f32.mxu0 %vm183_vm1, %v5716_v32  ;;  %5367 = vset.pattern.permute.xlu1 %v5448_v21 }
 0x2e2   :  { %5368 = vset.pattern.permute.xlu0 %v5448_v21  ;;  %176 = vperm.xlu1 %5367, %v173_v19  }
 0x2e4   :  { %4617 = vmatmul.mubr.msk.f32.gmra.mrb[24].mxu0 %vm183_vm1, %v5651_v23  ;;  %v5883_v23 = vpop.permute.xlu0 %99 }
 0x2e5   :  { %4619 = vmatprep.mubr.msk.f32.mxu0 %vm183_vm1, %v5722_v33 }
 0x2e8   :  { %4620 = vmatmul.mubr.msk.f32.gmra.mrb[26].mxu0 %vm183_vm1, %v5670_v25  ;;  %v5885_v25 = vpop.permute.xlu1 %94 }
 0x2e9   :  { %4622 = vmatprep.mubr.msk.f32.mxu0 %vm183_vm1, %v5728_v34 }
 0x2ec   :  { %4623 = vmatmul.mubr.msk.f32.gmra.mrb[28].mxu0 %vm183_vm1, %v5680_v26  ;;  %v5887_v26 = vpop.permute.xlu0 %109 }
 0x2ed   :  { %4625 = vmatprep.mubr.msk.f32.mxu0 %vm183_vm1, %v5734_v35 }
 0x2f0   :  { %4626 = vmatmul.mubr.msk.f32.gmra.mrb[30].mxu0 %vm183_vm1, %v5686_v27  ;;  %v5889_v27 = vpop.permute.xlu1 %104 }
 0x2f1   :  { %4628 = vmatprep.mubr.msk.f32.mxu0 %vm183_vm1, %v5740_v36 }
 0x2f4   :  { %4629 = vmatmul.mubr.msk.f32.gmra.mrb[32].mxu0 %vm183_vm1, %v5692_v28  ;;  %v5891_v28 = vpop.permute.xlu0 %119 }
 0x2f5   :  { %4631 = vmatprep.mubr.msk.f32.mxu0 %vm183_vm1, %v5746_v37 }
 0x2f8   :  { %4632 = vmatmul.mubr.msk.f32.gmra.mrb[34].mxu0 %vm183_vm1, %v5698_v29  ;;  %v5893_v29 = vpop.permute.xlu1 %114  ;;  %v5897_v56 = vpop.permute.xlu0 %129 }
 0x2f9   :  { %4671 = vmatprep.mubr.msk.f32.mxu0 %vm5444_vm2, %v7197_v0 }
 0x2fc   :  { %v5899_v59 = vpop.permute.xlu1 %124  ;;  %v5905_v19 = vpop.permute.xlu0 %139 }
 0x2fd   :  { %7198 = vst [vmem:[#allocation10_spill] sm:$0xff] %v5899_v59  ;;  %7199 = vst [vmem:[#allocation11_spill] sm:$0xff] %v5905_v19 }
 0x3af   :  { %v4612_v42 = vpop.f32.mrb[20].mxu0 }
 0x3b0   :  { %v805_v63 = vadd.f32 %v4612_v42, %v5883_v23  ;;  %v799_v45 = vpop.f32.mrb[21].mxu0 }
 0x3b1   :  { %v800_v46 = vadd.f32 %v799_v45, %v5885_v25 }
 0x3b2   :  { %v879_v51 = vmax.f32 %v805_v63, 0.0  ;;  %v5908_v63 = vpop.permute.xlu1 %134 }
 0x3b3   :  { %v878_v43 = vmax.f32 %v800_v46, 0.0  ;;  %v4615_v30 = vpop.f32.mrb[22].mxu0  ;;  %7200 = vst [vmem:[#allocation12_spill] sm:$0xff] %v5908_v63 }
 0x3b4   :  { %v815_v40 = vadd.f32 %v4615_v30, %v5887_v26  ;;  %v809_v47 = vpop.f32.mrb[23].mxu0 }
 0x3b5   :  { %v5216_v53 = vpack.c.bf16 %v879_v51, %v878_v43  ;;  %v810_v57 = vadd.f32 %v809_v47, %v5889_v27 }
 0x3b6   :  { %v881_v58 = vmax.f32 %v815_v40, 0.0 }
 0x3b7   :  { %v880_v61 = vmax.f32 %v810_v57, 0.0  ;;  %v4618_v62 = vpop.f32.mrb[24].mxu0  ;;  %5217 = vmatpush3.bf16.msra.mxu1 %v5216_v53  ;;  %v5913_v57 = vpop.permute.xlu0 %149 }
 0x3b8   :  { %v825_v48 = vadd.f32 %v4618_v62, %v5891_v28  ;;  %v819_v55 = vpop.f32.mrb[25].mxu0  ;;  %5218 = vmatprep.subr.bf16.mxu1 %v7196_v18  ;;  %7201 = vst [vmem:[#allocation13_spill] sm:$0xff] %v5913_v57  ;;  %v5915_v62 = vpop.permute.xlu1 %144 }
 0x3b9   :  { %v5219_v21 = vpack.c.bf16 %v881_v58, %v880_v61  ;;  %v820_v42 = vadd.f32 %v819_v55, %v5893_v29  ;;  %7202 = vst [vmem:[#allocation14_spill] sm:$0xff] %v5915_v62 }
 0x3ba   :  { %v883_v45 = vmax.f32 %v825_v48, 0.0 }
 0x3bb   :  { %v882_v46 = vmax.f32 %v820_v42, 0.0  ;;  %v4621_v51 = vpop.f32.mrb[26].mxu0  ;;  %5220 = vmatpush3.bf16.msra.mxu1 %v5219_v21 }
 0x3bc   :  { %v835_v43 = vadd.f32 %v4621_v51, %v5897_v56  ;;  %v829_v30 = vpop.f32.mrb[27].mxu0  ;;  %5221 = vmatprep.subr.bf16.mxu1 %v7196_v18 }
 0x3bd   :  { %v5222_v40 = vpack.c.bf16 %v883_v45, %v882_v46  ;;  %v830_v47 = vadd.f32 %v829_v30, %v5899_v59 }
 0x3be   :  { %v885_v53 = vmax.f32 %v835_v43, 0.0 }
 0x3bf   :  { %v884_v58 = vmax.f32 %v830_v47, 0.0  ;;  %v4624_v61 = vpop.f32.mrb[28].mxu0  ;;  %5223 = vmatpush3.bf16.msra.mxu1 %v5222_v40  ;;  %v5922_v40 = vpop.permute.xlu0 %159 }
 0x3c0   :  { %v845_v48 = vadd.f32 %v4624_v61, %v5905_v19  ;;  %v839_v55 = vpop.f32.mrb[29].mxu0  ;;  %5224 = vmatprep.subr.bf16.mxu1 %v7196_v18  ;;  %7203 = vst [vmem:[#allocation15_spill] sm:$0xff] %v5922_v40  ;;  %v5925_v19 = vpop.permute.xlu1 %154 }
 0x3c1   :  { %v5225_v21 = vpack.c.bf16 %v885_v53, %v884_v58  ;;  %v840_v42 = vadd.f32 %v839_v55, %v5908_v63  ;;  %7204 = vst [vmem:[#allocation16_spill] sm:$0xff] %v5925_v19 }
 0x3c2   :  { %v887_v51 = vmax.f32 %v845_v48, 0.0 }
 0x3c3   :  { %v886_v45 = vmax.f32 %v840_v42, 0.0  ;;  %v4627_v46 = vpop.f32.mrb[30].mxu0  ;;  %5226 = vmatpush3.bf16.msra.mxu1 %v5225_v21 }
 0x3c4   :  { %v855_v43 = vadd.f32 %v4627_v46, %v5913_v57  ;;  %v849_v30 = vpop.f32.mrb[31].mxu0  ;;  %5227 = vmatprep.subr.bf16.mxu1 %v7196_v18  ;;  %v5930_v57 = vpop.permute.xlu0 %169 }
 0x3c5   :  { %v5228_v47 = vpack.c.bf16 %v887_v51, %v886_v45  ;;  %v850_v61 = vadd.f32 %v849_v30, %v5915_v62  ;;  %7205 = vst [vmem:[#allocation17_spill] sm:$0xff] %v5930_v57  ;;  %v5932_v30 = vpop.permute.xlu1 %164 }
 0x3c6   :  { %v889_v59 = vmax.f32 %v855_v43, 0.0  ;;  %7206 = vst [vmem:[#allocation18_spill] sm:$0xff] %v5932_v30 }
 0x3c7   :  { %v888_v53 = vmax.f32 %v850_v61, 0.0  ;;  %v4630_v58 = vpop.f32.mrb[32].mxu0  ;;  %5229 = vmatpush3.bf16.msra.mxu1 %v5228_v47 }
 0x3c8   :  { %v865_v48 = vadd.f32 %v4630_v58, %v5922_v40  ;;  %v859_v55 = vpop.f32.mrb[33].mxu0  ;;  %5230 = vmatprep.subr.bf16.mxu1 %v7196_v18 }
 0x3c9   :  { %v5231_v21 = vpack.c.bf16 %v889_v59, %v888_v53  ;;  %v860_v42 = vadd.f32 %v859_v55, %v5925_v19  ;;  %v1019_v55 = vld [vmem:[%s7118_s0 + $0x8] sm:$0xf] }
 0x3ca   :  { %v891_v46 = vmax.f32 %v865_v48, 0.0  ;;  %v5941_v48 = vld [vmem:[%s7119_s1 + $0x120] sm:$0xff]  ;;  %4670 = vmatpush3.msk.msra.mxu0 %vm211_vm0, %v1019_v55 }
 0x3cb   :  { %v890_v51 = vmax.f32 %v860_v42, 0.0  ;;  %v4633_v45 = vpop.f32.mrb[34].mxu0  ;;  %5232 = vmatpush3.bf16.msra.mxu1 %v5231_v21  ;;  %4672 = vmatmul.mubr.msk.f32.vlgmr.msra.gmra.mrb[36].mxu0 %vm183_vm1, %v5477_v3  ;;  %v5989_v3 = vsub.s32 2, %v5758_v38 }
 0x3cc   :  { %v875_v43 = vadd.f32 %v4633_v45, %v5930_v57  ;;  %v869_v61 = vpop.f32.mrb[35].mxu0  ;;  %5233 = vmatprep.subr.bf16.mxu1 %v7196_v18  ;;  %4727 = vmatprep.subr.mxu0 %v7197_v0 }
 0x3cd   :  { %v5234_v47 = vpack.c.bf16 %v891_v46, %v890_v51  ;;  %v870_v58 = vadd.f32 %v869_v61, %v5932_v30  ;;  %4674 = vmatprep.mubr.msk.f32.mxu0 %vm5444_vm2, %v7197_v0  ;;  %7207 = vst [vmem:[#allocation19_spill] sm:$0xff] %v5989_v3 }
 0x3ce   :  { %v893_v40 = vmax.f32 %v875_v43, 0.0 }
 0x3cf   :  { %v892_v59 = vmax.f32 %v870_v58, 0.0  ;;  %5235 = vmatpush3.bf16.msra.mxu1 %v5234_v47  ;;  %4675 = vmatmul.mubr.msk.f32.gmra.mrb[38].mxu0 %vm183_vm1, %v5502_v5  ;;  %v5992_v5 = vsub.s32 3, %v5758_v38 }
 0x3d0   :  { %5236 = vmatprep.subr.bf16.mxu1 %v7196_v18  ;;  %4677 = vmatprep.mubr.msk.f32.mxu0 %vm5444_vm2, %v7197_v0 }
 0x3d1   :  { %v5237_v53 = vpack.c.bf16 %v893_v40, %v892_v59  ;;  %7208 = vst [vmem:[#allocation20_spill] sm:$0xff] %v5992_v5  ;;  %v972_v40 = vrot.slane %v5791_v41, %v5992_v5 }
 0x3d3   :  { %5238 = vmatpush3.bf16.msra.mxu1 %v5237_v53  ;;  %4678 = vmatmul.mubr.msk.f32.gmra.mrb[40].mxu0 %vm183_vm1, %v5522_v8  ;;  %v5995_v8 = vsub.s32 4, %v5758_v38 }
 0x3d4   :  { %4698 = vmatprep.subr.mxu1 %v7197_v0  ;;  %4680 = vmatprep.mubr.msk.f32.mxu0 %vm5444_vm2, %v7197_v0 }
 0x3d5   :  { %7209 = vst [vmem:[#allocation21_spill] sm:$0xff] %v5995_v8  ;;  %v981_v21 = vrot.slane %v5791_v41, %v5995_v8 }
 0x3d6   :  { %4667 = vmatmul.mubr.f32.vlgmr.msra.gmra.mrb[20].mxu1 %v5941_v48 }
 0x3d7   :  { %4700 = vmatprep.mubr.msk.f32.mxu1 %vm5444_vm2, %v7197_v0  ;;  %4681 = vmatmul.mubr.msk.f32.gmra.mrb[42].mxu0 %vm183_vm1, %v5542_v10  ;;  %v5998_v10 = vsub.s32 5, %v5758_v38 }
 0x3d8   :  { %4683 = vmatprep.mubr.msk.f32.mxu0 %vm5444_vm2, %v7197_v0 }
 0x3d9   :  { %7210 = vst [vmem:[#allocation22_spill] sm:$0xff] %v5998_v10  ;;  %v990_v42 = vrot.slane %v5791_v41, %v5998_v10 }
 0x3db   :  { %4684 = vmatmul.mubr.msk.f32.gmra.mrb[44].mxu0 %vm183_vm1, %v5567_v13  ;;  %v6000_v13 = vpop.permute.xlu1 %176 }
 0x3dc   :  { %4686 = vmatprep.mubr.msk.f32.mxu0 %vm5444_vm2, %v7197_v0  ;;  %7211 = vst [vmem:[#allocation23_spill] sm:$0xff] %v6000_v13 }
 0x3df   :  { %4687 = vmatmul.mubr.msk.f32.gmra.mrb[46].mxu0 %vm183_vm1, %v5592_v16  ;;  %v997_v16 = vsub.f32 1.0, %v5791_v41 }
 0x3e0   :  { %4689 = vmatprep.mubr.msk.f32.mxu0 %vm5444_vm2, %v7197_v0 }
 0x3e1   :  { %v1008_v47 = vrot.slane %v997_v16, %v5785_v1  ;;  %v1001_v55 = vrot.slane %v997_v16, %v5782_v44 }
 0x3e3   :  { %4690 = vmatmul.mubr.msk.f32.gmra.mrb[48].mxu0 %vm183_vm1, %v5622_v20 }
 0x3e4   :  { %4692 = vmatprep.mubr.msk.f32.mxu0 %vm5444_vm2, %v7197_v0 }
 0x3e7   :  { %4693 = vmatmul.mubr.msk.f32.gmra.mrb[50].mxu0 %vm183_vm1, %v5641_v22  ;;  %v967_v22 = vrot.slane %v5791_v41, %v5989_v3  ;;  %v1002_v41 = vmul.f32 %v1001_v55, %v5472_v2 }
 0x3e8   :  { %4695 = vmatprep.mubr.msk.f32.mxu0 %vm5444_vm2, %v7197_v0 }
 0x3eb   :  { %4696 = vmatmul.mubr.msk.f32.gmra.mrb[52].mxu0 %vm183_vm1, %v5660_v24 }
 0x3ec   :  { %4729 = vmatprep.mubr.msk.f32.mxu0 %vm5444_vm2, %v7197_v0 }
 0x4a9   :  { %v960_v20 = vpop.f32.mrb[20].mxu1 }
 0x4aa   :  { %v961_v24 = vadd.f32 %v960_v20, %v6000_v13  ;;  %v4668_v46 = vpop.f32.mrb[21].mxu1  ;;  %v1009_v13 = vmul.f32 %v1008_v47, %v5472_v2  ;;  %v7212_v2 = vld [vmem:[#allocation2_spill] sm:$0xff] }
 0x4ac   :  { %v968_v51 = vmul.f32 %v967_v22, %v961_v24  ;;  %v973_v45 = vmul.f32 %v972_v40, %v961_v24  ;;  %v982_v43 = vmul.f32 %v981_v21, %v961_v24  ;;  %v991_v61 = vmul.f32 %v990_v42, %v961_v24 }
 0x4ad   :  { %v1011_v40 = vrot.slane %v1009_v13, 2 }
 0x4ae   :  { %v975_v58 = vrot.slane %v973_v45, 2  ;;  %v984_v53 = vrot.slane %v982_v43, 4  ;;  %v993_v5 = vrot.slane %v991_v61, 6 }
 0x4b0   :  { %v977_v59 = vadd.f32 %v975_v58, %v968_v51 }
 0x4b2   :  { %v986_v20 = vadd.f32 %v984_v53, %v977_v59  ;;  %v7213_v59 = vld [vmem:[#allocation4_spill] sm:$0xff] }
 0x4b4   :  { %v995_v8 = vadd.f32 %v993_v5, %v986_v20 }
 0x4b6   :  { %v996_v3 = vmul.f32 %v995_v8, %v5799_v49  ;;  %v1004_v22 = vmul.f32 %v995_v8, %v5803_v50 }
 0x4b8   :  { %v1003_v24 = vadd.f32 %v1002_v41, %v996_v3  ;;  %v1013_v21 = vadd.f32 %v1011_v40, %v1004_v22 }
 0x4ba   :  { %v1015_v42 = vrot.slane %v1013_v21, 6 }
 0x4bc   :  { %v6019_v46 = vsel %vm651_vm10, %v1003_v24, %v1015_v42 }
 0x4bd   :  { %4699 = vmatpush3.msk.msra.mxu1 %vm211_vm0, %v6019_v46  ;;  %1018 = vst [vmem:[%s7120_s2] sm:$0xf] %v6019_v46 }
 0x4be   :  { %4701 = vmatmul.mubr.msk.f32.vlgmr.msra.gmra.mrb[22].mxu1 %vm183_vm1, %v5485_v4  ;;  %5239 = vmatprep.subr.bf16.mxu1 %v7196_v18  ;;  %v1089_v4 = vpop.f32.mrb[36].mxu0 }
 0x4bf   :  { %4703 = vmatprep.mubr.msk.f32.mxu1 %vm5444_vm2, %v7197_v0 }
 0x4c2   :  { %4704 = vmatmul.mubr.msk.f32.gmra.mrb[24].mxu1 %vm183_vm1, %v5507_v6  ;;  %v4673_v6 = vpop.f32.mrb[37].mxu0 }
 0x4c3   :  { %4706 = vmatprep.mubr.msk.f32.mxu1 %vm5444_vm2, %v7197_v0 }
 0x4c6   :  { %4707 = vmatmul.mubr.msk.f32.gmra.mrb[26].mxu1 %vm183_vm1, %v5527_v9  ;;  %v1094_v9 = vpop.f32.mrb[38].mxu0 }
 0x4c7   :  { %4709 = vmatprep.mubr.msk.f32.mxu1 %vm5444_vm2, %v7197_v0 }
 0x4ca   :  { %4710 = vmatmul.mubr.msk.f32.gmra.mrb[28].mxu1 %vm183_vm1, %v5547_v11  ;;  %v4676_v11 = vpop.f32.mrb[39].mxu0 }
 0x4cb   :  { %4712 = vmatprep.mubr.msk.f32.mxu1 %vm5444_vm2, %v7197_v0 }
 0x4ce   :  { %4713 = vmatmul.mubr.msk.f32.gmra.mrb[30].mxu1 %vm183_vm1, %v5552_v12  ;;  %v1099_v12 = vpop.f32.mrb[40].mxu0 }
 0x4cf   :  { %4715 = vmatprep.mubr.msk.f32.mxu1 %vm5444_vm2, %v7197_v0 }
 0x4d2   :  { %4716 = vmatmul.mubr.msk.f32.gmra.mrb[32].mxu1 %vm183_vm1, %v5572_v14  ;;  %v4679_v14 = vpop.f32.mrb[41].mxu0 }
 0x4d3   :  { %4718 = vmatprep.mubr.msk.f32.mxu1 %vm5444_vm2, %v7197_v0 }
 0x4d6   :  { %4719 = vmatmul.mubr.msk.f32.gmra.mrb[34].mxu1 %vm183_vm1, %v5577_v15  ;;  %v1104_v15 = vpop.f32.mrb[42].mxu0 }
 0x4d7   :  { %4721 = vmatprep.mubr.msk.f32.mxu1 %vm5444_vm2, %v7197_v0  ;;  %v4682_v49 = vpop.f32.mrb[43].mxu0 }
 0x4d8   :  { %v1109_v50 = vpop.f32.mrb[44].mxu0 }
 0x4d9   :  { %v4685_v3 = vpop.f32.mrb[45].mxu0 }
 0x4da   :  { %4722 = vmatmul.mubr.msk.f32.gmra.mrb[36].mxu1 %vm183_vm1, %v5597_v17  ;;  %v1114_v17 = vpop.f32.mrb[46].mxu0 }
 0x4db   :  { %4724 = vmatprep.mubr.msk.f32.mxu1 %vm5444_vm2, %v7197_v0  ;;  %v4688_v5 = vpop.f32.mrb[47].mxu0 }
 0x4dc   :  { %v1119_v8 = vpop.f32.mrb[48].mxu0 }
 0x4dd   :  { %v4691_v13 = vpop.f32.mrb[49].mxu0 }
 0x4de   :  { %4725 = vmatmul.mubr.msk.f32.gmra.mrb[38].mxu1 %vm183_vm1, %v7212_v2  ;;  %v1124_v16 = vpop.f32.mrb[50].mxu0 }
 0x4df   :  { %4740 = vmatprep.mubr.msk.f32.mxu1 %vm5444_vm2, %v7197_v0  ;;  %v4694_v51 = vpop.f32.mrb[51].mxu0 }
 0x4e0   :  { %v1129_v45 = vpop.f32.mrb[52].mxu0 }
 0x4e1   :  { %v4697_v43 = vpop.f32.mrb[53].mxu0 }
 0x591   :  { %v1202_v61 = vpop.f32.mrb[22].mxu1 }
 0x592   :  { %v1203_v47 = vadd.f32 %v1202_v61, %v1089_v4  ;;  %v4702_v58 = vpop.f32.mrb[23].mxu1 }
 0x594   :  { %v1246_v53 = vadd.f32 %v1203_v47, %v7213_v59 }
 0x595   :  { %v1207_v55 = vpop.f32.mrb[24].mxu1 }
 0x596   :  { %v1255_v20 = vrot.slane %v1246_v53, 4  ;;  %v1208_v41 = vadd.f32 %v1207_v55, %v1094_v9  ;;  %v4705_v22 = vpop.f32.mrb[25].mxu1 }
 0x598   :  { %v1256_v40 = vmax.f32 %v1246_v53, %v1255_v20 }
 0x599   :  { %v1212_v24 = vpop.f32.mrb[26].mxu1 }
 0x59a   :  { %v1257_v21 = vrot.slane %v1256_v40, 2  ;;  %v1213_v42 = vadd.f32 %v1212_v24, %v1099_v12  ;;  %v4708_v2 = vpop.f32.mrb[27].mxu1 }
 0x59c   :  { %v1258_v6 = vmax.f32 %v1256_v40, %v1257_v21 }
 0x59d   :  { %v1217_v11 = vpop.f32.mrb[28].mxu1 }
 0x59e   :  { %v1259_v14 = vrot.slane %v1258_v6, 1  ;;  %v1218_v49 = vadd.f32 %v1217_v11, %v1104_v15  ;;  %v4711_v3 = vpop.f32.mrb[29].mxu1  ;;  %v7214_v11 = vmov 1.0  }
 0x5a0   :  { %v1260_v5 = vmax.f32 %v1258_v6, %v1259_v14  ;;  %v7215_v14 = vld [vmem:[#allocation5_spill] sm:$0xff] }
 0x5a1   :  { %v1222_v13 = vpop.f32.mrb[30].mxu1 }
 0x5a2   :  { %vm1261_vm3 = vcmp.ge.f32.partialorder %v1246_v53, %v1260_v5  ;;  %v1223_v4 = vadd.f32 %v1222_v13, %v1109_v50  ;;  %v4714_v51 = vpop.f32.mrb[31].mxu1  ;;  %v7217_v13 = vld [vmem:[#allocation6_spill] sm:$0xff] }
 0x5a3   :  { %v1262_v43 = vsel %vm1261_vm3, %v5758_v38, 8  ;;  %v7218_v51 = vld [vmem:[#allocation7_spill] sm:$0xff] }
 0x5a4   :  { %v1263_v61 = vrot.slane %v1262_v43, 4 }
 0x5a5   :  { %v1227_v9 = vpop.f32.mrb[32].mxu1 }
 0x5a6   :  { %vm1264_vm4 = vcmp.lt.s32.totalorder %v1262_v43, %v1263_v61  ;;  %v1228_v47 = vadd.f32 %v1227_v9, %v1114_v17  ;;  %v4717_v58 = vpop.f32.mrb[33].mxu1 }
 0x5a7   :  { %v1265_v55 = vsel %vm1264_vm4, %v1262_v43, %v1263_v61  ;;  %v1248_v43 = vadd.f32 %v1213_v42, %v7218_v51  ;;  %v7219_v58 = vld [vmem:[#allocation9_spill] sm:$0xff] }
 0x5a8   :  { %v1266_v12 = vrot.slane %v1265_v55, 2 }
 0x5a9   :  { %v1232_v20 = vpop.f32.mrb[34].mxu1 }
 0x5aa   :  { %v1233_v22 = vadd.f32 %v1232_v20, %v1119_v8  ;;  %v4720_v40 = vpop.f32.mrb[35].mxu1  ;;  %vm1267_vm5 = vcmp.lt.s32.totalorder %v1265_v55, %v1266_v12  ;;  %v7216_v8 = vld [vmem:[#allocation3_spill] sm:$0xff] }
 0x5ab   :  { %v1268_v15 = vsel %vm1267_vm5, %v1265_v55, %v1266_v12  ;;  %v1249_v55 = vadd.f32 %v1218_v49, %v7219_v58  ;;  %v7220_v12 = vld [vmem:[#allocation8_spill] sm:$0xff] }
 0x5ac   :  { %v1269_v24 = vrot.slane %v1268_v15, 1  ;;  %v1250_v20 = vadd.f32 %v1223_v4, %v7220_v12 }
 0x5ad   :  { %v1237_v21 = vpop.f32.mrb[36].mxu1 }
 0x5ae   :  { %v1238_v2 = vadd.f32 %v1237_v21, %v1124_v16  ;;  %v4723_v53 = vpop.f32.mrb[37].mxu1  ;;  %vm1270_vm6 = vcmp.lt.s32.totalorder %v1268_v15, %v1269_v24  ;;  %v1247_v16 = vadd.f32 %v1208_v41, %v7217_v13  ;;  %v1252_v21 = vadd.f32 %v1233_v22, %v5787_v7 }
 0x5af   :  { %v1271_v50 = vsel %vm1270_vm6, %v1268_v15, %v1269_v24  ;;  %v1251_v24 = vadd.f32 %v1228_v47, %v5789_v39 }
 0x5b0   :  { %vm1272_vm8 = vcmp.eq.s32.totalorder %v5758_v38, %v1271_v50  ;;  %v1253_v53 = vadd.f32 %v1238_v2, %v5816_v54 }
 0x5b1   :  { %v1242_v6 = vpop.f32.mrb[38].mxu1  ;;  %4728 = vmatpush3.msk.msra.mxu0 %vm1272_vm8, %v7214_v11 }
 0x5b2   :  { %v1243_v17 = vadd.f32 %v1242_v6, %v1129_v45  ;;  %4730 = vmatmul.mubr.msk.f32.vlgmr.msra.gmra.mrb[54].mxu0 %vm485_vm7, %v7215_v14  ;;  %v4726_v3 = vpop.f32.mrb[39].mxu1 }
 0x5b3   :  { %4745 = vmatprep.mubr.msk.f32.mxu0 %vm183_vm1, %v7216_v8 }
 0x5b4   :  { %v1254_v50 = vadd.f32 %v1243_v17, %v5812_v60 }
 0x685   :  { %v6072_v5 = vpop.f32.mrb[54].mxu0 }
 0x686   :  { %v6078_v61 = vrot.slane %v6072_v5, %v5782_v44  ;;  %v6082_v45 = vrot.slane %v6072_v5, %v5785_v1  ;;  %v4731_v9 = vpop.f32.mrb[55].mxu0 }
 0x688   :  { %v1349_v40 = vmul.f32 %v6078_v61, %v1247_v16  ;;  %v1350_v15 = vmul.f32 %v6078_v61, %v1248_v43  ;;  %v1355_v41 = vmul.f32 %v6082_v45, %v1249_v55  ;;  %v1356_v42 = vmul.f32 %v6082_v45, %v1250_v20 }
 0x68a   :  { %v1357_v6 = vadd.f32 %v1355_v41, %v1349_v40  ;;  %v1358_v49 = vadd.f32 %v1356_v42, %v1350_v15 }
 0x68c   :  { %v1359_v14 = vmul.f32 %v1357_v6, %v1251_v24  ;;  %v1360_v4 = vmul.f32 %v1358_v49, %v1252_v21  ;;  %v1361_v3 = vmul.f32 %v1357_v6, %v1253_v53  ;;  %v1362_v8 = vmul.f32 %v1358_v49, %v1254_v50 }
 0x68e   :  { %v5240_v16 = vpack.c.bf16 %v1360_v4, %v1359_v14  ;;  %v5243_v43 = vpack.c.bf16 %v1362_v8, %v1361_v3  ;;  %v1461_v4 = vmul.f32 %v6082_v45, %v6019_v46 }
 0x690   :  { %5241 = vmatpush3.bf16.msra.mxu1 %v5240_v16 }
 0x691   :  { %5242 = vmatprep.subr.bf16.mxu1 %v7196_v18 }
 0x694   :  { %5244 = vmatpush3.bf16.msra.mxu1 %v5243_v43  ;;  %v1463_v43 = vrot.slane %v1461_v4, 2 }
 0x695   :  { %5245 = vmatprep.subr.bf16.mxu1 %v7196_v18 }
 0x697   :  { %4741 = vmatmul.mubr.msk.f32.vlgmr.msra.gmra.mrb[40].mxu1 %vm577_vm9, %v5824_v52 }
 0x698   :  { %4801 = vmatprep.mubr.msk.f32.mxu1 %vm5444_vm2, %v7197_v0 }
 0x76a   :  { %v1429_v47 = vpop.f32.mrb[40].mxu1 }
 0x76b   :  { %v1433_v22 = vsel %vm651_vm10, %v1429_v47, -inf  ;;  %v4742_v2 = vpop.f32.mrb[41].mxu1 }
 0x76c   :  { %v1434_v17 = vrot.slane %v1433_v22, 4 }
 0x76e   :  { %v1435_v9 = vmax.f32 %v1433_v22, %v1434_v17  ;;  %v1455_v22 = vmul.f32 %v6078_v61, %v6019_v46 }
 0x770   :  { %v1436_v55 = vrot.slane %v1435_v9, 2  ;;  %v1465_v17 = vadd.f32 %v1463_v43, %v1455_v22 }
 0x772   :  { %v1437_v20 = vmax.f32 %v1435_v9, %v1436_v55 }
 0x774   :  { %v1438_v40 = vrot.slane %v1437_v20, 1 }
 0x776   :  { %v1439_v15 = vmax.f32 %v1437_v20, %v1438_v40  ;;  %v6119_v20 = vld [vmem:[%s7119_s1 + $0xa8] sm:$0xff]  ;;  %v6129_v40 = vld [vmem:[%s7119_s1 + $0xb8] sm:$0xff] }
 0x778   :  { %vm1440_vm11 = vcmp.ge.f32.partialorder %v1429_v47, %v1439_v15  ;;  %v6138_v15 = vld [vmem:[%s7119_s1 + $0xc8] sm:$0xff] }
 0x779   :  { %v1441_v41 = vsel %vm1440_vm11, %v5758_v38, 2 }
 0x77a   :  { %v1442_v42 = vsel %vm651_vm10, %v1441_v41, 2147483647 }
 0x77b   :  { %v1443_v24 = vrot.slane %v1442_v42, 4 }
 0x77d   :  { %vm1444_vm12 = vcmp.lt.s32.totalorder %v1442_v42, %v1443_v24 }
 0x77e   :  { %v1445_v52 = vsel %vm1444_vm12, %v1442_v42, %v1443_v24 }
 0x77f   :  { %v1446_v21 = vrot.slane %v1445_v52, 2 }
 0x781   :  { %vm1447_vm13 = vcmp.lt.s32.totalorder %v1445_v52, %v1446_v21 }
 0x782   :  { %v1448_v53 = vsel %vm1447_vm13, %v1445_v52, %v1446_v21 }
 0x783   :  { %v1449_v50 = vrot.slane %v1448_v53, 1 }
 0x785   :  { %vm1450_vm14 = vcmp.lt.s32.totalorder %v1448_v53, %v1449_v50 }
 0x786   :  { %v1451_v6 = vsel %vm1450_vm14, %v1448_v53, %v1449_v50 }
 0x787   :  { %vm1452_vm15 = vcmp.eq.s32.totalorder %v5758_v38, %v1451_v6 }
 0x788   :  { %v4085_v49 = vsel %vm1452_vm15, 1.0, %v7197_v0 }
 0x789   :  { %v1459_v14 = vrot.slane %v4085_v49, %v5782_v44  ;;  %v1469_v3 = vrot.slane %v4085_v49, %v5785_v1 }
 0x78b   :  { %v1470_v8 = vmul.f32 %v1469_v3, %v6019_v46  ;;  %v1460_v16 = vmul.f32 %v1459_v14, %v6019_v46 }
 0x78d   :  { %v1472_v47 = vrot.slane %v1470_v8, 2 }
 0x78f   :  { %v1474_v2 = vadd.f32 %v1472_v47, %v1460_v16 }
 0x791   :  { %v1476_v9 = vrot.slane %v1474_v2, 6 }
 0x793   :  { %v1478_v55 = vsel %vm651_vm10, %v1465_v17, %v1476_v9 }
 0x794   :  { %4743 = vmatprep.subr.msk.mxu0 %vm211_vm0, %v1478_v55 }
 0x795   :  { %4744 = vmatpush3.msk.msra.mxu0 %vm211_vm0, %v1478_v55 }
 0x796   :  { %4746 = vmatmul.mubr.msk.f32.vlgmr.msra.gmra.mrb[56].mxu0 %vm183_vm1, %v6119_v20  ;;  %4804 = vmatprep.subr.mxu0 %v7197_v0 }
 0x797   :  { %4748 = vmatprep.mubr.msk.f32.mxu0 %vm183_vm1, %v5710_v31  ;;  %v6147_v31 = vld [vmem:[%s7119_s1 + $0xd8] sm:$0xff] }
 0x79a   :  { %4749 = vmatmul.mubr.msk.f32.gmra.mrb[58].mxu0 %vm183_vm1, %v6129_v40 }
 0x79b   :  { %4751 = vmatprep.mubr.msk.f32.mxu0 %vm183_vm1, %v5716_v32  ;;  %v6156_v32 = vld [vmem:[%s7119_s1 + $0xe8] sm:$0xff] }
 0x79e   :  { %4752 = vmatmul.mubr.msk.f32.gmra.mrb[60].mxu0 %vm183_vm1, %v6138_v15 }
 0x79f   :  { %4754 = vmatprep.mubr.msk.f32.mxu0 %vm183_vm1, %v5722_v33  ;;  %v6165_v33 = vld [vmem:[%s7119_s1 + $0xf8] sm:$0xff] }
 0x7a2   :  { %4755 = vmatmul.mubr.msk.f32.gmra.mrb[62].mxu0 %vm183_vm1, %v6147_v31 }
 0x7a3   :  { %4757 = vmatprep.mubr.msk.f32.mxu0 %vm183_vm1, %v5728_v34  ;;  %v6174_v34 = vld [vmem:[%s7119_s1 + $0x108] sm:$0xff] }
 0x7a6   :  { %4758 = vmatmul.mubr.msk.f32.gmra.mrb[64].mxu0 %vm183_vm1, %v6156_v32 }
 0x7a7   :  { %4760 = vmatprep.mubr.msk.f32.mxu0 %vm183_vm1, %v5734_v35  ;;  %v6183_v35 = vld [vmem:[%s7119_s1 + $0x118] sm:$0xff] }
 0x7aa   :  { %4761 = vmatmul.mubr.msk.f32.gmra.mrb[66].mxu0 %vm183_vm1, %v6165_v33 }
 0x7ab   :  { %4763 = vmatprep.mubr.msk.f32.mxu0 %vm183_vm1, %v5740_v36 }
 0x7ae   :  { %4764 = vmatmul.mubr.msk.f32.gmra.mrb[68].mxu0 %vm183_vm1, %v6174_v34 }
 0x7af   :  { %4766 = vmatprep.mubr.msk.f32.mxu0 %vm183_vm1, %v5746_v37 }
 0x7b2   :  { %4767 = vmatmul.mubr.msk.f32.gmra.mrb[70].mxu0 %vm183_vm1, %v6183_v35 }
 0x7b3   :  { %4806 = vmatprep.mubr.msk.f32.mxu0 %vm5444_vm2, %v7197_v0 }
 0x869   :  { %v4747_v36 = vpop.f32.mrb[56].mxu0 }
 0x86a   :  { %v1554_v41 = vadd.f32 %v4747_v36, %v5883_v23  ;;  %v1548_v42 = vpop.f32.mrb[57].mxu0 }
 0x86b   :  { %v1549_v24 = vadd.f32 %v1548_v42, %v5885_v25 }
 0x86c   :  { %v1628_v52 = vmax.f32 %v1554_v41, 0.0  ;;  %v7221_v41 = vld [vmem:[#allocation10_spill] sm:$0xff] }
 0x86d   :  { %v1627_v21 = vmax.f32 %v1549_v24, 0.0  ;;  %v4750_v37 = vpop.f32.mrb[58].mxu0 }
 0x86e   :  { %v1564_v53 = vadd.f32 %v4750_v37, %v5887_v26  ;;  %v1558_v50 = vpop.f32.mrb[59].mxu0  ;;  %v7222_v37 = vld [vmem:[#allocation11_spill] sm:$0xff] }
 0x86f   :  { %v5246_v6 = vpack.c.bf16 %v1628_v52, %v1627_v21  ;;  %v1559_v49 = vadd.f32 %v1558_v50, %v5889_v27 }
 0x870   :  { %v1630_v14 = vmax.f32 %v1564_v53, 0.0 }
 0x871   :  { %v1629_v4 = vmax.f32 %v1559_v49, 0.0  ;;  %v4753_v3 = vpop.f32.mrb[60].mxu0  ;;  %5247 = vmatpush3.bf16.msra.mxu1 %v5246_v6 }
 0x872   :  { %v1574_v8 = vadd.f32 %v4753_v3, %v5891_v28  ;;  %v1568_v16 = vpop.f32.mrb[61].mxu0  ;;  %5248 = vmatprep.subr.bf16.mxu1 %v7196_v18 }
 0x873   :  { %v5249_v43 = vpack.c.bf16 %v1630_v14, %v1629_v4  ;;  %v1569_v47 = vadd.f32 %v1568_v16, %v5893_v29 }
 0x874   :  { %v1632_v22 = vmax.f32 %v1574_v8, 0.0  ;;  %v7223_v8 = vld [vmem:[#allocation13_spill] sm:$0xff] }
 0x875   :  { %v1631_v2 = vmax.f32 %v1569_v47, 0.0  ;;  %v4756_v17 = vpop.f32.mrb[62].mxu0  ;;  %5250 = vmatpush3.bf16.msra.mxu1 %v5249_v43 }
 0x876   :  { %v1584_v9 = vadd.f32 %v4756_v17, %v5897_v56  ;;  %v1578_v55 = vpop.f32.mrb[63].mxu0  ;;  %5251 = vmatprep.subr.bf16.mxu1 %v7196_v18 }
 0x877   :  { %v5252_v36 = vpack.c.bf16 %v1632_v22, %v1631_v2  ;;  %v1579_v42 = vadd.f32 %v1578_v55, %v7221_v41  ;;  %v7224_v55 = vld [vmem:[#allocation15_spill] sm:$0xff] }
 0x878   :  { %v1634_v24 = vmax.f32 %v1584_v9, 0.0 }
 0x879   :  { %v1633_v52 = vmax.f32 %v1579_v42, 0.0  ;;  %v4759_v21 = vpop.f32.mrb[64].mxu0  ;;  %5253 = vmatpush3.bf16.msra.mxu1 %v5252_v36 }
 0x87a   :  { %v1594_v53 = vadd.f32 %v4759_v21, %v7222_v37  ;;  %v1588_v50 = vpop.f32.mrb[65].mxu0  ;;  %5254 = vmatprep.subr.bf16.mxu1 %v7196_v18 }
 0x87b   :  { %v5255_v6 = vpack.c.bf16 %v1634_v24, %v1633_v52  ;;  %v1589_v49 = vadd.f32 %v1588_v50, %v5908_v63 }
 0x87c   :  { %v1636_v14 = vmax.f32 %v1594_v53, 0.0 }
 0x87d   :  { %v1635_v4 = vmax.f32 %v1589_v49, 0.0  ;;  %v4762_v3 = vpop.f32.mrb[66].mxu0  ;;  %5256 = vmatpush3.bf16.msra.mxu1 %v5255_v6 }
 0x87e   :  { %v1604_v16 = vadd.f32 %v4762_v3, %v7223_v8  ;;  %v1598_v43 = vpop.f32.mrb[67].mxu0  ;;  %5257 = vmatprep.subr.bf16.mxu1 %v7196_v18 }
 0x87f   :  { %v5258_v47 = vpack.c.bf16 %v1636_v14, %v1635_v4  ;;  %v1599_v22 = vadd.f32 %v1598_v43, %v5915_v62 }
 0x880   :  { %v1638_v2 = vmax.f32 %v1604_v16, 0.0 }
 0x881   :  { %v1637_v17 = vmax.f32 %v1599_v22, 0.0  ;;  %v4765_v9 = vpop.f32.mrb[68].mxu0  ;;  %5259 = vmatpush3.bf16.msra.mxu1 %v5258_v47  ;;  %v1768_v47 = vld [vmem:[%s7118_s0 + $0xc] sm:$0xf] }
 0x882   :  { %v1614_v36 = vadd.f32 %v4765_v9, %v7224_v55  ;;  %v1608_v42 = vpop.f32.mrb[69].mxu0  ;;  %5260 = vmatprep.subr.bf16.mxu1 %v7196_v18  ;;  %4805 = vmatpush3.msk.msra.mxu0 %vm211_vm0, %v1768_v47  ;;  %v6223_v22 = vld [vmem:[%s7119_s1 + $0x48] sm:$0xff]  ;;  %v1739_v47 = vrot.slane %v6072_v5, %v5998_v10 }
 0x883   :  { %v5261_v24 = vpack.c.bf16 %v1638_v2, %v1637_v17  ;;  %v1609_v52 = vadd.f32 %v1608_v42, %v5925_v19  ;;  %7225 = vst [vmem:[#allocation2_spill] sm:$0xff] %v6223_v22  ;;  %4807 = vmatmul.mubr.msk.f32.vlgmr.msra.gmra.mrb[72].mxu0 %vm183_vm1, %v6223_v22  ;;  %4862 = vmatprep.subr.mxu0 %v7197_v0  ;;  %v6242_v2 = vld [vmem:[%s7119_s1 + $0x58] sm:$0xff]  ;;  %v6251_v17 = vld [vmem:[%s7119_s1 + $0x60] sm:$0xff]  ;;  %v6260_v9 = vld [vmem:[%s7119_s1 + $0x68] sm:$0xff] }
 0x884   :  { %v1640_v21 = vmax.f32 %v1614_v36, 0.0  ;;  %4809 = vmatprep.mubr.msk.f32.mxu0 %vm5444_vm2, %v7197_v0  ;;  %7227 = vst [vmem:[#allocation5_spill] sm:$0xff] %v6242_v2  ;;  %7228 = vst [vmem:[#allocation3_spill] sm:$0xff] %v6251_v17  ;;  %v6269_v36 = vld [vmem:[%s7119_s1 + $0x70] sm:$0xff]  ;;  %v6278_v42 = vld [vmem:[%s7119_s1 + $0x78] sm:$0xff] }
 0x885   :  { %v1639_v53 = vmax.f32 %v1609_v52, 0.0  ;;  %v4768_v50 = vpop.f32.mrb[70].mxu0  ;;  %5262 = vmatpush3.bf16.msra.mxu1 %v5261_v24  ;;  %7229 = vst [vmem:[#allocation6_spill] sm:$0xff] %v6260_v9  ;;  %7230 = vst [vmem:[#allocation7_spill] sm:$0xff] %v6269_v36  ;;  %v6287_v24 = vld [vmem:[%s7119_s1 + $0x80] sm:$0xff]  ;;  %v6296_v52 = vld [vmem:[%s7119_s1 + $0x88] sm:$0xff] }
 0x886   :  { %v1624_v6 = vadd.f32 %v4768_v50, %v5930_v57  ;;  %v1618_v49 = vpop.f32.mrb[71].mxu0  ;;  %5263 = vmatprep.subr.bf16.mxu1 %v7196_v18  ;;  %7231 = vst [vmem:[#allocation9_spill] sm:$0xff] %v6278_v42  ;;  %7232 = vst [vmem:[#allocation8_spill] sm:$0xff] %v6287_v24  ;;  %v7234_v50 = vld [vmem:[#allocation19_spill] sm:$0xff] }
 0x887   :  { %v5264_v14 = vpack.c.bf16 %v1640_v21, %v1639_v53  ;;  %v1619_v4 = vadd.f32 %v1618_v49, %v5932_v30  ;;  %7233 = vst [vmem:[#allocation10_spill] sm:$0xff] %v6296_v52  ;;  %v1746_v21 = vsub.f32 1.0, %v6072_v5  ;;  %v7235_v49 = vld [vmem:[#allocation23_spill] sm:$0xff] }
 0x888   :  { %v1642_v3 = vmax.f32 %v1624_v6, 0.0  ;;  %v1716_v6 = vrot.slane %v6072_v5, %v7234_v50 }
 0x889   :  { %v1641_v16 = vmax.f32 %v1619_v4, 0.0  ;;  %5265 = vmatpush3.bf16.msra.mxu1 %v5264_v14  ;;  %v7236_v4 = vld [vmem:[#allocation20_spill] sm:$0xff] }
 0x88a   :  { %5266 = vmatprep.subr.bf16.mxu1 %v7196_v18 }
 0x88b   :  { %v5267_v43 = vpack.c.bf16 %v1642_v3, %v1641_v16  ;;  %v1721_v3 = vrot.slane %v6072_v5, %v7236_v4  ;;  %v7237_v16 = vld [vmem:[#allocation21_spill] sm:$0xff] }
 0x88d   :  { %5268 = vmatpush3.bf16.msra.mxu1 %v5267_v43  ;;  %v1730_v43 = vrot.slane %v6072_v5, %v7237_v16 }
 0x88e   :  { %4833 = vmatprep.subr.mxu1 %v7197_v0 }
 0x890   :  { %4802 = vmatmul.mubr.f32.vlgmr.msra.gmra.mrb[42].mxu1 %v5941_v48  ;;  %v6233_v48 = vld [vmem:[%s7119_s1 + $0x50] sm:$0xff] }
 0x891   :  { %4835 = vmatprep.mubr.msk.f32.mxu1 %vm5444_vm2, %v7197_v0  ;;  %7226 = vst [vmem:[#allocation4_spill] sm:$0xff] %v6233_v48  ;;  %4810 = vmatmul.mubr.msk.f32.gmra.mrb[74].mxu0 %vm183_vm1, %v6233_v48 }
 0x892   :  { %4812 = vmatprep.mubr.msk.f32.mxu0 %vm5444_vm2, %v7197_v0 }
 0x895   :  { %4813 = vmatmul.mubr.msk.f32.gmra.mrb[76].mxu0 %vm183_vm1, %v6242_v2 }
 0x896   :  { %4815 = vmatprep.mubr.msk.f32.mxu0 %vm5444_vm2, %v7197_v0 }
 0x899   :  { %4816 = vmatmul.mubr.msk.f32.gmra.mrb[78].mxu0 %vm183_vm1, %v6251_v17  ;;  %v1757_v17 = vrot.slane %v1746_v21, %v5785_v1 }
 0x89a   :  { %4818 = vmatprep.mubr.msk.f32.mxu0 %vm5444_vm2, %v7197_v0 }
 0x89b   :  { %v1758_v22 = vmul.f32 %v1757_v17, %v6019_v46  ;;  %v6385_v17 = vld [vmem:[%s7119_s1 + $0x30] sm:$0xff] }
 0x89c   :  { %7244 = vst [vmem:[#allocation29_spill] sm:$0xff] %v6385_v17 }
 0x89d   :  { %4819 = vmatmul.mubr.msk.f32.gmra.mrb[80].mxu0 %vm183_vm1, %v6260_v9 }
 0x89e   :  { %4821 = vmatprep.mubr.msk.f32.mxu0 %vm5444_vm2, %v7197_v0 }
 0x8a1   :  { %4822 = vmatmul.mubr.msk.f32.gmra.mrb[82].mxu0 %vm183_vm1, %v6269_v36 }
 0x8a2   :  { %4824 = vmatprep.mubr.msk.f32.mxu0 %vm5444_vm2, %v7197_v0 }
 0x8a5   :  { %4825 = vmatmul.mubr.msk.f32.gmra.mrb[84].mxu0 %vm183_vm1, %v6278_v42 }
 0x8a6   :  { %4827 = vmatprep.mubr.msk.f32.mxu0 %vm5444_vm2, %v7197_v0 }
 0x8a9   :  { %4828 = vmatmul.mubr.msk.f32.gmra.mrb[86].mxu0 %vm183_vm1, %v6287_v24 }
 0x8aa   :  { %4830 = vmatprep.mubr.msk.f32.mxu0 %vm5444_vm2, %v7197_v0 }
 0x8ad   :  { %4831 = vmatmul.mubr.msk.f32.gmra.mrb[88].mxu0 %vm183_vm1, %v6296_v52 }
 0x8ae   :  { %4864 = vmatprep.mubr.msk.f32.mxu0 %vm5444_vm2, %v7197_v0 }
 0x963   :  { %v1709_v53 = vpop.f32.mrb[42].mxu1 }
 0x964   :  { %v1710_v14 = vadd.f32 %v1709_v53, %v7235_v49  ;;  %v4803_v52 = vpop.f32.mrb[43].mxu1  ;;  %v1750_v53 = vrot.slane %v1746_v21, %v5782_v44 }
 0x966   :  { %v1717_v24 = vmul.f32 %v1716_v6, %v1710_v14  ;;  %v1722_v42 = vmul.f32 %v1721_v3, %v1710_v14  ;;  %v1731_v36 = vmul.f32 %v1730_v43, %v1710_v14  ;;  %v1740_v9 = vmul.f32 %v1739_v47, %v1710_v14 }
 0x967   :  { %v1751_v5 = vmul.f32 %v1750_v53, %v6019_v46  ;;  %v1760_v6 = vrot.slane %v1758_v22, 2  ;;  %v6330_v46 = vld [vmem:[%s7119_s1] sm:$0xff] }
 0x968   :  { %v1724_v2 = vrot.slane %v1722_v42, 2  ;;  %v1733_v48 = vrot.slane %v1731_v36, 4  ;;  %v1742_v4 = vrot.slane %v1740_v9, 6  ;;  %7238 = vst [vmem:[#allocation11_spill] sm:$0xff] %v6330_v46  ;;  %v6367_v22 = vld [vmem:[%s7119_s1 + $0x20] sm:$0xff]  ;;  %v6394_v9 = vld [vmem:[%s7119_s1 + $0x38] sm:$0xff] }
 0x969   :  { %7242 = vst [vmem:[#allocation27_spill] sm:$0xff] %v6367_v22  ;;  %7245 = vst [vmem:[#allocation30_spill] sm:$0xff] %v6394_v9  ;;  %v6403_v36 = vld [vmem:[%s7119_s1 + $0x40] sm:$0xff]  ;;  %v1838_v42 = vpop.f32.mrb[72].mxu0 }
 0x96a   :  { %v1726_v50 = vadd.f32 %v1724_v2, %v1717_v24  ;;  %7246 = vst [vmem:[#allocation31_spill] sm:$0xff] %v6403_v36  ;;  %v4808_v24 = vpop.f32.mrb[73].mxu0 }
 0x96b   :  { %v1843_v21 = vpop.f32.mrb[74].mxu0 }
 0x96c   :  { %v1735_v49 = vadd.f32 %v1733_v48, %v1726_v50  ;;  %v6376_v48 = vld [vmem:[%s7119_s1 + $0x28] sm:$0xff]  ;;  %v4811_v50 = vpop.f32.mrb[75].mxu0 }
 0x96d   :  { %7243 = vst [vmem:[#allocation28_spill] sm:$0xff] %v6376_v48 }
 0x96e   :  { %v1744_v16 = vadd.f32 %v1742_v4, %v1735_v49  ;;  %v1848_v49 = vpop.f32.mrb[76].mxu0 }
 0x96f   :  { %v4814_v4 = vpop.f32.mrb[77].mxu0 }
 0x970   :  { %v1745_v30 = vmul.f32 %v1744_v16, %v6078_v61  ;;  %v1753_v52 = vmul.f32 %v1744_v16, %v6082_v45  ;;  %v6349_v61 = vld [vmem:[%s7119_s1 + $0x10] sm:$0xff]  ;;  %v6358_v45 = vld [vmem:[%s7119_s1 + $0x18] sm:$0xff]  ;;  %v1853_v16 = vpop.f32.mrb[78].mxu0 }
 0x971   :  { %7240 = vst [vmem:[#allocation25_spill] sm:$0xff] %v6349_v61  ;;  %7241 = vst [vmem:[#allocation26_spill] sm:$0xff] %v6358_v45  ;;  %v4817_v47 = vpop.f32.mrb[79].mxu0 }
 0x972   :  { %v1752_v14 = vadd.f32 %v1751_v5, %v1745_v30  ;;  %v1762_v3 = vadd.f32 %v1760_v6, %v1753_v52  ;;  %v6340_v30 = vld [vmem:[%s7119_s1 + $0x8] sm:$0xff]  ;;  %v1858_v53 = vpop.f32.mrb[80].mxu0 }
 0x973   :  { %7239 = vst [vmem:[#allocation24_spill] sm:$0xff] %v6340_v30  ;;  %v4820_v5 = vpop.f32.mrb[81].mxu0 }
 0x974   :  { %v1764_v43 = vrot.slane %v1762_v3, 6  ;;  %v1863_v52 = vpop.f32.mrb[82].mxu0 }
 0x975   :  { %v4823_v6 = vpop.f32.mrb[83].mxu0 }
 0x976   :  { %v6319_v2 = vsel %vm651_vm10, %v1752_v14, %v1764_v43 }
 0x977   :  { %4834 = vmatpush3.msk.msra.mxu1 %vm211_vm0, %v6319_v2  ;;  %1767 = vst [vmem:[%s7120_s2 + $0x4] sm:$0xf] %v6319_v2 }
 0x978   :  { %4836 = vmatmul.mubr.msk.f32.vlgmr.msra.gmra.mrb[44].mxu1 %vm183_vm1, %v6330_v46  ;;  %5269 = vmatprep.subr.bf16.mxu1 %v7196_v18  ;;  %v1868_v14 = vpop.f32.mrb[84].mxu0 }
 0x979   :  { %4838 = vmatprep.mubr.msk.f32.mxu1 %vm5444_vm2, %v7197_v0  ;;  %v4826_v3 = vpop.f32.mrb[85].mxu0 }
 0x97c   :  { %4839 = vmatmul.mubr.msk.f32.gmra.mrb[46].mxu1 %vm183_vm1, %v6340_v30  ;;  %v1873_v43 = vpop.f32.mrb[86].mxu0 }
 0x97d   :  { %4841 = vmatprep.mubr.msk.f32.mxu1 %vm5444_vm2, %v7197_v0 }
 0x980   :  { %4842 = vmatmul.mubr.msk.f32.gmra.mrb[48].mxu1 %vm183_vm1, %v6349_v61 }
 0x981   :  { %4844 = vmatprep.mubr.msk.f32.mxu1 %vm5444_vm2, %v7197_v0 }
 0x984   :  { %4845 = vmatmul.mubr.msk.f32.gmra.mrb[50].mxu1 %vm183_vm1, %v6358_v45 }
 0x985   :  { %4847 = vmatprep.mubr.msk.f32.mxu1 %vm5444_vm2, %v7197_v0 }
 0x988   :  { %4848 = vmatmul.mubr.msk.f32.gmra.mrb[52].mxu1 %vm183_vm1, %v6367_v22 }
 0x989   :  { %4850 = vmatprep.mubr.msk.f32.mxu1 %vm5444_vm2, %v7197_v0 }
 0x98c   :  { %4851 = vmatmul.mubr.msk.f32.gmra.mrb[54].mxu1 %vm183_vm1, %v6376_v48 }
 0x98d   :  { %4853 = vmatprep.mubr.msk.f32.mxu1 %vm5444_vm2, %v7197_v0 }
 0x990   :  { %4854 = vmatmul.mubr.msk.f32.gmra.mrb[56].mxu1 %vm183_vm1, %v6385_v17 }
 0x991   :  { %4856 = vmatprep.mubr.msk.f32.mxu1 %vm5444_vm2, %v7197_v0 }
 0x994   :  { %4857 = vmatmul.mubr.msk.f32.gmra.mrb[58].mxu1 %vm183_vm1, %v6394_v9  ;;  %v4829_v9 = vpop.f32.mrb[87].mxu0 }
 0x995   :  { %4859 = vmatprep.mubr.msk.f32.mxu1 %vm5444_vm2, %v7197_v0 }
 0x998   :  { %4860 = vmatmul.mubr.msk.f32.gmra.mrb[60].mxu1 %vm183_vm1, %v6403_v36  ;;  %v1878_v36 = vpop.f32.mrb[88].mxu0 }
 0x999   :  { %4875 = vmatprep.mubr.msk.f32.mxu1 %vm5444_vm2, %v7197_v0  ;;  %v4832_v17 = vpop.f32.mrb[89].mxu0 }
 0xa4b   :  { %v1951_v48 = vpop.f32.mrb[44].mxu1 }
 0xa4c   :  { %v1952_v22 = vadd.f32 %v1951_v48, %v1838_v42  ;;  %v4837_v45 = vpop.f32.mrb[45].mxu1 }
 0xa4e   :  { %v1995_v24 = vadd.f32 %v1952_v22, %v7213_v59 }
 0xa4f   :  { %v1956_v50 = vpop.f32.mrb[46].mxu1 }
 0xa50   :  { %v2004_v61 = vrot.slane %v1995_v24, 4  ;;  %v1957_v4 = vadd.f32 %v1956_v50, %v1843_v21  ;;  %v4840_v30 = vpop.f32.mrb[47].mxu1 }
 0xa52   :  { %v2005_v47 = vmax.f32 %v1995_v24, %v2004_v61 }
 0xa53   :  { %v1961_v46 = vpop.f32.mrb[48].mxu1 }
 0xa54   :  { %v2006_v5 = vrot.slane %v2005_v47, 2  ;;  %v1962_v10 = vadd.f32 %v1961_v46, %v1848_v49  ;;  %v4843_v6 = vpop.f32.mrb[49].mxu1 }
 0xa55   :  { %v6416_v6 = vld [vmem:[%s7119_s1 + $0x90] sm:$0x3f] }
 0xa56   :  { %v2007_v57 = vmax.f32 %v2005_v47, %v2006_v5 }
 0xa57   :  { %v1966_v3 = vpop.f32.mrb[50].mxu1 }
 0xa58   :  { %v2008_v19 = vrot.slane %v2007_v57, 1  ;;  %v1967_v9 = vadd.f32 %v1966_v3, %v1853_v16  ;;  %v4846_v55 = vpop.f32.mrb[51].mxu1 }
 0xa5a   :  { %v2009_v17 = vmax.f32 %v2007_v57, %v2008_v19 }
 0xa5b   :  { %v1971_v62 = vpop.f32.mrb[52].mxu1 }
 0xa5c   :  { %vm2010_vm3 = vcmp.ge.f32.partialorder %v1995_v24, %v2009_v17  ;;  %v1972_v45 = vadd.f32 %v1971_v62, %v1858_v53  ;;  %v4849_v48 = vpop.f32.mrb[53].mxu1  ;;  %v1997_v17 = vadd.f32 %v1962_v10, %v7218_v51 }
 0xa5d   :  { %v2011_v22 = vsel %vm2010_vm3, %v5758_v38, 8 }
 0xa5e   :  { %v2012_v42 = vrot.slane %v2011_v22, 4 }
 0xa5f   :  { %v1976_v21 = vpop.f32.mrb[54].mxu1 }
 0xa60   :  { %vm2013_vm4 = vcmp.lt.s32.totalorder %v2011_v22, %v2012_v42  ;;  %v1977_v30 = vadd.f32 %v1976_v21, %v1863_v52  ;;  %v4852_v61 = vpop.f32.mrb[55].mxu1  ;;  %v1998_v21 = vadd.f32 %v1967_v9, %v7219_v58 }
 0xa61   :  { %v2014_v50 = vsel %vm2013_vm4, %v2011_v22, %v2012_v42  ;;  %v1999_v61 = vadd.f32 %v1972_v45, %v7220_v12 }
 0xa62   :  { %v2015_v46 = vrot.slane %v2014_v50, 2 }
 0xa63   :  { %v1981_v49 = vpop.f32.mrb[56].mxu1 }
 0xa64   :  { %v1982_v47 = vadd.f32 %v1981_v49, %v1868_v14  ;;  %v4855_v5 = vpop.f32.mrb[57].mxu1  ;;  %vm2016_vm5 = vcmp.lt.s32.totalorder %v2014_v50, %v2015_v46  ;;  %v2000_v49 = vadd.f32 %v1977_v30, %v5789_v39  ;;  %v6454_v30 = vld [vmem:[%s7119_s1 + $0x98] sm:$0x3] }
 0xa65   :  { %v2017_v16 = vsel %vm2016_vm5, %v2014_v50, %v2015_v46 }
 0xa66   :  { %v2018_v55 = vrot.slane %v2017_v16, 1  ;;  %v2001_v5 = vadd.f32 %v1982_v47, %v5787_v7 }
 0xa67   :  { %v1986_v19 = vpop.f32.mrb[58].mxu1 }
 0xa68   :  { %v1987_v57 = vadd.f32 %v1986_v19, %v1873_v43  ;;  %v4858_v24 = vpop.f32.mrb[59].mxu1  ;;  %vm2019_vm6 = vcmp.lt.s32.totalorder %v2017_v16, %v2018_v55  ;;  %v6423_v43 = vld [vmem:[%s7119_s1 + $0xa0] sm:$0xff] }
 0xa69   :  { %v2020_v62 = vsel %vm2019_vm6, %v2017_v16, %v2018_v55 }
 0xa6a   :  { %vm2021_vm8 = vcmp.eq.s32.totalorder %v5758_v38, %v2020_v62  ;;  %v2002_v16 = vadd.f32 %v1987_v57, %v5816_v54 }
 0xa6b   :  { %v1991_v53 = vpop.f32.mrb[60].mxu1  ;;  %4863 = vmatpush3.msk.msra.mxu0 %vm2021_vm8, %v7214_v11 }
 0xa6c   :  { %v1992_v52 = vadd.f32 %v1991_v53, %v1878_v36  ;;  %4865 = vmatmul.mubr.msk.f32.vlgmr.msra.gmra.mrb[90].mxu0 %vm485_vm7, %v6416_v6  ;;  %v4861_v14 = vpop.f32.mrb[61].mxu1  ;;  %v1996_v36 = vadd.f32 %v1957_v4, %v7217_v13 }
 0xa6d   :  { %4880 = vmatprep.mubr.msk.f32.mxu0 %vm183_vm1, %v6423_v43 }
 0xa6e   :  { %v2003_v55 = vadd.f32 %v1992_v52, %v5812_v60 }
 0xb3f   :  { %v6427_v3 = vpop.f32.mrb[90].mxu0 }
 0xb40   :  { %v6433_v48 = vrot.slane %v6427_v3, %v5782_v44  ;;  %v6437_v22 = vrot.slane %v6427_v3, %v5785_v1  ;;  %v4866_v42 = vpop.f32.mrb[91].mxu0 }
 0xb42   :  { %v2098_v50 = vmul.f32 %v6433_v48, %v1996_v36  ;;  %v2099_v46 = vmul.f32 %v6433_v48, %v1997_v17  ;;  %v2104_v4 = vmul.f32 %v6437_v22, %v1998_v21  ;;  %v2105_v10 = vmul.f32 %v6437_v22, %v1999_v61 }
 0xb44   :  { %v2106_v19 = vadd.f32 %v2104_v4, %v2098_v50  ;;  %v2107_v9 = vadd.f32 %v2105_v10, %v2099_v46 }
 0xb46   :  { %v2108_v24 = vmul.f32 %v2106_v19, %v2000_v49  ;;  %v2109_v45 = vmul.f32 %v2107_v9, %v2001_v5  ;;  %v2110_v62 = vmul.f32 %v2106_v19, %v2002_v16  ;;  %v2111_v53 = vmul.f32 %v2107_v9, %v2003_v55 }
 0xb48   :  { %v5270_v14 = vpack.c.bf16 %v2109_v45, %v2108_v24  ;;  %v5273_v36 = vpack.c.bf16 %v2111_v53, %v2110_v62  ;;  %v2210_v62 = vmul.f32 %v6437_v22, %v6319_v2 }
 0xb4a   :  { %5271 = vmatpush3.bf16.msra.mxu1 %v5270_v14 }
 0xb4b   :  { %5272 = vmatprep.subr.bf16.mxu1 %v7196_v18 }
 0xb4e   :  { %5274 = vmatpush3.bf16.msra.mxu1 %v5273_v36 }
 0xb4f   :  { %5275 = vmatprep.subr.bf16.mxu1 %v7196_v18 }
 0xb51   :  { %4876 = vmatmul.mubr.msk.f32.vlgmr.msra.gmra.mrb[62].mxu1 %vm577_vm9, %v6454_v30 }
 0xb52   :  { %4936 = vmatprep.mubr.msk.f32.mxu1 %vm5444_vm2, %v7197_v0 }
 0xc24   :  { %v2178_v47 = vpop.f32.mrb[62].mxu1 }
 0xc25   :  { %v2182_v57 = vsel %vm651_vm10, %v2178_v47, -inf  ;;  %v4877_v52 = vpop.f32.mrb[63].mxu1 }
 0xc26   :  { %v2183_v17 = vrot.slane %v2182_v57, 4  ;;  %v2204_v52 = vmul.f32 %v6433_v48, %v6319_v2 }
 0xc28   :  { %v2184_v42 = vmax.f32 %v2182_v57, %v2183_v17 }
 0xc2a   :  { %v2185_v21 = vrot.slane %v2184_v42, 2 }
 0xc2c   :  { %v2186_v61 = vmax.f32 %v2184_v42, %v2185_v21 }
 0xc2e   :  { %v2187_v50 = vrot.slane %v2186_v61, 1 }
 0xc30   :  { %v2188_v46 = vmax.f32 %v2186_v61, %v2187_v50  ;;  %v6482_v50 = vld [vmem:[%s7119_s1 + $0xb0] sm:$0xff] }
 0xc32   :  { %vm2189_vm11 = vcmp.ge.f32.partialorder %v2178_v47, %v2188_v46  ;;  %v2212_v47 = vrot.slane %v2210_v62, 2  ;;  %v6491_v46 = vld [vmem:[%s7119_s1 + $0xc0] sm:$0xff] }
 0xc33   :  { %v2190_v4 = vsel %vm2189_vm11, %v5758_v38, 2 }
 0xc34   :  { %v2191_v10 = vsel %vm651_vm10, %v2190_v4, 2147483647  ;;  %v2214_v42 = vadd.f32 %v2212_v47, %v2204_v52 }
 0xc35   :  { %v2192_v49 = vrot.slane %v2191_v10, 4 }
 0xc37   :  { %vm2193_vm12 = vcmp.lt.s32.totalorder %v2191_v10, %v2192_v49 }
 0xc38   :  { %v2194_v5 = vsel %vm2193_vm12, %v2191_v10, %v2192_v49 }
 0xc39   :  { %v2195_v16 = vrot.slane %v2194_v5, 2 }
 0xc3b   :  { %vm2196_vm13 = vcmp.lt.s32.totalorder %v2194_v5, %v2195_v16 }
 0xc3c   :  { %v2197_v55 = vsel %vm2196_vm13, %v2194_v5, %v2195_v16 }
 0xc3d   :  { %v2198_v19 = vrot.slane %v2197_v55, 1 }
 0xc3f   :  { %vm2199_vm14 = vcmp.lt.s32.totalorder %v2197_v55, %v2198_v19 }
 0xc40   :  { %v2200_v9 = vsel %vm2199_vm14, %v2197_v55, %v2198_v19 }
 0xc41   :  { %vm2201_vm15 = vcmp.eq.s32.totalorder %v5758_v38, %v2200_v9 }
 0xc42   :  { %v4127_v24 = vsel %vm2201_vm15, 1.0, %v7197_v0 }
 0xc43   :  { %v2208_v45 = vrot.slane %v4127_v24, %v5782_v44  ;;  %v2218_v53 = vrot.slane %v4127_v24, %v5785_v1 }
 0xc45   :  { %v2219_v14 = vmul.f32 %v2218_v53, %v6319_v2  ;;  %v2209_v36 = vmul.f32 %v2208_v45, %v6319_v2 }
 0xc47   :  { %v2221_v57 = vrot.slane %v2219_v14, 2 }
 0xc49   :  { %v2223_v17 = vadd.f32 %v2221_v57, %v2209_v36 }
 0xc4b   :  { %v2225_v21 = vrot.slane %v2223_v17, 6 }
 0xc4d   :  { %v2227_v61 = vsel %vm651_vm10, %v2214_v42, %v2225_v21 }
 0xc4e   :  { %4878 = vmatprep.subr.msk.mxu0 %vm211_vm0, %v2227_v61 }
 0xc4f   :  { %4879 = vmatpush3.msk.msra.mxu0 %vm211_vm0, %v2227_v61 }
 0xc50   :  { %4881 = vmatmul.mubr.msk.f32.vlgmr.msra.gmra.mrb[92].mxu0 %vm183_vm1, %v6119_v20  ;;  %4939 = vmatprep.subr.mxu0 %v7197_v0  ;;  %v6500_v20 = vld [vmem:[%s7119_s1 + $0xd0] sm:$0xff] }
 0xc51   :  { %4883 = vmatprep.mubr.msk.f32.mxu0 %vm183_vm1, %v6482_v50 }
 0xc54   :  { %4884 = vmatmul.mubr.msk.f32.gmra.mrb[94].mxu0 %vm183_vm1, %v6129_v40  ;;  %v6509_v40 = vld [vmem:[%s7119_s1 + $0xe0] sm:$0xff] }
 0xc55   :  { %4886 = vmatprep.mubr.msk.f32.mxu0 %vm183_vm1, %v6491_v46 }
 0xc58   :  { %4887 = vmatmul.mubr.msk.f32.gmra.mrb[96].mxu0 %vm183_vm1, %v6138_v15  ;;  %v6518_v15 = vld [vmem:[%s7119_s1 + $0xf0] sm:$0xff] }
 0xc59   :  { %4889 = vmatprep.mubr.msk.f32.mxu0 %vm183_vm1, %v6500_v20 }
 0xc5c   :  { %4890 = vmatmul.mubr.msk.f32.gmra.mrb[98].mxu0 %vm183_vm1, %v6147_v31  ;;  %v6527_v31 = vld [vmem:[%s7119_s1 + $0x100] sm:$0xff] }
 0xc5d   :  { %4892 = vmatprep.mubr.msk.f32.mxu0 %vm183_vm1, %v6509_v40 }
 0xc60   :  { %4893 = vmatmul.mubr.msk.f32.gmra.mrb[100].mxu0 %vm183_vm1, %v6156_v32  ;;  %v6536_v32 = vld [vmem:[%s7119_s1 + $0x110] sm:$0xff] }
 0xc61   :  { %4895 = vmatprep.mubr.msk.f32.mxu0 %vm183_vm1, %v6518_v15 }
 0xc64   :  { %4896 = vmatmul.mubr.msk.f32.gmra.mrb[102].mxu0 %vm183_vm1, %v6165_v33 }
 0xc65   :  { %4898 = vmatprep.mubr.msk.f32.mxu0 %vm183_vm1, %v6527_v31 }
 0xc68   :  { %4899 = vmatmul.mubr.msk.f32.gmra.mrb[104].mxu0 %vm183_vm1, %v6174_v34 }
 0xc69   :  { %4901 = vmatprep.mubr.msk.f32.mxu0 %vm183_vm1, %v6536_v32 }
 0xc6c   :  { %4902 = vmatmul.mubr.msk.f32.gmra.mrb[106].mxu0 %vm183_vm1, %v6183_v35 }
 0xc6d   :  { %4941 = vmatprep.mubr.msk.f32.mxu0 %vm5444_vm2, %v7197_v0 }
 0xd23   :  { %v4882_v33 = vpop.f32.mrb[92].mxu0 }
 0xd24   :  { %v2303_v4 = vadd.f32 %v4882_v33, %v5883_v23  ;;  %v2297_v10 = vpop.f32.mrb[93].mxu0 }
 0xd25   :  { %v2298_v34 = vadd.f32 %v2297_v10, %v5885_v25 }
 0xd26   :  { %v2377_v49 = vmax.f32 %v2303_v4, 0.0 }
 0xd27   :  { %v2376_v5 = vmax.f32 %v2298_v34, 0.0  ;;  %v4885_v16 = vpop.f32.mrb[94].mxu0 }
 0xd28   :  { %v2313_v55 = vadd.f32 %v4885_v16, %v5887_v26  ;;  %v2307_v19 = vpop.f32.mrb[95].mxu0 }
 0xd29   :  { %v5276_v9 = vpack.c.bf16 %v2377_v49, %v2376_v5  ;;  %v2308_v24 = vadd.f32 %v2307_v19, %v5889_v27 }
 0xd2a   :  { %v2379_v45 = vmax.f32 %v2313_v55, 0.0 }
 0xd2b   :  { %v2378_v35 = vmax.f32 %v2308_v24, 0.0  ;;  %v4888_v62 = vpop.f32.mrb[96].mxu0  ;;  %5277 = vmatpush3.bf16.msra.mxu1 %v5276_v9 }
 0xd2c   :  { %v2323_v53 = vadd.f32 %v4888_v62, %v5891_v28  ;;  %v2317_v14 = vpop.f32.mrb[97].mxu0  ;;  %5278 = vmatprep.subr.bf16.mxu1 %v7196_v18 }
 0xd2d   :  { %v5279_v36 = vpack.c.bf16 %v2379_v45, %v2378_v35  ;;  %v2318_v47 = vadd.f32 %v2317_v14, %v5893_v29 }
 0xd2e   :  { %v2381_v57 = vmax.f32 %v2323_v53, 0.0  ;;  %v7247_v53 = vld [vmem:[#allocation14_spill] sm:$0xff] }
 0xd2f   :  { %v2380_v52 = vmax.f32 %v2318_v47, 0.0  ;;  %v4891_v17 = vpop.f32.mrb[98].mxu0  ;;  %5280 = vmatpush3.bf16.msra.mxu1 %v5279_v36 }
 0xd30   :  { %v2333_v42 = vadd.f32 %v4891_v17, %v5897_v56  ;;  %v2327_v21 = vpop.f32.mrb[99].mxu0  ;;  %5281 = vmatprep.subr.bf16.mxu1 %v7196_v18 }
 0xd31   :  { %v5282_v61 = vpack.c.bf16 %v2381_v57, %v2380_v52  ;;  %v2328_v33 = vadd.f32 %v2327_v21, %v7221_v41  ;;  %v7248_v52 = vld [vmem:[#allocation15_spill] sm:$0xff] }
 0xd32   :  { %v2383_v4 = vmax.f32 %v2333_v42, 0.0 }
 0xd33   :  { %v2382_v10 = vmax.f32 %v2328_v33, 0.0  ;;  %v4894_v34 = vpop.f32.mrb[100].mxu0  ;;  %5283 = vmatpush3.bf16.msra.mxu1 %v5282_v61  ;;  %v7249_v61 = vld [vmem:[#allocation16_spill] sm:$0xff] }
 0xd34   :  { %v2343_v49 = vadd.f32 %v4894_v34, %v7222_v37  ;;  %v2337_v5 = vpop.f32.mrb[101].mxu0  ;;  %5284 = vmatprep.subr.bf16.mxu1 %v7196_v18 }
 0xd35   :  { %v5285_v16 = vpack.c.bf16 %v2383_v4, %v2382_v10  ;;  %v2338_v55 = vadd.f32 %v2337_v5, %v5908_v63 }
 0xd36   :  { %v2385_v19 = vmax.f32 %v2343_v49, 0.0  ;;  %v7250_v49 = vld [vmem:[#allocation17_spill] sm:$0xff] }
 0xd37   :  { %v2384_v9 = vmax.f32 %v2338_v55, 0.0  ;;  %v4897_v24 = vpop.f32.mrb[102].mxu0  ;;  %5286 = vmatpush3.bf16.msra.mxu1 %v5285_v16 }
 0xd38   :  { %v2353_v45 = vadd.f32 %v4897_v24, %v7223_v8  ;;  %v2347_v35 = vpop.f32.mrb[103].mxu0  ;;  %5287 = vmatprep.subr.bf16.mxu1 %v7196_v18 }
 0xd39   :  { %v5288_v62 = vpack.c.bf16 %v2385_v19, %v2384_v9  ;;  %v2348_v14 = vadd.f32 %v2347_v35, %v7247_v53  ;;  %v7251_v19 = vld [vmem:[#allocation18_spill] sm:$0xff] }
 0xd3a   :  { %v2387_v36 = vmax.f32 %v2353_v45, 0.0 }
 0xd3b   :  { %v2386_v47 = vmax.f32 %v2348_v14, 0.0  ;;  %v4900_v57 = vpop.f32.mrb[104].mxu0  ;;  %5289 = vmatpush3.bf16.msra.mxu1 %v5288_v62  ;;  %v6571_v62 = vld [vmem:[%s7119_s1 + $0x120] sm:$0xff]  ;;  %v2517_v14 = vld [vmem:[%s7118_s0 + $0x10] sm:$0xf] }
 0xd3c   :  { %v2363_v17 = vadd.f32 %v4900_v57, %v7248_v52  ;;  %v2357_v42 = vpop.f32.mrb[105].mxu0  ;;  %5290 = vmatprep.subr.bf16.mxu1 %v7196_v18  ;;  %7252 = vst [vmem:[#allocation32_spill] sm:$0xff] %v6571_v62  ;;  %4940 = vmatpush3.msk.msra.mxu0 %vm211_vm0, %v2517_v14  ;;  %v7255_v57 = vld [vmem:[#allocation5_spill] sm:$0xff] }
 0xd3d   :  { %v5291_v21 = vpack.c.bf16 %v2387_v36, %v2386_v47  ;;  %v2358_v33 = vadd.f32 %v2357_v42, %v7249_v61  ;;  %v7253_v36 = vld [vmem:[#allocation2_spill] sm:$0xff]  ;;  %4997 = vmatprep.subr.mxu0 %v7197_v0  ;;  %v7254_v47 = vld [vmem:[#allocation4_spill] sm:$0xff]  ;;  %v7265_v14 = vld [vmem:[#allocation21_spill] sm:$0xff] }
 0xd3e   :  { %v2389_v4 = vmax.f32 %v2363_v17, 0.0  ;;  %4942 = vmatmul.mubr.msk.f32.vlgmr.msra.gmra.mrb[108].mxu0 %vm183_vm1, %v7253_v36  ;;  %v7256_v17 = vld [vmem:[#allocation3_spill] sm:$0xff]  ;;  %v7257_v42 = vld [vmem:[#allocation6_spill] sm:$0xff]  ;;  %v2479_v36 = vrot.slane %v6427_v3, %v7265_v14 }
 0xd3f   :  { %v2388_v10 = vmax.f32 %v2358_v33, 0.0  ;;  %v4903_v34 = vpop.f32.mrb[106].mxu0  ;;  %5292 = vmatpush3.bf16.msra.mxu1 %v5291_v21  ;;  %4944 = vmatprep.mubr.msk.f32.mxu0 %vm5444_vm2, %v7197_v0  ;;  %v7258_v21 = vld [vmem:[#allocation7_spill] sm:$0xff]  ;;  %v7259_v33 = vld [vmem:[#allocation9_spill] sm:$0xff] }
 0xd40   :  { %v2373_v5 = vadd.f32 %v4903_v34, %v7250_v49  ;;  %v2367_v16 = vpop.f32.mrb[107].mxu0  ;;  %5293 = vmatprep.subr.bf16.mxu1 %v7196_v18  ;;  %v2495_v34 = vsub.f32 1.0, %v6427_v3 }
 0xd41   :  { %v5294_v55 = vpack.c.bf16 %v2389_v4, %v2388_v10  ;;  %v2368_v9 = vadd.f32 %v2367_v16, %v7251_v19  ;;  %v7260_v4 = vld [vmem:[#allocation8_spill] sm:$0xff]  ;;  %v7261_v10 = vld [vmem:[#allocation10_spill] sm:$0xff]  ;;  %v7262_v16 = vld [vmem:[#allocation19_spill] sm:$0xff] }
 0xd42   :  { %v2391_v24 = vmax.f32 %v2373_v5, 0.0  ;;  %4945 = vmatmul.mubr.msk.f32.gmra.mrb[110].mxu0 %vm183_vm1, %v7254_v47  ;;  %v7266_v47 = vld [vmem:[#allocation22_spill] sm:$0xff] }
 0xd43   :  { %v2390_v45 = vmax.f32 %v2368_v9, 0.0  ;;  %5295 = vmatpush3.bf16.msra.mxu1 %v5294_v55  ;;  %4947 = vmatprep.mubr.msk.f32.mxu0 %vm5444_vm2, %v7197_v0  ;;  %v2465_v55 = vrot.slane %v6427_v3, %v7262_v16  ;;  %v7263_v9 = vld [vmem:[#allocation23_spill] sm:$0xff] }
 0xd44   :  { %5296 = vmatprep.subr.bf16.mxu1 %v7196_v18 }
 0xd45   :  { %v5297_v35 = vpack.c.bf16 %v2391_v24, %v2390_v45  ;;  %v7264_v45 = vld [vmem:[#allocation20_spill] sm:$0xff] }
 0xd46   :  { %4948 = vmatmul.mubr.msk.f32.gmra.mrb[112].mxu0 %vm183_vm1, %v7255_v57  ;;  %v2488_v57 = vrot.slane %v6427_v3, %v7266_v47 }
 0xd47   :  { %5298 = vmatpush3.bf16.msra.mxu1 %v5297_v35  ;;  %4950 = vmatprep.mubr.msk.f32.mxu0 %vm5444_vm2, %v7197_v0  ;;  %v2470_v35 = vrot.slane %v6427_v3, %v7264_v45 }
 0xd48   :  { %4968 = vmatprep.subr.mxu1 %v7197_v0 }
 0xd4a   :  { %4937 = vmatmul.mubr.f32.vlgmr.msra.gmra.mrb[64].mxu1 %v6571_v62  ;;  %4951 = vmatmul.mubr.msk.f32.gmra.mrb[114].mxu0 %vm183_vm1, %v7256_v17 }
 0xd4b   :  { %4970 = vmatprep.mubr.msk.f32.mxu1 %vm5444_vm2, %v7197_v0  ;;  %4953 = vmatprep.mubr.msk.f32.mxu0 %vm5444_vm2, %v7197_v0 }
 0xd4e   :  { %4954 = vmatmul.mubr.msk.f32.gmra.mrb[116].mxu0 %vm183_vm1, %v7257_v42 }
 0xd4f   :  { %4956 = vmatprep.mubr.msk.f32.mxu0 %vm5444_vm2, %v7197_v0 }
 0xd52   :  { %4957 = vmatmul.mubr.msk.f32.gmra.mrb[118].mxu0 %vm183_vm1, %v7258_v21 }
 0xd53   :  { %4959 = vmatprep.mubr.msk.f32.mxu0 %vm5444_vm2, %v7197_v0 }
 0xd56   :  { %4960 = vmatmul.mubr.msk.f32.gmra.mrb[120].mxu0 %vm183_vm1, %v7259_v33 }
 0xd57   :  { %4962 = vmatprep.mubr.msk.f32.mxu0 %vm5444_vm2, %v7197_v0 }
 0xd5a   :  { %4963 = vmatmul.mubr.msk.f32.gmra.mrb[122].mxu0 %vm183_vm1, %v7260_v4 }
 0xd5b   :  { %4965 = vmatprep.mubr.msk.f32.mxu0 %vm5444_vm2, %v7197_v0 }
 0xd5e   :  { %4966 = vmatmul.mubr.msk.f32.gmra.mrb[124].mxu0 %vm183_vm1, %v7261_v10  ;;  %v2506_v10 = vrot.slane %v2495_v34, %v5785_v1 }
 0xd5f   :  { %4999 = vmatprep.mubr.msk.f32.mxu0 %vm5444_vm2, %v7197_v0 }
 0xd60   :  { %v2507_v49 = vmul.f32 %v2506_v10, %v6319_v2 }
 0xe1d   :  { %v2458_v5 = vpop.f32.mrb[64].mxu1 }
 0xe1e   :  { %v2459_v24 = vadd.f32 %v2458_v5, %v7263_v9  ;;  %v4938_v17 = vpop.f32.mrb[65].mxu1  ;;  %v2499_v5 = vrot.slane %v2495_v34, %v5782_v44  ;;  %v7273_v34 = vld [vmem:[#allocation29_spill] sm:$0xff] }
 0xe20   :  { %v2466_v42 = vmul.f32 %v2465_v55, %v2459_v24  ;;  %v2471_v21 = vmul.f32 %v2470_v35, %v2459_v24  ;;  %v2480_v33 = vmul.f32 %v2479_v36, %v2459_v24  ;;  %v2489_v4 = vmul.f32 %v2488_v57, %v2459_v24 }
 0xe21   :  { %v2500_v3 = vmul.f32 %v2499_v5, %v6319_v2  ;;  %v2509_v35 = vrot.slane %v2507_v49, 2  ;;  %v7268_v2 = vld [vmem:[#allocation24_spill] sm:$0xff]  ;;  %v7271_v49 = vld [vmem:[#allocation27_spill] sm:$0xff] }
 0xe22   :  { %v2473_v62 = vrot.slane %v2471_v21, 2  ;;  %v2482_v19 = vrot.slane %v2480_v33, 4  ;;  %v2491_v45 = vrot.slane %v2489_v4, 6 }
 0xe24   :  { %v2475_v16 = vadd.f32 %v2473_v62, %v2466_v42 }
 0xe26   :  { %v2484_v9 = vadd.f32 %v2482_v19, %v2475_v16  ;;  %v7272_v19 = vld [vmem:[#allocation28_spill] sm:$0xff]  ;;  %v7274_v16 = vld [vmem:[#allocation30_spill] sm:$0xff] }
 0xe28   :  { %v2493_v14 = vadd.f32 %v2491_v45, %v2484_v9  ;;  %v7275_v9 = vld [vmem:[#allocation31_spill] sm:$0xff]  ;;  %v2587_v45 = vpop.f32.mrb[108].mxu0 }
 0xe2a   :  { %v2494_v61 = vmul.f32 %v2493_v14, %v6433_v48  ;;  %v2502_v55 = vmul.f32 %v2493_v14, %v6437_v22  ;;  %v7267_v48 = vld [vmem:[#allocation11_spill] sm:$0xff]  ;;  %v7269_v22 = vld [vmem:[#allocation25_spill] sm:$0xff]  ;;  %v4943_v14 = vpop.f32.mrb[109].mxu0 }
 0xe2b   :  { %v2592_v17 = vpop.f32.mrb[110].mxu0 }
 0xe2c   :  { %v2501_v24 = vadd.f32 %v2500_v3, %v2494_v61  ;;  %v2511_v36 = vadd.f32 %v2509_v35, %v2502_v55  ;;  %v7270_v61 = vld [vmem:[#allocation26_spill] sm:$0xff]  ;;  %v4946_v42 = vpop.f32.mrb[111].mxu0 }
 0xe2d   :  { %v2597_v21 = vpop.f32.mrb[112].mxu0 }
 0xe2e   :  { %v2513_v57 = vrot.slane %v2511_v36, 6  ;;  %v4949_v33 = vpop.f32.mrb[113].mxu0 }
 0xe2f   :  { %v2602_v4 = vpop.f32.mrb[114].mxu0 }
 0xe30   :  { %v6634_v62 = vsel %vm651_vm10, %v2501_v24, %v2513_v57  ;;  %v4952_v10 = vpop.f32.mrb[115].mxu0 }
 0xe31   :  { %4969 = vmatpush3.msk.msra.mxu1 %vm211_vm0, %v6634_v62  ;;  %2516 = vst [vmem:[%s7120_s2 + $0x8] sm:$0xf] %v6634_v62  ;;  %v2607_v5 = vpop.f32.mrb[116].mxu0 }
 0xe32   :  { %4971 = vmatmul.mubr.msk.f32.vlgmr.msra.gmra.mrb[66].mxu1 %vm183_vm1, %v7267_v48  ;;  %5299 = vmatprep.subr.bf16.mxu1 %v7196_v18  ;;  %v4955_v3 = vpop.f32.mrb[117].mxu0 }
 0xe33   :  { %4973 = vmatprep.mubr.msk.f32.mxu1 %vm5444_vm2, %v7197_v0  ;;  %v2612_v55 = vpop.f32.mrb[118].mxu0 }
 0xe34   :  { %v4958_v35 = vpop.f32.mrb[119].mxu0 }
 0xe35   :  { %v2617_v24 = vpop.f32.mrb[120].mxu0 }
 0xe36   :  { %4974 = vmatmul.mubr.msk.f32.gmra.mrb[68].mxu1 %vm183_vm1, %v7268_v2  ;;  %v4961_v36 = vpop.f32.mrb[121].mxu0 }
 0xe37   :  { %4976 = vmatprep.mubr.msk.f32.mxu1 %vm5444_vm2, %v7197_v0  ;;  %v2622_v57 = vpop.f32.mrb[122].mxu0 }
 0xe38   :  { %v4964_v48 = vpop.f32.mrb[123].mxu0 }
 0xe39   :  { %v2627_v2 = vpop.f32.mrb[124].mxu0 }
 0xe3a   :  { %4977 = vmatmul.mubr.msk.f32.gmra.mrb[70].mxu1 %vm183_vm1, %v7269_v22  ;;  %v4967_v22 = vpop.f32.mrb[125].mxu0 }
 0xe3b   :  { %4979 = vmatprep.mubr.msk.f32.mxu1 %vm5444_vm2, %v7197_v0 }
 0xe3e   :  { %4980 = vmatmul.mubr.msk.f32.gmra.mrb[72].mxu1 %vm183_vm1, %v7270_v61 }
 0xe3f   :  { %4982 = vmatprep.mubr.msk.f32.mxu1 %vm5444_vm2, %v7197_v0 }
 0xe42   :  { %4983 = vmatmul.mubr.msk.f32.gmra.mrb[74].mxu1 %vm183_vm1, %v7271_v49 }
 0xe43   :  { %4985 = vmatprep.mubr.msk.f32.mxu1 %vm5444_vm2, %v7197_v0 }
 0xe46   :  { %4986 = vmatmul.mubr.msk.f32.gmra.mrb[76].mxu1 %vm183_vm1, %v7272_v19 }
 0xe47   :  { %4988 = vmatprep.mubr.msk.f32.mxu1 %vm5444_vm2, %v7197_v0 }
 0xe4a   :  { %4989 = vmatmul.mubr.msk.f32.gmra.mrb[78].mxu1 %vm183_vm1, %v7273_v34 }
 0xe4b   :  { %4991 = vmatprep.mubr.msk.f32.mxu1 %vm5444_vm2, %v7197_v0 }
 0xe4e   :  { %4992 = vmatmul.mubr.msk.f32.gmra.mrb[80].mxu1 %vm183_vm1, %v7274_v16 }
 0xe4f   :  { %4994 = vmatprep.mubr.msk.f32.mxu1 %vm5444_vm2, %v7197_v0 }
 0xe52   :  { %4995 = vmatmul.mubr.msk.f32.gmra.mrb[82].mxu1 %vm183_vm1, %v7275_v9 }
 0xe53   :  { %5010 = vmatprep.mubr.msk.f32.mxu1 %vm5444_vm2, %v7197_v0 }
 0xf05   :  { %v2700_v61 = vpop.f32.mrb[66].mxu1 }
 0xf06   :  { %v2701_v49 = vadd.f32 %v2700_v61, %v2587_v45  ;;  %v4972_v19 = vpop.f32.mrb[67].mxu1 }
 0xf08   :  { %v2744_v34 = vadd.f32 %v2701_v49, %v7213_v59 }
 0xf09   :  { %v2705_v16 = vpop.f32.mrb[68].mxu1 }
 0xf0a   :  { %v2753_v9 = vrot.slane %v2744_v34, 4  ;;  %v2706_v14 = vadd.f32 %v2705_v16, %v2592_v17  ;;  %v4975_v42 = vpop.f32.mrb[69].mxu1 }
 0xf0c   :  { %v2754_v33 = vmax.f32 %v2744_v34, %v2753_v9 }
 0xf0d   :  { %v2710_v10 = vpop.f32.mrb[70].mxu1 }
 0xf0e   :  { %v2755_v3 = vrot.slane %v2754_v33, 2  ;;  %v2711_v47 = vadd.f32 %v2710_v10, %v2597_v21  ;;  %v4978_v35 = vpop.f32.mrb[71].mxu1 }
 0xf10   :  { %v2756_v52 = vmax.f32 %v2754_v33, %v2755_v3 }
 0xf11   :  { %v2715_v36 = vpop.f32.mrb[72].mxu1 }
 0xf12   :  { %v2757_v53 = vrot.slane %v2756_v52, 1  ;;  %v2716_v48 = vadd.f32 %v2715_v36, %v2602_v4  ;;  %v4981_v8 = vpop.f32.mrb[73].mxu1  ;;  %v2746_v36 = vadd.f32 %v2711_v47, %v7218_v51 }
 0xf14   :  { %v2758_v22 = vmax.f32 %v2756_v52, %v2757_v53 }
 0xf15   :  { %v2720_v63 = vpop.f32.mrb[74].mxu1 }
 0xf16   :  { %vm2759_vm3 = vcmp.ge.f32.partialorder %v2744_v34, %v2758_v22  ;;  %v2721_v45 = vadd.f32 %v2720_v63, %v2607_v5  ;;  %v4984_v61 = vpop.f32.mrb[75].mxu1 }
 0xf17   :  { %v2760_v49 = vsel %vm2759_vm3, %v5758_v38, 8 }
 0xf18   :  { %v2761_v19 = vrot.slane %v2760_v49, 4 }
 0xf19   :  { %v2725_v17 = vpop.f32.mrb[76].mxu1 }
 0xf1a   :  { %vm2762_vm4 = vcmp.lt.s32.totalorder %v2760_v49, %v2761_v19  ;;  %v2726_v16 = vadd.f32 %v2725_v17, %v2612_v55  ;;  %v4987_v9 = vpop.f32.mrb[77].mxu1 }
 0xf1b   :  { %v2763_v42 = vsel %vm2762_vm4, %v2760_v49, %v2761_v19  ;;  %v2748_v49 = vadd.f32 %v2721_v45, %v7220_v12 }
 0xf1c   :  { %v2764_v21 = vrot.slane %v2763_v42, 2  ;;  %v2749_v17 = vadd.f32 %v2726_v16, %v5789_v39 }
 0xf1d   :  { %v2730_v10 = vpop.f32.mrb[78].mxu1 }
 0xf1e   :  { %v2731_v33 = vadd.f32 %v2730_v10, %v2617_v24  ;;  %v4990_v3 = vpop.f32.mrb[79].mxu1  ;;  %vm2765_vm5 = vcmp.lt.s32.totalorder %v2763_v42, %v2764_v21 }
 0xf1f   :  { %v2766_v4 = vsel %vm2765_vm5, %v2763_v42, %v2764_v21 }
 0xf20   :  { %v2767_v8 = vrot.slane %v2766_v4, 1  ;;  %v2750_v9 = vadd.f32 %v2731_v33, %v5787_v7 }
 0xf21   :  { %v2735_v53 = vpop.f32.mrb[80].mxu1 }
 0xf22   :  { %v2736_v52 = vadd.f32 %v2735_v53, %v2622_v57  ;;  %v4993_v34 = vpop.f32.mrb[81].mxu1  ;;  %vm2768_vm6 = vcmp.lt.s32.totalorder %v2766_v4, %v2767_v8  ;;  %v2745_v57 = vadd.f32 %v2706_v14, %v7217_v13 }
 0xf23   :  { %v2769_v63 = vsel %vm2768_vm6, %v2766_v4, %v2767_v8 }
 0xf24   :  { %vm2770_vm8 = vcmp.eq.s32.totalorder %v5758_v38, %v2769_v63  ;;  %v2751_v42 = vadd.f32 %v2736_v52, %v5816_v54 }
 0xf25   :  { %v2740_v5 = vpop.f32.mrb[82].mxu1  ;;  %4998 = vmatpush3.msk.msra.mxu0 %vm2770_vm8, %v7214_v11 }
 0xf26   :  { %v2741_v55 = vadd.f32 %v2740_v5, %v2627_v2  ;;  %5000 = vmatmul.mubr.msk.f32.vlgmr.msra.gmra.mrb[126].mxu0 %vm485_vm7, %v6416_v6  ;;  %v4996_v35 = vpop.f32.mrb[83].mxu1  ;;  %v2747_v6 = vadd.f32 %v2716_v48, %v7219_v58 }
 0xf27   :  { %5015 = vmatprep.mubr.msk.f32.mxu0 %vm183_vm1, %v6423_v43 }
 0xf28   :  { %v2752_v21 = vadd.f32 %v2741_v55, %v5812_v60 }
 0xff9   :  { %v6687_v24 = vpop.f32.mrb[126].mxu0 }
 0xffa   :  { %v6693_v22 = vrot.slane %v6687_v24, %v5782_v44  ;;  %v6697_v2 = vrot.slane %v6687_v24, %v5785_v1  ;;  %v5001_v61 = vpop.f32.mrb[127].mxu0 }
 0xffc   :  { %v2847_v43 = vmul.f32 %v6693_v22, %v2745_v57  ;;  %v2848_v19 = vmul.f32 %v6693_v22, %v2746_v36  ;;  %v2853_v14 = vmul.f32 %v6697_v2, %v2747_v6  ;;  %v2854_v47 = vmul.f32 %v6697_v2, %v2748_v49 }
 0xffe   :  { %v2855_v10 = vadd.f32 %v2853_v14, %v2847_v43  ;;  %v2856_v48 = vadd.f32 %v2854_v47, %v2848_v19 }
0x1000   :  { %v2857_v3 = vmul.f32 %v2855_v10, %v2749_v17  ;;  %v2858_v45 = vmul.f32 %v2856_v48, %v2750_v9  ;;  %v2859_v4 = vmul.f32 %v2855_v10, %v2751_v42  ;;  %v2860_v8 = vmul.f32 %v2856_v48, %v2752_v21 }
0x1001   :  { %v2959_v42 = vmul.f32 %v6697_v2, %v6634_v62 }
0x1002   :  { %v5300_v53 = vpack.c.bf16 %v2858_v45, %v2857_v3  ;;  %v5303_v34 = vpack.c.bf16 %v2860_v8, %v2859_v4  ;;  %v2953_v4 = vmul.f32 %v6693_v22, %v6634_v62 }
0x1003   :  { %v2961_v3 = vrot.slane %v2959_v42, 2 }
0x1004   :  { %5301 = vmatpush3.bf16.msra.mxu1 %v5300_v53 }
0x1005   :  { %5302 = vmatprep.subr.bf16.mxu1 %v7196_v18  ;;  %v2963_v53 = vadd.f32 %v2961_v3, %v2953_v4 }
0x1008   :  { %5304 = vmatpush3.bf16.msra.mxu1 %v5303_v34 }
0x1009   :  { %5305 = vmatprep.subr.bf16.mxu1 %v7196_v18 }
0x100b   :  { %5011 = vmatmul.mubr.msk.f32.vlgmr.msra.gmra.mrb[84].mxu1 %vm577_vm9, %v6454_v30 }
0x100c   :  { %5071 = vmatprep.mubr.msk.f32.mxu1 %vm5444_vm2, %v7197_v0 }
0x10de   :  { %v2927_v16 = vpop.f32.mrb[84].mxu1 }
0x10df   :  { %v2931_v33 = vsel %vm651_vm10, %v2927_v16, -inf  ;;  %v5012_v52 = vpop.f32.mrb[85].mxu1 }
0x10e0   :  { %v2932_v63 = vrot.slane %v2931_v33, 4  ;;  %v6744_v52 = vld [vmem:[%s7119_s1 + $0xb8] sm:$0xff] }
0x10e2   :  { %v2933_v5 = vmax.f32 %v2931_v33, %v2932_v63  ;;  %v6734_v33 = vld [vmem:[%s7119_s1 + $0xa8] sm:$0xff] }
0x10e3   :  { %v6753_v63 = vld [vmem:[%s7119_s1 + $0xc8] sm:$0xff] }
0x10e4   :  { %v2934_v55 = vrot.slane %v2933_v5, 2 }
0x10e6   :  { %v2935_v35 = vmax.f32 %v2933_v5, %v2934_v55 }
0x10e8   :  { %v2936_v57 = vrot.slane %v2935_v35, 1 }
0x10ea   :  { %v2937_v36 = vmax.f32 %v2935_v35, %v2936_v57 }
0x10ec   :  { %vm2938_vm11 = vcmp.ge.f32.partialorder %v2927_v16, %v2937_v36 }
0x10ed   :  { %v2939_v61 = vsel %vm2938_vm11, %v5758_v38, 2 }
0x10ee   :  { %v2940_v6 = vsel %vm651_vm10, %v2939_v61, 2147483647 }
0x10ef   :  { %v2941_v49 = vrot.slane %v2940_v6, 4 }
0x10f1   :  { %vm2942_vm12 = vcmp.lt.s32.totalorder %v2940_v6, %v2941_v49 }
0x10f2   :  { %v2943_v30 = vsel %vm2942_vm12, %v2940_v6, %v2941_v49 }
0x10f3   :  { %v2944_v43 = vrot.slane %v2943_v30, 2 }
0x10f5   :  { %vm2945_vm13 = vcmp.lt.s32.totalorder %v2943_v30, %v2944_v43 }
0x10f6   :  { %v2946_v19 = vsel %vm2945_vm13, %v2943_v30, %v2944_v43 }
0x10f7   :  { %v2947_v14 = vrot.slane %v2946_v19, 1 }
0x10f9   :  { %vm2948_vm14 = vcmp.lt.s32.totalorder %v2946_v19, %v2947_v14 }
0x10fa   :  { %v2949_v47 = vsel %vm2948_vm14, %v2946_v19, %v2947_v14 }
0x10fb   :  { %vm2950_vm15 = vcmp.eq.s32.totalorder %v5758_v38, %v2949_v47 }
0x10fc   :  { %v4169_v17 = vsel %vm2950_vm15, 1.0, %v7197_v0 }
0x10fd   :  { %v2957_v9 = vrot.slane %v4169_v17, %v5782_v44  ;;  %v2967_v21 = vrot.slane %v4169_v17, %v5785_v1 }
0x10ff   :  { %v2968_v10 = vmul.f32 %v2967_v21, %v6634_v62  ;;  %v2958_v48 = vmul.f32 %v2957_v9, %v6634_v62 }
0x1101   :  { %v2970_v45 = vrot.slane %v2968_v10, 2 }
0x1103   :  { %v2972_v8 = vadd.f32 %v2970_v45, %v2958_v48 }
0x1105   :  { %v2974_v34 = vrot.slane %v2972_v8, 6 }
0x1107   :  { %v2976_v16 = vsel %vm651_vm10, %v2963_v53, %v2974_v34 }
0x1108   :  { %5013 = vmatprep.subr.msk.mxu0 %vm211_vm0, %v2976_v16 }
0x1109   :  { %5014 = vmatpush3.msk.msra.mxu0 %vm211_vm0, %v2976_v16 }
0x110a   :  { %5016 = vmatmul.mubr.msk.f32.vlgmr.msra.gmra.mrb[128].mxu0 %vm183_vm1, %v6734_v33  ;;  %5074 = vmatprep.subr.mxu0 %v7197_v0 }
0x110b   :  { %5018 = vmatprep.mubr.msk.f32.mxu0 %vm183_vm1, %v6482_v50  ;;  %v6762_v50 = vld [vmem:[%s7119_s1 + $0xd8] sm:$0xff] }
0x110e   :  { %5019 = vmatmul.mubr.msk.f32.gmra.mrb[130].mxu0 %vm183_vm1, %v6744_v52 }
0x110f   :  { %5021 = vmatprep.mubr.msk.f32.mxu0 %vm183_vm1, %v6491_v46  ;;  %v6771_v46 = vld [vmem:[%s7119_s1 + $0xe8] sm:$0xff] }
0x1112   :  { %5022 = vmatmul.mubr.msk.f32.gmra.mrb[132].mxu0 %vm183_vm1, %v6753_v63 }
0x1113   :  { %5024 = vmatprep.mubr.msk.f32.mxu0 %vm183_vm1, %v6500_v20  ;;  %v6780_v20 = vld [vmem:[%s7119_s1 + $0xf8] sm:$0xff] }
0x1116   :  { %5025 = vmatmul.mubr.msk.f32.gmra.mrb[134].mxu0 %vm183_vm1, %v6762_v50 }
0x1117   :  { %5027 = vmatprep.mubr.msk.f32.mxu0 %vm183_vm1, %v6509_v40  ;;  %v6789_v40 = vld [vmem:[%s7119_s1 + $0x108] sm:$0xff] }
0x111a   :  { %5028 = vmatmul.mubr.msk.f32.gmra.mrb[136].mxu0 %vm183_vm1, %v6771_v46 }
0x111b   :  { %5030 = vmatprep.mubr.msk.f32.mxu0 %vm183_vm1, %v6518_v15  ;;  %v6798_v15 = vld [vmem:[%s7119_s1 + $0x118] sm:$0xff] }
0x111e   :  { %5031 = vmatmul.mubr.msk.f32.gmra.mrb[138].mxu0 %vm183_vm1, %v6780_v20 }
0x111f   :  { %5033 = vmatprep.mubr.msk.f32.mxu0 %vm183_vm1, %v6527_v31 }
0x1122   :  { %5034 = vmatmul.mubr.msk.f32.gmra.mrb[140].mxu0 %vm183_vm1, %v6789_v40 }
0x1123   :  { %5036 = vmatprep.mubr.msk.f32.mxu0 %vm183_vm1, %v6536_v32 }
0x1126   :  { %5037 = vmatmul.mubr.msk.f32.gmra.mrb[142].mxu0 %vm183_vm1, %v6798_v15 }
0x1127   :  { %5076 = vmatprep.mubr.msk.f32.mxu0 %vm5444_vm2, %v7197_v0 }
0x11dd   :  { %v5017_v31 = vpop.f32.mrb[128].mxu0 }
0x11de   :  { %v3052_v5 = vadd.f32 %v5017_v31, %v5883_v23  ;;  %v3046_v55 = vpop.f32.mrb[129].mxu0 }
0x11df   :  { %v3047_v35 = vadd.f32 %v3046_v55, %v5885_v25 }
0x11e0   :  { %v3126_v57 = vmax.f32 %v3052_v5, 0.0 }
0x11e1   :  { %v3125_v36 = vmax.f32 %v3047_v35, 0.0  ;;  %v5020_v32 = vpop.f32.mrb[130].mxu0  ;;  %v7276_v35 = vld [vmem:[#allocation12_spill] sm:$0xff] }
0x11e2   :  { %v3062_v61 = vadd.f32 %v5020_v32, %v5887_v26  ;;  %v3056_v6 = vpop.f32.mrb[131].mxu0 }
0x11e3   :  { %v5306_v49 = vpack.c.bf16 %v3126_v57, %v3125_v36  ;;  %v3057_v30 = vadd.f32 %v3056_v6, %v5889_v27  ;;  %v7277_v6 = vld [vmem:[#allocation13_spill] sm:$0xff] }
0x11e4   :  { %v3128_v43 = vmax.f32 %v3062_v61, 0.0 }
0x11e5   :  { %v3127_v19 = vmax.f32 %v3057_v30, 0.0  ;;  %v5023_v14 = vpop.f32.mrb[132].mxu0  ;;  %5307 = vmatpush3.bf16.msra.mxu1 %v5306_v49 }
0x11e6   :  { %v3072_v47 = vadd.f32 %v5023_v14, %v5891_v28  ;;  %v3066_v17 = vpop.f32.mrb[133].mxu0  ;;  %5308 = vmatprep.subr.bf16.mxu1 %v7196_v18 }
0x11e7   :  { %v5309_v9 = vpack.c.bf16 %v3128_v43, %v3127_v19  ;;  %v3067_v42 = vadd.f32 %v3066_v17, %v5893_v29  ;;  %v7278_v19 = vld [vmem:[#allocation14_spill] sm:$0xff] }
0x11e8   :  { %v3130_v21 = vmax.f32 %v3072_v47, 0.0 }
0x11e9   :  { %v3129_v10 = vmax.f32 %v3067_v42, 0.0  ;;  %v5026_v48 = vpop.f32.mrb[134].mxu0  ;;  %5310 = vmatpush3.bf16.msra.mxu1 %v5309_v9  ;;  %v7279_v42 = vld [vmem:[#allocation15_spill] sm:$0xff] }
0x11ea   :  { %v3082_v3 = vadd.f32 %v5026_v48, %v5897_v56  ;;  %v3076_v45 = vpop.f32.mrb[135].mxu0  ;;  %5311 = vmatprep.subr.bf16.mxu1 %v7196_v18 }
0x11eb   :  { %v5312_v4 = vpack.c.bf16 %v3130_v21, %v3129_v10  ;;  %v3077_v8 = vadd.f32 %v3076_v45, %v7221_v41 }
0x11ec   :  { %v3132_v53 = vmax.f32 %v3082_v3, 0.0  ;;  %v7280_v3 = vld [vmem:[#allocation16_spill] sm:$0xff] }
0x11ed   :  { %v3131_v34 = vmax.f32 %v3077_v8, 0.0  ;;  %v5029_v16 = vpop.f32.mrb[136].mxu0  ;;  %5313 = vmatpush3.bf16.msra.mxu1 %v5312_v4 }
0x11ee   :  { %v3092_v31 = vadd.f32 %v5029_v16, %v7222_v37  ;;  %v3086_v5 = vpop.f32.mrb[137].mxu0  ;;  %5314 = vmatprep.subr.bf16.mxu1 %v7196_v18 }
0x11ef   :  { %v5315_v55 = vpack.c.bf16 %v3132_v53, %v3131_v34  ;;  %v3087_v57 = vadd.f32 %v3086_v5, %v7276_v35  ;;  %v7281_v34 = vld [vmem:[#allocation17_spill] sm:$0xff] }
0x11f0   :  { %v3134_v36 = vmax.f32 %v3092_v31, 0.0 }
0x11f1   :  { %v3133_v32 = vmax.f32 %v3087_v57, 0.0  ;;  %v5032_v61 = vpop.f32.mrb[138].mxu0  ;;  %5316 = vmatpush3.bf16.msra.mxu1 %v5315_v55  ;;  %v7282_v55 = vld [vmem:[#allocation18_spill] sm:$0xff] }
0x11f2   :  { %v3102_v49 = vadd.f32 %v5032_v61, %v7277_v6  ;;  %v3096_v30 = vpop.f32.mrb[139].mxu0  ;;  %5317 = vmatprep.subr.bf16.mxu1 %v7196_v18 }
0x11f3   :  { %v5318_v43 = vpack.c.bf16 %v3134_v36, %v3133_v32  ;;  %v3097_v14 = vadd.f32 %v3096_v30, %v7278_v19  ;;  %v3266_v30 = vld [vmem:[%s7118_s0 + $0x14] sm:$0xf] }
0x11f4   :  { %v3136_v47 = vmax.f32 %v3102_v49, 0.0  ;;  %v7283_v49 = vld [vmem:[#allocation32_spill] sm:$0xff]  ;;  %5075 = vmatpush3.msk.msra.mxu0 %vm211_vm0, %v3266_v30 }
0x11f5   :  { %v3135_v17 = vmax.f32 %v3097_v14, 0.0  ;;  %v5035_v9 = vpop.f32.mrb[140].mxu0  ;;  %5319 = vmatpush3.bf16.msra.mxu1 %v5318_v43  ;;  %v5414_v43 = vld [vmem:[%s7119_s1 + $0x48] sm:$0xff]  ;;  %5132 = vmatprep.subr.mxu0 %v7197_v0  ;;  %v5415_v14 = vld [vmem:[%s7119_s1 + $0x50] sm:$0xff] }
0x11f6   :  { %v3112_v21 = vadd.f32 %v5035_v9, %v7279_v42  ;;  %v3106_v10 = vpop.f32.mrb[141].mxu0  ;;  %5320 = vmatprep.subr.bf16.mxu1 %v7196_v18  ;;  %5077 = vmatmul.mubr.msk.f32.vlgmr.msra.gmra.mrb[144].mxu0 %vm183_vm1, %v5414_v43  ;;  %v5418_v9 = vld [vmem:[%s7119_s1 + $0x68] sm:$0xff] }
0x11f7   :  { %v5321_v48 = vpack.c.bf16 %v3136_v47, %v3135_v17  ;;  %v3107_v45 = vadd.f32 %v3106_v10, %v7280_v3  ;;  %5079 = vmatprep.mubr.msk.f32.mxu0 %vm5444_vm2, %v7197_v0  ;;  %v5416_v47 = vld [vmem:[%s7119_s1 + $0x58] sm:$0xff]  ;;  %v5417_v17 = vld [vmem:[%s7119_s1 + $0x60] sm:$0xff] }
0x11f8   :  { %v3138_v4 = vmax.f32 %v3112_v21, 0.0  ;;  %v5419_v21 = vld [vmem:[%s7119_s1 + $0x70] sm:$0xff]  ;;  %v5420_v10 = vld [vmem:[%s7119_s1 + $0x78] sm:$0xff] }
0x11f9   :  { %v3137_v8 = vmax.f32 %v3107_v45, 0.0  ;;  %v5038_v53 = vpop.f32.mrb[142].mxu0  ;;  %5322 = vmatpush3.bf16.msra.mxu1 %v5321_v48  ;;  %v5421_v48 = vld [vmem:[%s7119_s1 + $0x80] sm:$0xff]  ;;  %v5422_v45 = vld [vmem:[%s7119_s1 + $0x88] sm:$0xff] }
0x11fa   :  { %v3122_v16 = vadd.f32 %v5038_v53, %v7281_v34  ;;  %v3116_v31 = vpop.f32.mrb[143].mxu0  ;;  %5323 = vmatprep.subr.bf16.mxu1 %v7196_v18  ;;  %5080 = vmatmul.mubr.msk.f32.gmra.mrb[146].mxu0 %vm183_vm1, %v5415_v14  ;;  %v7284_v53 = vld [vmem:[#allocation19_spill] sm:$0xff] }
0x11fb   :  { %v5324_v5 = vpack.c.bf16 %v3138_v4, %v3137_v8  ;;  %v3117_v57 = vadd.f32 %v3116_v31, %v7282_v55  ;;  %5082 = vmatprep.mubr.msk.f32.mxu0 %vm5444_vm2, %v7197_v0  ;;  %v3244_v4 = vsub.f32 1.0, %v6687_v24  ;;  %v7285_v31 = vld [vmem:[#allocation23_spill] sm:$0xff] }
0x11fc   :  { %v3140_v36 = vmax.f32 %v3122_v16, 0.0  ;;  %v3214_v16 = vrot.slane %v6687_v24, %v7284_v53 }
0x11fd   :  { %v3139_v32 = vmax.f32 %v3117_v57, 0.0  ;;  %5325 = vmatpush3.bf16.msra.mxu1 %v5324_v5  ;;  %v7286_v57 = vld [vmem:[#allocation20_spill] sm:$0xff] }
0x11fe   :  { %5326 = vmatprep.subr.bf16.mxu1 %v7196_v18  ;;  %5083 = vmatmul.mubr.msk.f32.gmra.mrb[148].mxu0 %vm183_vm1, %v5416_v47 }
0x11ff   :  { %v5327_v61 = vpack.c.bf16 %v3140_v36, %v3139_v32  ;;  %5085 = vmatprep.mubr.msk.f32.mxu0 %vm5444_vm2, %v7197_v0  ;;  %v3219_v36 = vrot.slane %v6687_v24, %v7286_v57  ;;  %v7287_v32 = vld [vmem:[#allocation21_spill] sm:$0xff] }
0x1201   :  { %5328 = vmatpush3.bf16.msra.mxu1 %v5327_v61  ;;  %v3228_v61 = vrot.slane %v6687_v24, %v7287_v32 }
0x1202   :  { %5103 = vmatprep.subr.mxu1 %v7197_v0  ;;  %5086 = vmatmul.mubr.msk.f32.gmra.mrb[150].mxu0 %vm183_vm1, %v5417_v17 }
0x1203   :  { %5088 = vmatprep.mubr.msk.f32.mxu0 %vm5444_vm2, %v7197_v0 }
0x1204   :  { %5072 = vmatmul.mubr.f32.vlgmr.msra.gmra.mrb[86].mxu1 %v7283_v49  ;;  %v7288_v49 = vld [vmem:[#allocation22_spill] sm:$0xff] }
0x1205   :  { %5105 = vmatprep.mubr.msk.f32.mxu1 %vm5444_vm2, %v7197_v0  ;;  %v3237_v30 = vrot.slane %v6687_v24, %v7288_v49 }
0x1206   :  { %5089 = vmatmul.mubr.msk.f32.gmra.mrb[152].mxu0 %vm183_vm1, %v5418_v9 }
0x1207   :  { %5091 = vmatprep.mubr.msk.f32.mxu0 %vm5444_vm2, %v7197_v0 }
0x120a   :  { %5092 = vmatmul.mubr.msk.f32.gmra.mrb[154].mxu0 %vm183_vm1, %v5419_v21  ;;  %v3255_v21 = vrot.slane %v3244_v4, %v5785_v1 }
0x120b   :  { %5094 = vmatprep.mubr.msk.f32.mxu0 %vm5444_vm2, %v7197_v0 }
0x120c   :  { %v3256_v53 = vmul.f32 %v3255_v21, %v6634_v62 }
0x120e   :  { %5095 = vmatmul.mubr.msk.f32.gmra.mrb[156].mxu0 %vm183_vm1, %v5420_v10 }
0x120f   :  { %5097 = vmatprep.mubr.msk.f32.mxu0 %vm5444_vm2, %v7197_v0 }
0x1212   :  { %5098 = vmatmul.mubr.msk.f32.gmra.mrb[158].mxu0 %vm183_vm1, %v5421_v48 }
0x1213   :  { %5100 = vmatprep.mubr.msk.f32.mxu0 %vm5444_vm2, %v7197_v0 }
0x1216   :  { %5101 = vmatmul.mubr.msk.f32.gmra.mrb[160].mxu0 %vm183_vm1, %v5422_v45 }
0x1217   :  { %5134 = vmatprep.mubr.msk.f32.mxu0 %vm5444_vm2, %v7197_v0 }
0x12d7   :  { %v3207_v8 = vpop.f32.mrb[86].mxu1 }
0x12d8   :  { %v3208_v5 = vadd.f32 %v3207_v8, %v7285_v31  ;;  %v5073_v43 = vpop.f32.mrb[87].mxu1  ;;  %v3248_v8 = vrot.slane %v3244_v4, %v5782_v44  ;;  %v5427_v4 = vld [vmem:[%s7119_s1 + $0x20] sm:$0xff] }
0x12da   :  { %v3215_v14 = vmul.f32 %v3214_v16, %v3208_v5  ;;  %v3220_v47 = vmul.f32 %v3219_v36, %v3208_v5  ;;  %v3229_v17 = vmul.f32 %v3228_v61, %v3208_v5  ;;  %v3238_v9 = vmul.f32 %v3237_v30, %v3208_v5 }
0x12db   :  { %v3249_v24 = vmul.f32 %v3248_v8, %v6634_v62  ;;  %v3258_v36 = vrot.slane %v3256_v53, 2  ;;  %v5423_v62 = vld [vmem:[%s7119_s1] sm:$0xff]  ;;  %v5428_v53 = vld [vmem:[%s7119_s1 + $0x28] sm:$0xff] }
0x12dc   :  { %v3222_v10 = vrot.slane %v3220_v47, 2  ;;  %v3231_v45 = vrot.slane %v3229_v17, 4  ;;  %v3240_v57 = vrot.slane %v3238_v9, 6 }
0x12de   :  { %v3224_v48 = vadd.f32 %v3222_v10, %v3215_v14  ;;  %v3336_v14 = vpop.f32.mrb[144].mxu0 }
0x12df   :  { %v5078_v47 = vpop.f32.mrb[145].mxu0 }
0x12e0   :  { %v3233_v31 = vadd.f32 %v3231_v45, %v3224_v48  ;;  %v3341_v17 = vpop.f32.mrb[146].mxu0 }
0x12e1   :  { %v5081_v9 = vpop.f32.mrb[147].mxu0 }
0x12e2   :  { %v3242_v32 = vadd.f32 %v3240_v57, %v3233_v31  ;;  %v5429_v31 = vld [vmem:[%s7119_s1 + $0x30] sm:$0xff]  ;;  %v5430_v57 = vld [vmem:[%s7119_s1 + $0x38] sm:$0xff]  ;;  %v3346_v21 = vpop.f32.mrb[148].mxu0 }
0x12e3   :  { %v5084_v10 = vpop.f32.mrb[149].mxu0 }
0x12e4   :  { %v3243_v55 = vmul.f32 %v3242_v32, %v6693_v22  ;;  %v3251_v16 = vmul.f32 %v3242_v32, %v6697_v2  ;;  %v5424_v22 = vld [vmem:[%s7119_s1 + $0x8] sm:$0xff]  ;;  %v5425_v2 = vld [vmem:[%s7119_s1 + $0x10] sm:$0xff]  ;;  %v5431_v32 = vld [vmem:[%s7119_s1 + $0x40] sm:$0xff]  ;;  %v3351_v48 = vpop.f32.mrb[150].mxu0 }
0x12e5   :  { %v5087_v45 = vpop.f32.mrb[151].mxu0 }
0x12e6   :  { %v3250_v5 = vadd.f32 %v3249_v24, %v3243_v55  ;;  %v3260_v61 = vadd.f32 %v3258_v36, %v3251_v16  ;;  %v5426_v55 = vld [vmem:[%s7119_s1 + $0x18] sm:$0xff]  ;;  %v3356_v8 = vpop.f32.mrb[152].mxu0 }
0x12e7   :  { %v5090_v24 = vpop.f32.mrb[153].mxu0 }
0x12e8   :  { %v3262_v30 = vrot.slane %v3260_v61, 6  ;;  %v3361_v16 = vpop.f32.mrb[154].mxu0 }
0x12e9   :  { %v5093_v36 = vpop.f32.mrb[155].mxu0 }
0x12ea   :  { %v6907_v43 = vsel %vm651_vm10, %v3250_v5, %v3262_v30  ;;  %v3366_v5 = vpop.f32.mrb[156].mxu0 }
0x12eb   :  { %5104 = vmatpush3.msk.msra.mxu1 %vm211_vm0, %v6907_v43  ;;  %3265 = vst [vmem:[%s7120_s2 + $0xc] sm:$0xf] %v6907_v43  ;;  %v5096_v61 = vpop.f32.mrb[157].mxu0 }
0x12ec   :  { %5106 = vmatmul.mubr.msk.f32.vlgmr.msra.gmra.mrb[88].mxu1 %vm183_vm1, %v5423_v62  ;;  %5329 = vmatprep.subr.bf16.mxu1 %v7196_v18  ;;  %v3371_v30 = vpop.f32.mrb[158].mxu0 }
0x12ed   :  { %5108 = vmatprep.mubr.msk.f32.mxu1 %vm5444_vm2, %v7197_v0  ;;  %v5099_v62 = vpop.f32.mrb[159].mxu0 }
0x12f0   :  { %5109 = vmatmul.mubr.msk.f32.gmra.mrb[90].mxu1 %vm183_vm1, %v5424_v22  ;;  %v3376_v22 = vpop.f32.mrb[160].mxu0 }
0x12f1   :  { %5111 = vmatprep.mubr.msk.f32.mxu1 %vm5444_vm2, %v7197_v0 }
0x12f4   :  { %5112 = vmatmul.mubr.msk.f32.gmra.mrb[92].mxu1 %vm183_vm1, %v5425_v2  ;;  %v5102_v2 = vpop.f32.mrb[161].mxu0 }
0x12f5   :  { %5114 = vmatprep.mubr.msk.f32.mxu1 %vm5444_vm2, %v7197_v0 }
0x12f8   :  { %5115 = vmatmul.mubr.msk.f32.gmra.mrb[94].mxu1 %vm183_vm1, %v5426_v55 }
0x12f9   :  { %5117 = vmatprep.mubr.msk.f32.mxu1 %vm5444_vm2, %v7197_v0 }
0x12fc   :  { %5118 = vmatmul.mubr.msk.f32.gmra.mrb[96].mxu1 %vm183_vm1, %v5427_v4 }
0x12fd   :  { %5120 = vmatprep.mubr.msk.f32.mxu1 %vm5444_vm2, %v7197_v0 }
0x1300   :  { %5121 = vmatmul.mubr.msk.f32.gmra.mrb[98].mxu1 %vm183_vm1, %v5428_v53 }
0x1301   :  { %5123 = vmatprep.mubr.msk.f32.mxu1 %vm5444_vm2, %v7197_v0 }
0x1304   :  { %5124 = vmatmul.mubr.msk.f32.gmra.mrb[100].mxu1 %vm183_vm1, %v5429_v31 }
0x1305   :  { %5126 = vmatprep.mubr.msk.f32.mxu1 %vm5444_vm2, %v7197_v0 }
0x1308   :  { %5127 = vmatmul.mubr.msk.f32.gmra.mrb[102].mxu1 %vm183_vm1, %v5430_v57 }
0x1309   :  { %5129 = vmatprep.mubr.msk.f32.mxu1 %vm5444_vm2, %v7197_v0 }
0x130c   :  { %5130 = vmatmul.mubr.msk.f32.gmra.mrb[104].mxu1 %vm183_vm1, %v5431_v32 }
0x130d   :  { %5145 = vmatprep.mubr.msk.f32.mxu1 %vm5444_vm2, %v7197_v0 }
0x13bf   :  { %v3449_v55 = vpop.f32.mrb[88].mxu1 }
0x13c0   :  { %v3450_v4 = vadd.f32 %v3449_v55, %v3336_v14  ;;  %v5107_v53 = vpop.f32.mrb[89].mxu1 }
0x13c2   :  { %v3493_v31 = vadd.f32 %v3450_v4, %v7213_v59 }
0x13c3   :  { %v3454_v57 = vpop.f32.mrb[90].mxu1 }
0x13c4   :  { %v3502_v32 = vrot.slane %v3493_v31, 4  ;;  %v3455_v47 = vadd.f32 %v3454_v57, %v3341_v17  ;;  %v5110_v9 = vpop.f32.mrb[91].mxu1 }
0x13c6   :  { %v3503_v10 = vmax.f32 %v3493_v31, %v3502_v32 }
0x13c7   :  { %v3459_v45 = vpop.f32.mrb[92].mxu1 }
0x13c8   :  { %v3504_v24 = vrot.slane %v3503_v10, 2  ;;  %v3460_v49 = vadd.f32 %v3459_v45, %v3346_v21  ;;  %v5113_v36 = vpop.f32.mrb[93].mxu1 }
0x13ca   :  { %v3505_v34 = vmax.f32 %v3503_v10, %v3504_v24  ;;  %v5432_v24 = vld [vmem:[%s7119_s1 + $0x90] sm:$0x3f] }
0x13cb   :  { %v3464_v61 = vpop.f32.mrb[94].mxu1 }
0x13cc   :  { %v3506_v3 = vrot.slane %v3505_v34, 1  ;;  %v3465_v62 = vadd.f32 %v3464_v61, %v3351_v48  ;;  %v5116_v42 = vpop.f32.mrb[95].mxu1  ;;  %v3494_v61 = vadd.f32 %v3455_v47, %v7217_v13 }
0x13ce   :  { %v3507_v2 = vmax.f32 %v3505_v34, %v3506_v3 }
0x13cf   :  { %v3469_v19 = vpop.f32.mrb[96].mxu1 }
0x13d0   :  { %vm3508_vm3 = vcmp.ge.f32.partialorder %v3493_v31, %v3507_v2  ;;  %v3470_v14 = vadd.f32 %v3469_v19, %v3356_v8  ;;  %v5119_v55 = vpop.f32.mrb[97].mxu1 }
0x13d1   :  { %v3509_v59 = vsel %vm3508_vm3, %v5758_v38, 8 }
0x13d2   :  { %v3510_v4 = vrot.slane %v3509_v59, 4 }
0x13d3   :  { %v3474_v17 = vpop.f32.mrb[98].mxu1 }
0x13d4   :  { %vm3511_vm4 = vcmp.lt.s32.totalorder %v3509_v59, %v3510_v4  ;;  %v3475_v53 = vadd.f32 %v3474_v17, %v3361_v16  ;;  %v5122_v57 = vpop.f32.mrb[99].mxu1 }
0x13d5   :  { %v3512_v32 = vsel %vm3511_vm4, %v3509_v59, %v3510_v4  ;;  %v3496_v59 = vadd.f32 %v3465_v62, %v7219_v58  ;;  %v3497_v4 = vadd.f32 %v3470_v14, %v7220_v12 }
0x13d6   :  { %v3513_v21 = vrot.slane %v3512_v32, 2 }
0x13d7   :  { %v3479_v9 = vpop.f32.mrb[100].mxu1 }
0x13d8   :  { %v3480_v10 = vadd.f32 %v3479_v9, %v3366_v5  ;;  %v5125_v45 = vpop.f32.mrb[101].mxu1  ;;  %vm3514_vm5 = vcmp.lt.s32.totalorder %v3512_v32, %v3513_v21 }
0x13d9   :  { %v3515_v48 = vsel %vm3514_vm5, %v3512_v32, %v3513_v21 }
0x13da   :  { %v3516_v42 = vrot.slane %v3515_v48, 1  ;;  %v3499_v47 = vadd.f32 %v3480_v10, %v5787_v7  ;;  %v5434_v7 = vld [vmem:[%s7119_s1 + $0x98] sm:$0x3] }
0x13db   :  { %v3484_v3 = vpop.f32.mrb[102].mxu1 }
0x13dc   :  { %v3485_v34 = vadd.f32 %v3484_v3, %v3371_v30  ;;  %v5128_v31 = vpop.f32.mrb[103].mxu1  ;;  %vm3517_vm6 = vcmp.lt.s32.totalorder %v3515_v48, %v3516_v42  ;;  %v5433_v30 = vld [vmem:[%s7119_s1 + $0xa0] sm:$0xff] }
0x13dd   :  { %v3518_v19 = vsel %vm3517_vm6, %v3515_v48, %v3516_v42 }
0x13de   :  { %vm3519_vm8 = vcmp.eq.s32.totalorder %v5758_v38, %v3518_v19  ;;  %v3500_v32 = vadd.f32 %v3485_v34, %v5816_v54 }
0x13df   :  { %v3489_v8 = vpop.f32.mrb[104].mxu1  ;;  %5133 = vmatpush3.msk.msra.mxu0 %vm3519_vm8, %v7214_v11  ;;  %v3495_v11 = vadd.f32 %v3460_v49, %v7218_v51  ;;  %v3498_v49 = vadd.f32 %v3475_v53, %v5789_v39 }
0x13e0   :  { %v3490_v16 = vadd.f32 %v3489_v8, %v3376_v22  ;;  %5135 = vmatmul.mubr.msk.f32.vlgmr.msra.gmra.mrb[162].mxu0 %vm485_vm7, %v5432_v24  ;;  %v5131_v5 = vpop.f32.mrb[105].mxu1 }
0x13e1   :  { %5150 = vmatprep.mubr.msk.f32.mxu0 %vm183_vm1, %v5433_v30 }
0x13e2   :  { %v3501_v21 = vadd.f32 %v3490_v16, %v5812_v60 }
0x14b3   :  { %v6982_v36 = vpop.f32.mrb[162].mxu0 }
0x14b4   :  { %v6988_v22 = vrot.slane %v6982_v36, %v5782_v44  ;;  %v6992_v2 = vrot.slane %v6982_v36, %v5785_v1  ;;  %v5136_v55 = vpop.f32.mrb[163].mxu0 }
0x14b6   :  { %v3596_v17 = vmul.f32 %v6988_v22, %v3494_v61  ;;  %v3597_v57 = vmul.f32 %v6988_v22, %v3495_v11  ;;  %v3602_v13 = vmul.f32 %v6992_v2, %v3496_v59  ;;  %v3603_v51 = vmul.f32 %v6992_v2, %v3497_v4 }
0x14b8   :  { %v3604_v9 = vadd.f32 %v3602_v13, %v3596_v17  ;;  %v3605_v58 = vadd.f32 %v3603_v51, %v3597_v57  ;;  %v3708_v17 = vmul.f32 %v6992_v2, %v6907_v43 }
0x14ba   :  { %v3606_v62 = vmul.f32 %v3604_v9, %v3498_v49  ;;  %v3607_v12 = vmul.f32 %v3605_v58, %v3499_v47  ;;  %v3608_v14 = vmul.f32 %v3604_v9, %v3500_v32  ;;  %v3609_v45 = vmul.f32 %v3605_v58, %v3501_v21  ;;  %v5435_v58 = vld [vmem:[%s7119_s1 + $0xb0] sm:$0xff] }
0x14bb   :  { %v3710_v49 = vrot.slane %v3708_v17, 2  ;;  %v3702_v32 = vmul.f32 %v6988_v22, %v6907_v43 }
0x14bc   :  { %v5330_v48 = vpack.c.bf16 %v3607_v12, %v3606_v62  ;;  %v5333_v42 = vpack.c.bf16 %v3609_v45, %v3608_v14  ;;  %v5436_v62 = vld [vmem:[%s7119_s1 + $0xc0] sm:$0xff] }
0x14be   :  { %5331 = vmatpush3.bf16.msra.mxu1 %v5330_v48 }
0x14bf   :  { %5332 = vmatprep.subr.bf16.mxu1 %v7196_v18 }
0x14c2   :  { %5334 = vmatpush3.bf16.msra.mxu1 %v5333_v42 }
0x14c3   :  { %5335 = vmatprep.subr.bf16.mxu1 %v7196_v18 }
0x14c5   :  { %5146 = vmatmul.mubr.msk.f32.vlgmr.msra.gmra.mrb[106].mxu1 %vm577_vm9, %v5434_v7 }
0x14c6   :  { %5206 = vmatprep.mubr.msk.f32.mxu1 %vm5444_vm2, %v7197_v0 }
0x1598   :  { %v3676_v60 = vpop.f32.mrb[106].mxu1 }
0x1599   :  { %v3680_v39 = vsel %vm651_vm10, %v3676_v60, -inf  ;;  %v5147_v54 = vpop.f32.mrb[107].mxu1 }
0x159a   :  { %v3681_v53 = vrot.slane %v3680_v39, 4 }
0x159c   :  { %v3682_v10 = vmax.f32 %v3680_v39, %v3681_v53 }
0x159e   :  { %v3683_v3 = vrot.slane %v3682_v10, 2 }
0x15a0   :  { %v3684_v34 = vmax.f32 %v3682_v10, %v3683_v3 }
0x15a2   :  { %v3685_v31 = vrot.slane %v3684_v34, 1 }
0x15a4   :  { %v3686_v19 = vmax.f32 %v3684_v34, %v3685_v31 }
0x15a6   :  { %vm3687_vm7 = vcmp.ge.f32.partialorder %v3676_v60, %v3686_v19 }
0x15a7   :  { %v3688_v8 = vsel %vm3687_vm7, %v5758_v38, 2 }
0x15a8   :  { %v3689_v16 = vsel %vm651_vm10, %v3688_v8, 2147483647 }
0x15a9   :  { %v3690_v24 = vrot.slane %v3689_v16, 4 }
0x15ab   :  { %vm3691_vm9 = vcmp.lt.s32.totalorder %v3689_v16, %v3690_v24 }
0x15ac   :  { %v3692_v5 = vsel %vm3691_vm9, %v3689_v16, %v3690_v24 }
0x15ad   :  { %v3693_v30 = vrot.slane %v3692_v5, 2 }
0x15af   :  { %vm3694_vm2 = vcmp.lt.s32.totalorder %v3692_v5, %v3693_v30 }
0x15b0   :  { %v3695_v61 = vsel %vm3694_vm2, %v3692_v5, %v3693_v30 }
0x15b1   :  { %v3696_v11 = vrot.slane %v3695_v61, 1 }
0x15b3   :  { %vm3697_vm11 = vcmp.lt.s32.totalorder %v3695_v61, %v3696_v11 }
0x15b4   :  { %v3698_v55 = vsel %vm3697_vm11, %v3695_v61, %v3696_v11 }
0x15b5   :  { %vm3699_vm12 = vcmp.eq.s32.totalorder %v5758_v38, %v3698_v55  ;;  %v3712_v38 = vadd.f32 %v3710_v49, %v3702_v32  ;;  %v7290_v32 = vld [vmem:[#allocation15_spill] sm:$0xff] }
0x15b6   :  { %v4211_v59 = vsel %vm3699_vm12, 1.0, %v7197_v0 }
0x15b7   :  { %v3706_v4 = vrot.slane %v4211_v59, %v5782_v44  ;;  %v3716_v57 = vrot.slane %v4211_v59, %v5785_v1 }
0x15b9   :  { %v3717_v13 = vmul.f32 %v3716_v57, %v6907_v43  ;;  %v3707_v51 = vmul.f32 %v3706_v4, %v6907_v43 }
0x15bb   :  { %v3719_v47 = vrot.slane %v3717_v13, 2  ;;  %v7289_v13 = vld [vmem:[#allocation14_spill] sm:$0xff] }
0x15bd   :  { %v3721_v21 = vadd.f32 %v3719_v47, %v3707_v51 }
0x15bf   :  { %v3723_v9 = vrot.slane %v3721_v21, 6 }
0x15c1   :  { %v3725_v0 = vsel %vm651_vm10, %v3712_v38, %v3723_v9  ;;  %v7291_v9 = vld [vmem:[#allocation16_spill] sm:$0xff] }
0x15c2   :  { %5148 = vmatprep.subr.msk.mxu0 %vm211_vm0, %v3725_v0 }
0x15c3   :  { %5149 = vmatpush3.msk.msra.mxu0 %vm211_vm0, %v3725_v0 }
0x15c4   :  { %5151 = vmatmul.mubr.msk.f32.vlgmr.msra.gmra.mrb[164].mxu0 %vm183_vm1, %v6734_v33  ;;  %v5437_v33 = vld [vmem:[%s7119_s1 + $0xd0] sm:$0xff] }
0x15c5   :  { %5153 = vmatprep.mubr.msk.f32.mxu0 %vm183_vm1, %v5435_v58 }
0x15c8   :  { %5154 = vmatmul.mubr.msk.f32.gmra.mrb[166].mxu0 %vm183_vm1, %v6744_v52  ;;  %v5438_v52 = vld [vmem:[%s7119_s1 + $0xe0] sm:$0xff] }
0x15c9   :  { %5156 = vmatprep.mubr.msk.f32.mxu0 %vm183_vm1, %v5436_v62 }
0x15cc   :  { %5157 = vmatmul.mubr.msk.f32.gmra.mrb[168].mxu0 %vm183_vm1, %v6753_v63  ;;  %v5439_v63 = vld [vmem:[%s7119_s1 + $0xf0] sm:$0xff] }
0x15cd   :  { %5159 = vmatprep.mubr.msk.f32.mxu0 %vm183_vm1, %v5437_v33  ;;  %v7292_v33 = vld [vmem:[#allocation17_spill] sm:$0xff] }
0x15d0   :  { %5160 = vmatmul.mubr.msk.f32.gmra.mrb[170].mxu0 %vm183_vm1, %v6762_v50  ;;  %v5440_v50 = vld [vmem:[%s7119_s1 + $0x100] sm:$0xff] }
0x15d1   :  { %5162 = vmatprep.mubr.msk.f32.mxu0 %vm183_vm1, %v5438_v52 }
0x15d4   :  { %5163 = vmatmul.mubr.msk.f32.gmra.mrb[172].mxu0 %vm183_vm1, %v6771_v46  ;;  %v5441_v46 = vld [vmem:[%s7119_s1 + $0x110] sm:$0xff] }
0x15d5   :  { %5165 = vmatprep.mubr.msk.f32.mxu0 %vm183_vm1, %v5439_v63 }
0x15d8   :  { %5166 = vmatmul.mubr.msk.f32.gmra.mrb[174].mxu0 %vm183_vm1, %v6780_v20 }
0x15d9   :  { %5168 = vmatprep.mubr.msk.f32.mxu0 %vm183_vm1, %v5440_v50 }
0x15dc   :  { %5169 = vmatmul.mubr.msk.f32.gmra.mrb[176].mxu0 %vm183_vm1, %v6789_v40 }
0x15dd   :  { %5171 = vmatprep.mubr.msk.f32.mxu0 %vm183_vm1, %v5441_v46  ;;  %v7293_v46 = vld [vmem:[#allocation18_spill] sm:$0xff] }
0x15e0   :  { %5172 = vmatmul.mubr.msk.f32.gmra.mrb[178].mxu0 %vm183_vm1, %v6798_v15 }
0x1697   :  { %v5152_v12 = vpop.f32.mrb[164].mxu0 }
0x1698   :  { %v3801_v20 = vadd.f32 %v5152_v12, %v5883_v23  ;;  %v3795_v14 = vpop.f32.mrb[165].mxu0 }
0x1699   :  { %v3796_v45 = vadd.f32 %v3795_v14, %v5885_v25 }
0x169a   :  { %v3875_v48 = vmax.f32 %v3801_v20, 0.0 }
0x169b   :  { %v3874_v42 = vmax.f32 %v3796_v45, 0.0  ;;  %v5155_v7 = vpop.f32.mrb[166].mxu0 }
0x169c   :  { %v3811_v40 = vadd.f32 %v5155_v7, %v5887_v26  ;;  %v3805_v60 = vpop.f32.mrb[167].mxu0 }
0x169d   :  { %v5336_v39 = vpack.c.bf16 %v3875_v48, %v3874_v42  ;;  %v3806_v54 = vadd.f32 %v3805_v60, %v5889_v27  ;;  %v5442_v48 = vld [vmem:[%s7119_s1 + $0x120] sm:$0xff]  ;;  %v3993_v42 = vsub.f32 1.0, %v6982_v36 }
0x169e   :  { %v3877_v53 = vmax.f32 %v3811_v40, 0.0  ;;  %v7294_v40 = vld [vmem:[#allocation19_spill] sm:$0xff] }
0x169f   :  { %v3876_v10 = vmax.f32 %v3806_v54, 0.0  ;;  %v5158_v3 = vpop.f32.mrb[168].mxu0  ;;  %5337 = vmatpush3.bf16.msra.mxu1 %v5336_v39  ;;  %v3963_v60 = vrot.slane %v6982_v36, %v7294_v40  ;;  %v7295_v39 = vld [vmem:[#allocation23_spill] sm:$0xff] }
0x16a0   :  { %v3821_v15 = vadd.f32 %v5158_v3, %v5891_v28  ;;  %v3815_v34 = vpop.f32.mrb[169].mxu0  ;;  %5338 = vmatprep.subr.bf16.mxu1 %v7196_v18  ;;  %v7297_v3 = vld [vmem:[#allocation21_spill] sm:$0xff] }
0x16a1   :  { %v5339_v23 = vpack.c.bf16 %v3877_v53, %v3876_v10  ;;  %v3816_v25 = vadd.f32 %v3815_v34, %v5893_v29  ;;  %v7296_v53 = vld [vmem:[#allocation20_spill] sm:$0xff] }
0x16a2   :  { %v3879_v31 = vmax.f32 %v3821_v15, 0.0  ;;  %v3968_v10 = vrot.slane %v6982_v36, %v7296_v53  ;;  %v7298_v15 = vld [vmem:[#allocation22_spill] sm:$0xff] }
0x16a3   :  { %v3878_v19 = vmax.f32 %v3816_v25, 0.0  ;;  %v5161_v8 = vpop.f32.mrb[170].mxu0  ;;  %5340 = vmatpush3.bf16.msra.mxu1 %v5339_v23  ;;  %v3986_v34 = vrot.slane %v6982_v36, %v7298_v15 }
0x16a4   :  { %v3831_v26 = vadd.f32 %v5161_v8, %v5897_v56  ;;  %v3825_v16 = vpop.f32.mrb[171].mxu0  ;;  %5341 = vmatprep.subr.bf16.mxu1 %v7196_v18 }
0x16a5   :  { %v5342_v27 = vpack.c.bf16 %v3879_v31, %v3878_v19  ;;  %v3826_v24 = vadd.f32 %v3825_v16, %v7221_v41 }
0x16a6   :  { %v3881_v5 = vmax.f32 %v3831_v26, 0.0  ;;  %v4004_v26 = vrot.slane %v3993_v42, %v5785_v1 }
0x16a7   :  { %v3880_v28 = vmax.f32 %v3826_v24, 0.0  ;;  %v5164_v30 = vpop.f32.mrb[172].mxu0  ;;  %5343 = vmatpush3.bf16.msra.mxu1 %v5342_v27 }
0x16a8   :  { %v3841_v61 = vadd.f32 %v5164_v30, %v7222_v37  ;;  %v3835_v11 = vpop.f32.mrb[173].mxu0  ;;  %5344 = vmatprep.subr.bf16.mxu1 %v7196_v18 }
0x16a9   :  { %v5345_v29 = vpack.c.bf16 %v3881_v5, %v3880_v28  ;;  %v3836_v55 = vadd.f32 %v3835_v11, %v7276_v35  ;;  %v3997_v5 = vrot.slane %v3993_v42, %v5782_v44 }
0x16aa   :  { %v3883_v59 = vmax.f32 %v3841_v61, 0.0  ;;  %v4005_v61 = vmul.f32 %v4004_v26, %v6907_v43 }
0x16ab   :  { %v3882_v56 = vmax.f32 %v3836_v55, 0.0  ;;  %v5167_v4 = vpop.f32.mrb[174].mxu0  ;;  %5346 = vmatpush3.bf16.msra.mxu1 %v5345_v29 }
0x16ac   :  { %v3851_v17 = vadd.f32 %v5167_v4, %v7277_v6  ;;  %v3845_v57 = vpop.f32.mrb[175].mxu0  ;;  %5347 = vmatprep.subr.bf16.mxu1 %v7196_v18 }
0x16ad   :  { %v5348_v41 = vpack.c.bf16 %v3883_v59, %v3882_v56  ;;  %v3846_v51 = vadd.f32 %v3845_v57, %v7289_v13  ;;  %v4007_v59 = vrot.slane %v4005_v61, 2 }
0x16ae   :  { %v3885_v49 = vmax.f32 %v3851_v17, 0.0 }
0x16af   :  { %v3884_v37 = vmax.f32 %v3846_v51, 0.0  ;;  %v5170_v47 = vpop.f32.mrb[176].mxu0  ;;  %5349 = vmatpush3.bf16.msra.mxu1 %v5348_v41 }
0x16b0   :  { %v3861_v21 = vadd.f32 %v5170_v47, %v7290_v32  ;;  %v3855_v38 = vpop.f32.mrb[177].mxu0  ;;  %5350 = vmatprep.subr.bf16.mxu1 %v7196_v18 }
0x16b1   :  { %v5351_v35 = vpack.c.bf16 %v3885_v49, %v3884_v37  ;;  %v3856_v0 = vadd.f32 %v3855_v38, %v7291_v9 }
0x16b2   :  { %v3887_v58 = vmax.f32 %v3861_v21, 0.0 }
0x16b3   :  { %v3886_v6 = vmax.f32 %v3856_v0, 0.0  ;;  %v5173_v62 = vpop.f32.mrb[178].mxu0  ;;  %5352 = vmatpush3.bf16.msra.mxu1 %v5351_v35 }
0x16b4   :  { %v3871_v52 = vadd.f32 %v5173_v62, %v7292_v33  ;;  %v3865_v63 = vpop.f32.mrb[179].mxu0  ;;  %5353 = vmatprep.subr.bf16.mxu1 %v7196_v18 }
0x16b5   :  { %v5354_v50 = vpack.c.bf16 %v3887_v58, %v3886_v6  ;;  %v3866_v12 = vadd.f32 %v3865_v63, %v7293_v46 }
0x16b6   :  { %v3889_v20 = vmax.f32 %v3871_v52, 0.0 }
0x16b7   :  { %v3888_v14 = vmax.f32 %v3866_v12, 0.0  ;;  %5355 = vmatpush3.bf16.msra.mxu1 %v5354_v50 }
0x16b8   :  { %5356 = vmatprep.subr.bf16.mxu1 %v7196_v18  ;;  %v3977_v18 = vrot.slane %v6982_v36, %v7297_v3  ;;  %v3998_v36 = vmul.f32 %v3997_v5, %v6907_v43 }
0x16b9   :  { %v5357_v45 = vpack.c.bf16 %v3889_v20, %v3888_v14 }
0x16bb   :  { %5358 = vmatpush3.bf16.msra.mxu1 %v5357_v45 }
0x16be   :  { %5207 = vmatmul.mubr.f32.vlgmr.msra.gmra.mrb[108].mxu1 %v5442_v48 }
0x1791   :  { %v3956_v7 = vpop.f32.mrb[108].mxu1 }
0x1792   :  { %v3957_v54 = vadd.f32 %v3956_v7, %v7295_v39  ;;  %v5208_v23 = vpop.f32.mrb[109].mxu1 }
0x1794   :  { %v3964_v25 = vmul.f32 %v3963_v60, %v3957_v54  ;;  %v3969_v31 = vmul.f32 %v3968_v10, %v3957_v54  ;;  %v3978_v19 = vmul.f32 %v3977_v18, %v3957_v54  ;;  %v3987_v8 = vmul.f32 %v3986_v34, %v3957_v54 }
0x1796   :  { %v3971_v16 = vrot.slane %v3969_v31, 2  ;;  %v3980_v24 = vrot.slane %v3978_v19, 4  ;;  %v3989_v30 = vrot.slane %v3987_v8, 6 }
0x1798   :  { %v3973_v27 = vadd.f32 %v3971_v16, %v3964_v25 }
0x179a   :  { %v3982_v28 = vadd.f32 %v3980_v24, %v3973_v27 }
0x179c   :  { %v3991_v11 = vadd.f32 %v3989_v30, %v3982_v28 }
0x179e   :  { %v3992_v29 = vmul.f32 %v3991_v11, %v6988_v22  ;;  %v4000_v55 = vmul.f32 %v3991_v11, %v6992_v2 }
0x17a0   :  { %v3999_v56 = vadd.f32 %v3998_v36, %v3992_v29  ;;  %v4009_v4 = vadd.f32 %v4007_v59, %v4000_v55 }
0x17a2   :  { %v4011_v1 = vrot.slane %v4009_v4, 6 }
0x17a4   :  { %v4013_v17 = vsel %vm651_vm10, %v3999_v56, %v4011_v1 }
0x17a5   :  { %4014 = vst [vmem:[%s7120_s2 + $0x10] sm:$0xf] %v4013_v17 }

</bundles_post_ra>
